<compile_context>
chip_gen: v5e
topology: v5e:2x2
jax: 0.10.0
libtpu: 0.0.40
codegen_flags: <defaults>
</compile_context>

<pallas_src>
import math
import functools

import jax
import jax.numpy as jnp
from jax.experimental import pallas as pl
from jax.experimental.pallas import tpu as pltpu


# ----------------------------------------------------------------------------
# Host-side parameter packing: everything into a few lane-aligned blobs
# ----------------------------------------------------------------------------

class _Packer:
    """Packs 2-D f32 pieces into per-lane-width blobs with 8-row-aligned offsets."""

    def __init__(self):
        self._chunks = {}    # width -> list of (rows_padded, width) arrays
        self._offsets = {}   # width -> current row offset
        self.index = {}      # name  -> (width, row0, rows, cols)

    def add(self, name, arr):
        arr = jnp.asarray(arr, jnp.float32)
        if arr.ndim == 1:
            arr = arr[None, :]
        r, c = arr.shape
        rp = ((r + 7) // 8) * 8
        chunk = jnp.zeros((rp, c), jnp.float32).at[:r, :].set(arr)
        off = self._offsets.get(c, 0)
        self._chunks.setdefault(c, []).append(chunk)
        self.index[name] = (c, off, r, c)
        self._offsets[c] = off + rp

    def finalize(self):
        widths = tuple(sorted(self._chunks.keys()))
        blobs = [jnp.concatenate(self._chunks[w], axis=0) for w in widths]
        return widths, blobs, self.index


def positional_encoding(T, d_model):
    pos = jnp.arange(T, dtype=jnp.float32)[:, None]
    div = jnp.exp(jnp.arange(0, d_model, 2, dtype=jnp.float32)
                  * (-math.log(10000.0) / d_model))
    pe = jnp.zeros((T, d_model), jnp.float32)
    pe = pe.at[:, 0::2].set(jnp.sin(pos * div))
    pe = pe.at[:, 1::2].set(jnp.cos(pos * div))
    return pe


def xavier_uniform(key, shape):
    fan_in, fan_out = shape
    bound = math.sqrt(6.0 / (fan_in + fan_out))
    return jax.random.uniform(key, shape, jnp.float32, -bound, bound)


def build_packed_params(key, *, inp_l, enc_inp_size, dec_inp_size, dec_out_size,
                        d_model, d_ff, N, T_src, T_tgt, out_pad):
    pk = _Packer()
    keys = iter(jax.random.split(key, 4096))

    def add_linear(name, d_in, d_out, pad_to=None):
        w = xavier_uniform(next(keys), (d_in, d_out))
        b = jnp.zeros((d_out,), jnp.float32)
        if pad_to is not None and pad_to > d_out:
            w = jnp.pad(w, ((0, 0), (0, pad_to - d_out)))
            b = jnp.pad(b, ((0, pad_to - d_out),))
        pk.add(name + "_w", w)
        pk.add(name + "_b", b)

    def add_attn(prefix):
        wq = xavier_uniform(next(keys), (d_model, d_model))
        wk = xavier_uniform(next(keys), (d_model, d_model))
        wv = xavier_uniform(next(keys), (d_model, d_model))
        wo = xavier_uniform(next(keys), (d_model, d_model))
        pk.add(prefix + "_wqkv", jnp.concatenate([wq, wk, wv], axis=1))  # (d_model, 3*d_model)
        pk.add(prefix + "_bqkv", jnp.zeros((3 * d_model,), jnp.float32))
        pk.add(prefix + "_wo", wo)
        pk.add(prefix + "_bo", jnp.zeros((d_model,), jnp.float32))

    def add_ff(prefix):
        pk.add(prefix + "_w1", xavier_uniform(next(keys), (d_model, d_ff)))
        pk.add(prefix + "_b1", jnp.zeros((d_ff,), jnp.float32))
        pk.add(prefix + "_w2", xavier_uniform(next(keys), (d_ff, d_model)))
        pk.add(prefix + "_b2", jnp.zeros((d_model,), jnp.float32))

    def add_ln(prefix):
        pk.add(prefix + "_g", jnp.ones((d_model,), jnp.float32))
        pk.add(prefix + "_b", jnp.zeros((d_model,), jnp.float32))

    # Embeddings + generator (generator padded to a lane-dense width)
    add_linear("src_embed", enc_inp_size, d_model)
    add_linear("tgt_embed", dec_inp_size, d_model)
    add_linear("obd_embed", inp_l, d_model)
    add_linear("ego_embed", 2 * (inp_l - 1), d_model)
    add_linear("ped_embed", 2 * (inp_l - 1), d_model)
    add_linear("gen", d_model, dec_out_size, pad_to=out_pad)

    # Encoder layers + final norm
    for li in range(N):
        p = f"enc{li}_"
        add_attn(p + "self"); add_attn(p + "spd"); add_attn(p + "ped")
        add_ff(p + "ff")
        for j in range(4):
            add_ln(p + f"ln{j}")
    add_ln("enc_norm")

    # Decoder layers + final norm
    for li in range(N):
        p = f"dec{li}_"
        add_attn(p + "self"); add_attn(p + "src"); add_attn(p + "ego")
        add_ff(p + "ff")
        for j in range(4):
            add_ln(p + f"ln{j}")
    add_ln("dec_norm")

    # Positional encodings live in the blob too (width = d_model)
    pk.add("pe_src", positional_encoding(T_src, d_model))
    pk.add("pe_tgt", positional_encoding(T_tgt, d_model))

    return pk.finalize()


# ----------------------------------------------------------------------------
# In-kernel building blocks (operate on values already resident in VMEM)
# ----------------------------------------------------------------------------

def _ln(x, g, b, eps=1e-6):
    mean = jnp.mean(x, axis=-1, keepdims=True)
    xc = x - mean
    var = jnp.mean(xc * xc, axis=-1, keepdims=True)
    return xc * jax.lax.rsqrt(var + eps) * g + b


def _ff(x, w1, b1, w2, b2):
    hdn = jnp.maximum(jnp.dot(x, w1, preferred_element_type=jnp.float32) + b1, 0.0)
    return jnp.dot(hdn, w2, preferred_element_type=jnp.float32) + b2


def _mha(x_q, x_kv, wqkv, bqkv, wo, bo, bias, h):
    """Multi-head attention, fused QKV projection + single Wo matmul.

    x_q: (Tq, d_model), x_kv: (Tk, d_model).  If x_q is x_kv (self-attention), the QKV
    projection is one matmul.  `bias` is an additive score bias ((1,Tk) or (Tq,Tk)) or None.
    """
    d_model = wo.shape[0]
    dk = d_model // h
    scale = 1.0 / math.sqrt(dk)

    pq = jnp.dot(x_q, wqkv, preferred_element_type=jnp.float32) + bqkv      # (Tq, 3*d_model)
    if x_kv is x_q:
        pkv = pq
    else:
        pkv = jnp.dot(x_kv, wqkv, preferred_element_type=jnp.float32) + bqkv  # (Tk, 3*d_model)

    heads = []
    for i in range(h):   # static unroll; heads are static lane slices of the fused projection
        qi = pq[:, i * dk:(i + 1) * dk]
        ki = pkv[:, d_model + i * dk: d_model + (i + 1) * dk]
        vi = pkv[:, 2 * d_model + i * dk: 2 * d_model + (i + 1) * dk]
        # scores = qi @ ki^T without materializing a transpose
        s = jax.lax.dot_general(qi, ki, (((1,), (1,)), ((), ())),
                                preferred_element_type=jnp.float32) * scale
        if bias is not None:
            s = s + bias
        s = s - jnp.max(s, axis=-1, keepdims=True)
        e = jnp.exp(s)
        denom = jnp.sum(e, axis=-1, keepdims=True) + 1e-9   # eps: safe for fully-masked rows
        pr = e * pl.reciprocal(denom, approx=True)
        heads.append(jnp.dot(pr, vi, preferred_element_type=jnp.float32))    # (Tq, dk)
    hv = jnp.concatenate(heads, axis=-1)                                     # (Tq, d_model)
    return jnp.dot(hv, wo, preferred_element_type=jnp.float32) + bo


# ----------------------------------------------------------------------------
# Fused kernel: whole IndividualTF forward; B//G batch elements per grid step
# ----------------------------------------------------------------------------

def _fused_kernel(*refs, idx, widths, num_data, h, n_layers, sqrt_d):
    out_ref = refs[-1]
    data_refs = refs[:num_data]
    blob_refs = {w: refs[num_data + i] for i, w in enumerate(widths)}

    (inp_ref, obd_ref, ego_ref, ped_ref, tgt_ref, res_ref, mask_ref) = data_refs

    def W(name):
        w, r0, nr, _ = idx[name]
        return blob_refs[w][r0:r0 + nr, :]

    BPG = inp_ref.shape[0]
    T_src = inp_ref.shape[1]
    T_obd = obd_ref.shape[1]
    T_ego = ego_ref.shape[1]
    T_ped = ped_ref.shape[1]
    T_tgt = tgt_ref.shape[1]

    # Causal decoder-self-attention bias: built ONCE, reused for every layer / batch elem.
    row = jax.lax.broadcasted_iota(jnp.int32, (T_tgt, T_tgt), 0)
    col = jax.lax.broadcasted_iota(jnp.int32, (T_tgt, T_tgt), 1)
    causal_bias = jnp.where(col <= row, 0.0, -1e9).astype(jnp.float32)

    pe_src = W("pe_src")
    pe_tgt = W("pe_tgt")

    for bi in range(BPG):   # static unroll over local batch elements
        inp = inp_ref[bi]            # (T_src, enc_inp)
        obd = obd_ref[bi]            # (T_obd, inp_l)
        ego = ego_ref[bi]            # (T_ego, 2*(inp_l-1))
        ped = ped_ref[bi]            # (T_ped, 2*(inp_l-1))
        tgt = tgt_ref[bi]            # (T_tgt, dec_inp)
        res = res_ref[bi]            # (T_tgt, out_pad)
        masks = mask_ref[bi]         # (4, T_kmax) float, 1 = keep

        # Key-mask additive biases: built once per batch element, reused across all layers.
        def kbias(j, Tk):
            return jnp.where(masks[j:j + 1, :Tk] > 0.0, 0.0, -1e9).astype(jnp.float32)
        src_b = kbias(0, T_src)
        spd_b = kbias(1, T_obd)
        ped_b = kbias(2, T_ped)
        ego_b = kbias(3, T_ego)

        # Embeddings: LinearEmbedding * sqrt(d_model) + positional encoding (fused)
        src_e = (jnp.dot(inp, W("src_embed_w"), preferred_element_type=jnp.float32)
                 + W("src_embed_b")) * sqrt_d + pe_src
        tgt_e = (jnp.dot(tgt, W("tgt_embed_w"), preferred_element_type=jnp.float32)
                 + W("tgt_embed_b")) * sqrt_d + pe_tgt
        obd_e = jnp.dot(obd, W("obd_embed_w"), preferred_element_type=jnp.float32) + W("obd_embed_b")
        ego_e = jnp.dot(ego, W("ego_embed_w"), preferred_element_type=jnp.float32) + W("ego_embed_b")
        ped_e = jnp.dot(ped, W("ped_embed_w"), preferred_element_type=jnp.float32) + W("ped_embed_b")

        # Encoder (pre-norm residual sublayers; dropout = identity in eval mode)
        x = src_e
        for li in range(n_layers):
            p = f"enc{li}_"
            xn = _ln(x, W(p + "ln0_g"), W(p + "ln0_b"))
            x = x + _mha(xn, xn, W(p + "self_wqkv"), W(p + "self_bqkv"),
                         W(p + "self_wo"), W(p + "self_bo"), src_b, h)
            xn = _ln(x, W(p + "ln1_g"), W(p + "ln1_b"))
            x = x + _mha(xn, obd_e, W(p + "spd_wqkv"), W(p + "spd_bqkv"),
                         W(p + "spd_wo"), W(p + "spd_bo"), spd_b, h)
            xn = _ln(x, W(p + "ln2_g"), W(p + "ln2_b"))
            x = x + _mha(xn, ped_e, W(p + "ped_wqkv"), W(p + "ped_bqkv"),
                         W(p + "ped_wo"), W(p + "ped_bo"), ped_b, h)
            xn = _ln(x, W(p + "ln3_g"), W(p + "ln3_b"))
            x = x + _ff(xn, W(p + "ff_w1"), W(p + "ff_b1"), W(p + "ff_w2"), W(p + "ff_b2"))
        memory = _ln(x, W("enc_norm_g"), W("enc_norm_b"))

        # Decoder
        y = tgt_e
        for li in range(n_layers):
            p = f"dec{li}_"
            yn = _ln(y, W(p + "ln0_g"), W(p + "ln0_b"))
            y = y + _mha(yn, yn, W(p + "self_wqkv"), W(p + "self_bqkv"),
                         W(p + "self_wo"), W(p + "self_bo"), causal_bias, h)
            yn = _ln(y, W(p + "ln1_g"), W(p + "ln1_b"))
            y = y + _mha(yn, memory, W(p + "src_wqkv"), W(p + "src_bqkv"),
                         W(p + "src_wo"), W(p + "src_bo"), src_b, h)
            yn = _ln(y, W(p + "ln2_g"), W(p + "ln2_b"))
            y = y + _mha(yn, ego_e, W(p + "ego_wqkv"), W(p + "ego_bqkv"),
                         W(p + "ego_wo"), W(p + "ego_bo"), ego_b, h)
            yn = _ln(y, W(p + "ln3_g"), W(p + "ln3_b"))
            y = y + _ff(yn, W(p + "ff_w1"), W(p + "ff_b1"), W(p + "ff_w2"), W(p + "ff_b2"))
        dec = _ln(y, W("dec_norm_g"), W("dec_norm_b"))

        # Generator (lane-dense, padded to out_pad columns) + residual
        out = jnp.dot(dec, W("gen_w"), preferred_element_type=jnp.float32) + W("gen_b") + res
        out_ref[bi] = out


# ----------------------------------------------------------------------------
# Wrapper
# ----------------------------------------------------------------------------

def individual_tf_forward(blobs, residual, inp, obd_spd, ego_flow, ped_flow, tgt,
                          src_mask, obd_enc_mask, spd_mask, ped_mask,
                          *, widths, idx, d_model, h, N, dec_out_size, out_pad):
    B, T_src, _ = inp.shape
    T_obd = obd_spd.shape[1]
    T_ego = ego_flow.shape[1]
    T_ped = ped_flow.shape[1]
    T_tgt = tgt.shape[1]

    # Pack the 4 key masks into one (B, 4, T_kmax) array (one DMA instead of four).
    T_kmax = max(T_src, T_obd, T_ped, T_ego)

    def pad_mask(m, Tk):
        m = m.reshape(B, 1, Tk).astype(jnp.float32)
        if Tk < T_kmax:
            m = jnp.pad(m, ((0, 0), (0, 0), (0, T_kmax - Tk)))
        return m

    masks = jnp.concatenate([pad_mask(src_mask, T_src), pad_mask(spd_mask, T_obd),
                             pad_mask(ped_mask, T_ped), pad_mask(obd_enc_mask, T_ego)],
                            axis=1)

    # Residual padded to the lane-dense output width (zeros beyond dec_out_size).
    res_pad = jnp.pad(residual.astype(jnp.float32),
                      ((0, 0), (0, 0), (0, out_pad - dec_out_size)))

    # Grid: at most 2 steps -> 2-way parallel axis for v7x megacore, minimal overhead on
    # single-TensorCore v5e/v6e.  Each step processes B//G batch elements in-kernel.
    G = 2 if (B >= 2 and B % 2 == 0) else 1
    BPG = B // G

    data = [inp.astype(jnp.float32), obd_spd.astype(jnp.float32),
            ego_flow.astype(jnp.float32), ped_flow.astype(jnp.float32),
            tgt.astype(jnp.float32), res_pad, masks]

    def batched_spec(a):
        nrest = a.ndim - 1
        return pl.BlockSpec((BPG,) + a.shape[1:], lambda g, _n=nrest: (g,) + (0,) * _n)

    def replicated_spec(a):
        # Full-array block, constant block index -> not re-DMA'd across grid steps.
        nd = a.ndim
        return pl.BlockSpec(a.shape, lambda g, _nd=nd: (0,) * _nd)

    in_specs = ([batched_spec(a) for a in data]
                + [replicated_spec(b) for b in blobs])

    kernel = functools.partial(
        _fused_kernel, idx=idx, widths=widths, num_data=len(data),
        h=h, n_layers=N, sqrt_d=math.sqrt(d_model))

    out = pl.pallas_call(
        kernel,
        out_shape=jax.ShapeDtypeStruct((B, T_tgt, out_pad), jnp.float32),
        grid=(G,),
        in_specs=in_specs,
        out_specs=pl.BlockSpec((BPG, T_tgt, out_pad), lambda g: (g, 0, 0)),
        compiler_params=pltpu.CompilerParams(dimension_semantics=("parallel",)),
    )(*data, *blobs)

    return out[..., :dec_out_size]


# ----------------------------------------------------------------------------
# Main
# ----------------------------------------------------------------------------

if __name__ == "__main__":
    # Small hyperparameters consistent with IndividualTF's constructor
    inp_l = 8
    enc_inp_size, dec_inp_size, dec_out_size = 4, 3, 4
    d_model, d_ff, h, N = 64, 128, 4, 1

    B, T_src, T_tgt = 2, 8, 6
    T_obd, T_ego, T_ped = 4, 4, 4

    out_pad = ((dec_out_size + 127) // 128) * 128   # lane-dense output width (128)

    root = jax.random.PRNGKey(0)
    kp, kd = jax.random.split(root)

    widths, blobs, idx = build_packed_params(
        kp, inp_l=inp_l, enc_inp_size=enc_inp_size, dec_inp_size=dec_inp_size,
        dec_out_size=dec_out_size, d_model=d_model, d_ff=d_ff, N=N,
        T_src=T_src, T_tgt=T_tgt, out_pad=out_pad)

    dks = jax.random.split(kd, 6)
    inp = jax.random.normal(dks[0], (B, T_src, enc_inp_size), jnp.float32)
    obd_spd = jax.random.normal(dks[1], (B, T_obd, inp_l), jnp.float32)
    ego_flow = jax.random.normal(dks[2], (B, T_ego, 2 * (inp_l - 1)), jnp.float32)
    ped_flow = jax.random.normal(dks[3], (B, T_ped, 2 * (inp_l - 1)), jnp.float32)
    tgt = jax.random.normal(dks[4], (B, T_tgt, dec_inp_size), jnp.float32)
    residual = jax.random.normal(dks[5], (B, T_tgt, dec_out_size), jnp.float32)

    # Masks: 1 = attend, 0 = mask (packed and applied in-kernel).
    src_mask = jnp.ones((B, 1, T_src), jnp.float32)       # encoder self-attn / decoder src-attn
    obd_enc_mask = jnp.ones((B, 1, T_ego), jnp.float32)   # decoder cross-attn to ego-flow embedding
    spd_mask = jnp.ones((B, 1, T_obd), jnp.float32)       # encoder cross-attn to obd-speed embedding
    ped_mask = jnp.ones((B, 1, T_ped), jnp.float32)       # encoder cross-attn to ped-flow embedding

    fwd = jax.jit(functools.partial(
        individual_tf_forward, widths=widths, idx=idx,
        d_model=d_model, h=h, N=N, dec_out_size=dec_out_size, out_pad=out_pad))

    out = fwd(blobs, residual, inp, obd_spd, ego_flow, ped_flow, tgt,
              src_mask, obd_enc_mask, spd_mask, ped_mask)
    out = jax.block_until_ready(out)
    assert out.shape == (B, T_tgt, dec_out_size)
    assert jnp.all(jnp.isfinite(out))
    print("KERNEL_OK")
</pallas_src>

<mosaic_0001>
module attributes {stable_mosaic.version = 11 : i64} {
  func.func @_fused_kernel(%arg0: i32, %arg1: memref<1x8x4xf32, #tpu.memory_space<vmem>>, %arg2: memref<1x4x8xf32, #tpu.memory_space<vmem>>, %arg3: memref<1x4x14xf32, #tpu.memory_space<vmem>>, %arg4: memref<1x4x14xf32, #tpu.memory_space<vmem>>, %arg5: memref<1x6x3xf32, #tpu.memory_space<vmem>>, %arg6: memref<1x6x128xf32, #tpu.memory_space<vmem>>, %arg7: memref<1x4x8xf32, #tpu.memory_space<vmem>>, %arg8: memref<976x64xf32, #tpu.memory_space<vmem>>, %arg9: memref<216x128xf32, #tpu.memory_space<vmem>>, %arg10: memref<432x192xf32, #tpu.memory_space<vmem>>, %arg11: memref<1x6x128xf32, #tpu.memory_space<vmem>>) attributes {dimension_semantics = [#tpu.dimension_semantics<parallel>], iteration_bounds = array<i64: 2>, scalar_prefetch = 0 : i64, scratch_operands = 0 : i64, tpu.core_type = #tpu.core_type<tc>, window_params = [{transform_indices = @transform_0, window_bounds = array<i64: 1, 8, 4>}, {transform_indices = @transform_1, window_bounds = array<i64: 1, 4, 8>}, {transform_indices = @transform_2, window_bounds = array<i64: 1, 4, 14>}, {transform_indices = @transform_3, window_bounds = array<i64: 1, 4, 14>}, {transform_indices = @transform_4, window_bounds = array<i64: 1, 6, 3>}, {transform_indices = @transform_5, window_bounds = array<i64: 1, 6, 128>}, {transform_indices = @transform_6, window_bounds = array<i64: 1, 4, 8>}, {pipeline_mode = #tpu.pipeline_mode<synchronous>, transform_indices = @transform_7, window_bounds = array<i64: 976, 64>}, {pipeline_mode = #tpu.pipeline_mode<synchronous>, transform_indices = @transform_8, window_bounds = array<i64: 216, 128>}, {pipeline_mode = #tpu.pipeline_mode<synchronous>, transform_indices = @transform_9, window_bounds = array<i64: 432, 192>}, {transform_indices = @transform_10, window_bounds = array<i64: 1, 6, 128>}]} {
    %0 = tpu.iota {dimensions = array<i32: 0>} : vector<6x6xi32>
    %1 = tpu.iota {dimensions = array<i32: 1>} : vector<6x6xi32>
    %2 = arith.cmpi sle, %1, %0 : vector<6x6xi32>
    %cst = arith.constant 0.000000e+00 : f32
    %cst_0 = arith.constant -1.000000e+09 : f32
    %3 = vector.broadcast %cst : f32 to vector<6x6xf32>
    %4 = vector.broadcast %cst_0 : f32 to vector<6x6xf32>
    %5 = arith.select %2, %3, %4 : vector<6x6xi1>, vector<6x6xf32>
    %c960 = arith.constant 960 : index
    %c0 = arith.constant 0 : index
    %6 = vector.load %arg8[%c960, %c0] : memref<976x64xf32, #tpu.memory_space<vmem>>, vector<8x64xf32>
    %c968 = arith.constant 968 : index
    %c0_1 = arith.constant 0 : index
    %7 = vector.load %arg8[%c968, %c0_1] : memref<976x64xf32, #tpu.memory_space<vmem>>, vector<6x64xf32>
    %c0_2 = arith.constant 0 : index
    %c0_3 = arith.constant 0 : index
    %c0_4 = arith.constant 0 : index
    %8 = vector.load %arg1[%c0_2, %c0_3, %c0_4] : memref<1x8x4xf32, #tpu.memory_space<vmem>>, vector<1x8x4xf32>
    %9 = vector.shape_cast %8 : vector<1x8x4xf32> to vector<8x4xf32>
    %c0_5 = arith.constant 0 : index
    %c0_6 = arith.constant 0 : index
    %c0_7 = arith.constant 0 : index
    %10 = vector.load %arg2[%c0_5, %c0_6, %c0_7] : memref<1x4x8xf32, #tpu.memory_space<vmem>>, vector<1x4x8xf32>
    %11 = vector.shape_cast %10 : vector<1x4x8xf32> to vector<4x8xf32>
    %c0_8 = arith.constant 0 : index
    %c0_9 = arith.constant 0 : index
    %c0_10 = arith.constant 0 : index
    %12 = vector.load %arg3[%c0_8, %c0_9, %c0_10] : memref<1x4x14xf32, #tpu.memory_space<vmem>>, vector<1x4x14xf32>
    %13 = vector.shape_cast %12 : vector<1x4x14xf32> to vector<4x14xf32>
    %c0_11 = arith.constant 0 : index
    %c0_12 = arith.constant 0 : index
    %c0_13 = arith.constant 0 : index
    %14 = vector.load %arg4[%c0_11, %c0_12, %c0_13] : memref<1x4x14xf32, #tpu.memory_space<vmem>>, vector<1x4x14xf32>
    %15 = vector.shape_cast %14 : vector<1x4x14xf32> to vector<4x14xf32>
    %c0_14 = arith.constant 0 : index
    %c0_15 = arith.constant 0 : index
    %c0_16 = arith.constant 0 : index
    %16 = vector.load %arg5[%c0_14, %c0_15, %c0_16] : memref<1x6x3xf32, #tpu.memory_space<vmem>>, vector<1x6x3xf32>
    %17 = vector.shape_cast %16 : vector<1x6x3xf32> to vector<6x3xf32>
    %c0_17 = arith.constant 0 : index
    %c0_18 = arith.constant 0 : index
    %c0_19 = arith.constant 0 : index
    %18 = vector.load %arg6[%c0_17, %c0_18, %c0_19] : memref<1x6x128xf32, #tpu.memory_space<vmem>>, vector<1x6x128xf32>
    %19 = vector.shape_cast %18 : vector<1x6x128xf32> to vector<6x128xf32>
    %c0_20 = arith.constant 0 : index
    %c0_21 = arith.constant 0 : index
    %c0_22 = arith.constant 0 : index
    %20 = vector.load %arg7[%c0_20, %c0_21, %c0_22] : memref<1x4x8xf32, #tpu.memory_space<vmem>>, vector<1x4x8xf32>
    %21 = vector.shape_cast %20 : vector<1x4x8xf32> to vector<4x8xf32>
    %22 = vector.extract_strided_slice %21 {offsets = [0, 0], sizes = [1, 8], strides = [1, 1]} : vector<4x8xf32> to vector<1x8xf32>
    %cst_23 = arith.constant 0.000000e+00 : f32
    %23 = vector.broadcast %cst_23 : f32 to vector<1x8xf32>
    %24 = arith.cmpf ogt, %22, %23 : vector<1x8xf32>
    %cst_24 = arith.constant 0.000000e+00 : f32
    %cst_25 = arith.constant -1.000000e+09 : f32
    %25 = vector.broadcast %cst_24 : f32 to vector<1x8xf32>
    %26 = vector.broadcast %cst_25 : f32 to vector<1x8xf32>
    %27 = arith.select %24, %25, %26 : vector<1x8xi1>, vector<1x8xf32>
    %28 = vector.extract_strided_slice %21 {offsets = [1, 0], sizes = [1, 4], strides = [1, 1]} : vector<4x8xf32> to vector<1x4xf32>
    %cst_26 = arith.constant 0.000000e+00 : f32
    %29 = vector.broadcast %cst_26 : f32 to vector<1x4xf32>
    %30 = arith.cmpf ogt, %28, %29 : vector<1x4xf32>
    %cst_27 = arith.constant 0.000000e+00 : f32
    %cst_28 = arith.constant -1.000000e+09 : f32
    %31 = vector.broadcast %cst_27 : f32 to vector<1x4xf32>
    %32 = vector.broadcast %cst_28 : f32 to vector<1x4xf32>
    %33 = arith.select %30, %31, %32 : vector<1x4xi1>, vector<1x4xf32>
    %34 = vector.extract_strided_slice %21 {offsets = [2, 0], sizes = [1, 4], strides = [1, 1]} : vector<4x8xf32> to vector<1x4xf32>
    %cst_29 = arith.constant 0.000000e+00 : f32
    %35 = vector.broadcast %cst_29 : f32 to vector<1x4xf32>
    %36 = arith.cmpf ogt, %34, %35 : vector<1x4xf32>
    %cst_30 = arith.constant 0.000000e+00 : f32
    %cst_31 = arith.constant -1.000000e+09 : f32
    %37 = vector.broadcast %cst_30 : f32 to vector<1x4xf32>
    %38 = vector.broadcast %cst_31 : f32 to vector<1x4xf32>
    %39 = arith.select %36, %37, %38 : vector<1x4xi1>, vector<1x4xf32>
    %40 = vector.extract_strided_slice %21 {offsets = [3, 0], sizes = [1, 4], strides = [1, 1]} : vector<4x8xf32> to vector<1x4xf32>
    %cst_32 = arith.constant 0.000000e+00 : f32
    %41 = vector.broadcast %cst_32 : f32 to vector<1x4xf32>
    %42 = arith.cmpf ogt, %40, %41 : vector<1x4xf32>
    %cst_33 = arith.constant 0.000000e+00 : f32
    %cst_34 = arith.constant -1.000000e+09 : f32
    %43 = vector.broadcast %cst_33 : f32 to vector<1x4xf32>
    %44 = vector.broadcast %cst_34 : f32 to vector<1x4xf32>
    %45 = arith.select %42, %43, %44 : vector<1x4xi1>, vector<1x4xf32>
    %c0_35 = arith.constant 0 : index
    %c0_36 = arith.constant 0 : index
    %46 = vector.load %arg8[%c0_35, %c0_36] : memref<976x64xf32, #tpu.memory_space<vmem>>, vector<4x64xf32>
    %cst_37 = arith.constant dense<0.000000e+00> : vector<8x64xf32>
    %47 = tpu.matmul %9, %46, %cst_37 {dimension_numbers = #tpu.dot_dimension_numbers<[1], [0], [0], [1], [0, 0, 1, 1], [], []>} : vector<8x4xf32>, vector<4x64xf32>, vector<8x64xf32> -> vector<8x64xf32>
    %c8 = arith.constant 8 : index
    %c0_38 = arith.constant 0 : index
    %48 = vector.load %arg8[%c8, %c0_38] : memref<976x64xf32, #tpu.memory_space<vmem>>, vector<1x64xf32>
    %49 = vector.broadcast %48 : vector<1x64xf32> to vector<8x64xf32>
    %50 = arith.addf %47, %49 : vector<8x64xf32>
    %cst_39 = arith.constant 8.000000e+00 : f32
    %51 = vector.broadcast %cst_39 : f32 to vector<8x64xf32>
    %52 = arith.mulf %50, %51 : vector<8x64xf32>
    %53 = arith.addf %52, %6 : vector<8x64xf32>
    %c16 = arith.constant 16 : index
    %c0_40 = arith.constant 0 : index
    %54 = vector.load %arg8[%c16, %c0_40] : memref<976x64xf32, #tpu.memory_space<vmem>>, vector<3x64xf32>
    %cst_41 = arith.constant dense<0.000000e+00> : vector<6x64xf32>
    %55 = tpu.matmul %17, %54, %cst_41 {dimension_numbers = #tpu.dot_dimension_numbers<[1], [0], [0], [1], [0, 0, 1, 1], [], []>} : vector<6x3xf32>, vector<3x64xf32>, vector<6x64xf32> -> vector<6x64xf32>
    %c24 = arith.constant 24 : index
    %c0_42 = arith.constant 0 : index
    %56 = vector.load %arg8[%c24, %c0_42] : memref<976x64xf32, #tpu.memory_space<vmem>>, vector<1x64xf32>
    %57 = vector.broadcast %56 : vector<1x64xf32> to vector<6x64xf32>
    %58 = arith.addf %55, %57 : vector<6x64xf32>
    %cst_43 = arith.constant 8.000000e+00 : f32
    %59 = vector.broadcast %cst_43 : f32 to vector<6x64xf32>
    %60 = arith.mulf %58, %59 : vector<6x64xf32>
    %61 = arith.addf %60, %7 : vector<6x64xf32>
    %c32 = arith.constant 32 : index
    %c0_44 = arith.constant 0 : index
    %62 = vector.load %arg8[%c32, %c0_44] : memref<976x64xf32, #tpu.memory_space<vmem>>, vector<8x64xf32>
    %cst_45 = arith.constant dense<0.000000e+00> : vector<4x64xf32>
    %63 = tpu.matmul %11, %62, %cst_45 {dimension_numbers = #tpu.dot_dimension_numbers<[1], [0], [0], [1], [0, 0, 1, 1], [], []>} : vector<4x8xf32>, vector<8x64xf32>, vector<4x64xf32> -> vector<4x64xf32>
    %c40 = arith.constant 40 : index
    %c0_46 = arith.constant 0 : index
    %64 = vector.load %arg8[%c40, %c0_46] : memref<976x64xf32, #tpu.memory_space<vmem>>, vector<1x64xf32>
    %65 = vector.broadcast %64 : vector<1x64xf32> to vector<4x64xf32>
    %66 = arith.addf %63, %65 : vector<4x64xf32>
    %c48 = arith.constant 48 : index
    %c0_47 = arith.constant 0 : index
    %67 = vector.load %arg8[%c48, %c0_47] : memref<976x64xf32, #tpu.memory_space<vmem>>, vector<14x64xf32>
    %cst_48 = arith.constant dense<0.000000e+00> : vector<4x64xf32>
    %68 = tpu.matmul %13, %67, %cst_48 {dimension_numbers = #tpu.dot_dimension_numbers<[1], [0], [0], [1], [0, 0, 1, 1], [], []>} : vector<4x14xf32>, vector<14x64xf32>, vector<4x64xf32> -> vector<4x64xf32>
    %c64 = arith.constant 64 : index
    %c0_49 = arith.constant 0 : index
    %69 = vector.load %arg8[%c64, %c0_49] : memref<976x64xf32, #tpu.memory_space<vmem>>, vector<1x64xf32>
    %70 = vector.broadcast %69 : vector<1x64xf32> to vector<4x64xf32>
    %71 = arith.addf %68, %70 : vector<4x64xf32>
    %c72 = arith.constant 72 : index
    %c0_50 = arith.constant 0 : index
    %72 = vector.load %arg8[%c72, %c0_50] : memref<976x64xf32, #tpu.memory_space<vmem>>, vector<14x64xf32>
    %cst_51 = arith.constant dense<0.000000e+00> : vector<4x64xf32>
    %73 = tpu.matmul %15, %72, %cst_51 {dimension_numbers = #tpu.dot_dimension_numbers<[1], [0], [0], [1], [0, 0, 1, 1], [], []>} : vector<4x14xf32>, vector<14x64xf32>, vector<4x64xf32> -> vector<4x64xf32>
    %c88 = arith.constant 88 : index
    %c0_52 = arith.constant 0 : index
    %74 = vector.load %arg8[%c88, %c0_52] : memref<976x64xf32, #tpu.memory_space<vmem>>, vector<1x64xf32>
    %75 = vector.broadcast %74 : vector<1x64xf32> to vector<4x64xf32>
    %76 = arith.addf %73, %75 : vector<4x64xf32>
    %c448 = arith.constant 448 : index
    %c0_53 = arith.constant 0 : index
    %77 = vector.load %arg8[%c448, %c0_53] : memref<976x64xf32, #tpu.memory_space<vmem>>, vector<1x64xf32>
    %c456 = arith.constant 456 : index
    %c0_54 = arith.constant 0 : index
    %78 = vector.load %arg8[%c456, %c0_54] : memref<976x64xf32, #tpu.memory_space<vmem>>, vector<1x64xf32>
    %cst_55 = arith.constant dense<0.000000e+00> : vector<8xf32>
    %79 = vector.multi_reduction <add>, %53, %cst_55 [1] : vector<8x64xf32> to vector<8xf32>
    %80 = vector.shape_cast %79 : vector<8xf32> to vector<8x1xf32>
    %cst_56 = arith.constant 6.400000e+01 : f32
    %81 = vector.broadcast %cst_56 : f32 to vector<8x1xf32>
    %82 = arith.divf %80, %81 : vector<8x1xf32>
    %83 = vector.broadcast %82 : vector<8x1xf32> to vector<8x64xf32>
    %84 = arith.subf %53, %83 : vector<8x64xf32>
    %85 = arith.mulf %84, %84 : vector<8x64xf32>
    %cst_57 = arith.constant dense<0.000000e+00> : vector<8xf32>
    %86 = vector.multi_reduction <add>, %85, %cst_57 [1] : vector<8x64xf32> to vector<8xf32>
    %87 = vector.shape_cast %86 : vector<8xf32> to vector<8x1xf32>
    %cst_58 = arith.constant 6.400000e+01 : f32
    %88 = vector.broadcast %cst_58 : f32 to vector<8x1xf32>
    %89 = arith.divf %87, %88 : vector<8x1xf32>
    %cst_59 = arith.constant 9.99999997E-7 : f32
    %90 = vector.broadcast %cst_59 : f32 to vector<8x1xf32>
    %91 = arith.addf %89, %90 : vector<8x1xf32>
    %92 = math.rsqrt %91 : vector<8x1xf32>
    %93 = vector.broadcast %92 : vector<8x1xf32> to vector<8x64xf32>
    %94 = arith.mulf %84, %93 : vector<8x64xf32>
    %95 = vector.broadcast %77 : vector<1x64xf32> to vector<8x64xf32>
    %96 = arith.mulf %94, %95 : vector<8x64xf32>
    %97 = vector.broadcast %78 : vector<1x64xf32> to vector<8x64xf32>
    %98 = arith.addf %96, %97 : vector<8x64xf32>
    %c0_60 = arith.constant 0 : index
    %c0_61 = arith.constant 0 : index
    %99 = vector.load %arg10[%c0_60, %c0_61] : memref<432x192xf32, #tpu.memory_space<vmem>>, vector<64x192xf32>
    %c64_62 = arith.constant 64 : index
    %c0_63 = arith.constant 0 : index
    %100 = vector.load %arg10[%c64_62, %c0_63] : memref<432x192xf32, #tpu.memory_space<vmem>>, vector<1x192xf32>
    %c96 = arith.constant 96 : index
    %c0_64 = arith.constant 0 : index
    %101 = vector.load %arg8[%c96, %c0_64] : memref<976x64xf32, #tpu.memory_space<vmem>>, vector<64x64xf32>
    %c160 = arith.constant 160 : index
    %c0_65 = arith.constant 0 : index
    %102 = vector.load %arg8[%c160, %c0_65] : memref<976x64xf32, #tpu.memory_space<vmem>>, vector<1x64xf32>
    %cst_66 = arith.constant dense<0.000000e+00> : vector<8x192xf32>
    %103 = tpu.matmul %98, %99, %cst_66 {dimension_numbers = #tpu.dot_dimension_numbers<[1], [0], [0], [1], [0, 0, 1, 1], [], []>} : vector<8x64xf32>, vector<64x192xf32>, vector<8x192xf32> -> vector<8x192xf32>
    %104 = vector.broadcast %100 : vector<1x192xf32> to vector<8x192xf32>
    %105 = arith.addf %103, %104 : vector<8x192xf32>
    %106 = vector.extract_strided_slice %105 {offsets = [0, 0], sizes = [8, 16], strides = [1, 1]} : vector<8x192xf32> to vector<8x16xf32>
    %107 = vector.extract_strided_slice %105 {offsets = [0, 64], sizes = [8, 16], strides = [1, 1]} : vector<8x192xf32> to vector<8x16xf32>
    %108 = vector.extract_strided_slice %105 {offsets = [0, 128], sizes = [8, 16], strides = [1, 1]} : vector<8x192xf32> to vector<8x16xf32>
    %cst_67 = arith.constant dense<0.000000e+00> : vector<8x8xf32>
    %109 = tpu.matmul %106, %107, %cst_67 {dimension_numbers = #tpu.dot_dimension_numbers<[1], [1], [0], [0], [0, 0, 1, 0], [], []>} : vector<8x16xf32>, vector<8x16xf32>, vector<8x8xf32> -> vector<8x8xf32>
    %cst_68 = arith.constant 2.500000e-01 : f32
    %110 = vector.broadcast %cst_68 : f32 to vector<8x8xf32>
    %111 = arith.mulf %109, %110 : vector<8x8xf32>
    %112 = vector.broadcast %27 : vector<1x8xf32> to vector<8x8xf32>
    %113 = arith.addf %111, %112 : vector<8x8xf32>
    %cst_69 = arith.constant dense<0xFF800000> : vector<8xf32>
    %114 = vector.multi_reduction <maximumf>, %113, %cst_69 [1] : vector<8x8xf32> to vector<8xf32>
    %115 = vector.shape_cast %114 : vector<8xf32> to vector<8x1xf32>
    %116 = vector.broadcast %115 : vector<8x1xf32> to vector<8x8xf32>
    %117 = arith.subf %113, %116 : vector<8x8xf32>
    %118 = math.exp %117 : vector<8x8xf32>
    %cst_70 = arith.constant dense<0.000000e+00> : vector<8xf32>
    %119 = vector.multi_reduction <add>, %118, %cst_70 [1] : vector<8x8xf32> to vector<8xf32>
    %120 = vector.shape_cast %119 : vector<8xf32> to vector<8x1xf32>
    %cst_71 = arith.constant 9.99999971E-10 : f32
    %121 = vector.broadcast %cst_71 : f32 to vector<8x1xf32>
    %122 = arith.addf %120, %121 : vector<8x1xf32>
    %123 = tpu.reciprocal %122 {approx = true} : vector<8x1xf32> -> vector<8x1xf32>
    %124 = vector.broadcast %123 : vector<8x1xf32> to vector<8x8xf32>
    %125 = arith.mulf %118, %124 : vector<8x8xf32>
    %cst_72 = arith.constant dense<0.000000e+00> : vector<8x16xf32>
    %126 = tpu.matmul %125, %108, %cst_72 {dimension_numbers = #tpu.dot_dimension_numbers<[1], [0], [0], [1], [0, 0, 1, 1], [], []>} : vector<8x8xf32>, vector<8x16xf32>, vector<8x16xf32> -> vector<8x16xf32>
    %127 = vector.extract_strided_slice %105 {offsets = [0, 16], sizes = [8, 16], strides = [1, 1]} : vector<8x192xf32> to vector<8x16xf32>
    %128 = vector.extract_strided_slice %105 {offsets = [0, 80], sizes = [8, 16], strides = [1, 1]} : vector<8x192xf32> to vector<8x16xf32>
    %129 = vector.extract_strided_slice %105 {offsets = [0, 144], sizes = [8, 16], strides = [1, 1]} : vector<8x192xf32> to vector<8x16xf32>
    %cst_73 = arith.constant dense<0.000000e+00> : vector<8x8xf32>
    %130 = tpu.matmul %127, %128, %cst_73 {dimension_numbers = #tpu.dot_dimension_numbers<[1], [1], [0], [0], [0, 0, 1, 0], [], []>} : vector<8x16xf32>, vector<8x16xf32>, vector<8x8xf32> -> vector<8x8xf32>
    %cst_74 = arith.constant 2.500000e-01 : f32
    %131 = vector.broadcast %cst_74 : f32 to vector<8x8xf32>
    %132 = arith.mulf %130, %131 : vector<8x8xf32>
    %133 = vector.broadcast %27 : vector<1x8xf32> to vector<8x8xf32>
    %134 = arith.addf %132, %133 : vector<8x8xf32>
    %cst_75 = arith.constant dense<0xFF800000> : vector<8xf32>
    %135 = vector.multi_reduction <maximumf>, %134, %cst_75 [1] : vector<8x8xf32> to vector<8xf32>
    %136 = vector.shape_cast %135 : vector<8xf32> to vector<8x1xf32>
    %137 = vector.broadcast %136 : vector<8x1xf32> to vector<8x8xf32>
    %138 = arith.subf %134, %137 : vector<8x8xf32>
    %139 = math.exp %138 : vector<8x8xf32>
    %cst_76 = arith.constant dense<0.000000e+00> : vector<8xf32>
    %140 = vector.multi_reduction <add>, %139, %cst_76 [1] : vector<8x8xf32> to vector<8xf32>
    %141 = vector.shape_cast %140 : vector<8xf32> to vector<8x1xf32>
    %cst_77 = arith.constant 9.99999971E-10 : f32
    %142 = vector.broadcast %cst_77 : f32 to vector<8x1xf32>
    %143 = arith.addf %141, %142 : vector<8x1xf32>
    %144 = tpu.reciprocal %143 {approx = true} : vector<8x1xf32> -> vector<8x1xf32>
    %145 = vector.broadcast %144 : vector<8x1xf32> to vector<8x8xf32>
    %146 = arith.mulf %139, %145 : vector<8x8xf32>
    %cst_78 = arith.constant dense<0.000000e+00> : vector<8x16xf32>
    %147 = tpu.matmul %146, %129, %cst_78 {dimension_numbers = #tpu.dot_dimension_numbers<[1], [0], [0], [1], [0, 0, 1, 1], [], []>} : vector<8x8xf32>, vector<8x16xf32>, vector<8x16xf32> -> vector<8x16xf32>
    %148 = vector.extract_strided_slice %105 {offsets = [0, 32], sizes = [8, 16], strides = [1, 1]} : vector<8x192xf32> to vector<8x16xf32>
    %149 = vector.extract_strided_slice %105 {offsets = [0, 96], sizes = [8, 16], strides = [1, 1]} : vector<8x192xf32> to vector<8x16xf32>
    %150 = vector.extract_strided_slice %105 {offsets = [0, 160], sizes = [8, 16], strides = [1, 1]} : vector<8x192xf32> to vector<8x16xf32>
    %cst_79 = arith.constant dense<0.000000e+00> : vector<8x8xf32>
    %151 = tpu.matmul %148, %149, %cst_79 {dimension_numbers = #tpu.dot_dimension_numbers<[1], [1], [0], [0], [0, 0, 1, 0], [], []>} : vector<8x16xf32>, vector<8x16xf32>, vector<8x8xf32> -> vector<8x8xf32>
    %cst_80 = arith.constant 2.500000e-01 : f32
    %152 = vector.broadcast %cst_80 : f32 to vector<8x8xf32>
    %153 = arith.mulf %151, %152 : vector<8x8xf32>
    %154 = vector.broadcast %27 : vector<1x8xf32> to vector<8x8xf32>
    %155 = arith.addf %153, %154 : vector<8x8xf32>
    %cst_81 = arith.constant dense<0xFF800000> : vector<8xf32>
    %156 = vector.multi_reduction <maximumf>, %155, %cst_81 [1] : vector<8x8xf32> to vector<8xf32>
    %157 = vector.shape_cast %156 : vector<8xf32> to vector<8x1xf32>
    %158 = vector.broadcast %157 : vector<8x1xf32> to vector<8x8xf32>
    %159 = arith.subf %155, %158 : vector<8x8xf32>
    %160 = math.exp %159 : vector<8x8xf32>
    %cst_82 = arith.constant dense<0.000000e+00> : vector<8xf32>
    %161 = vector.multi_reduction <add>, %160, %cst_82 [1] : vector<8x8xf32> to vector<8xf32>
    %162 = vector.shape_cast %161 : vector<8xf32> to vector<8x1xf32>
    %cst_83 = arith.constant 9.99999971E-10 : f32
    %163 = vector.broadcast %cst_83 : f32 to vector<8x1xf32>
    %164 = arith.addf %162, %163 : vector<8x1xf32>
    %165 = tpu.reciprocal %164 {approx = true} : vector<8x1xf32> -> vector<8x1xf32>
    %166 = vector.broadcast %165 : vector<8x1xf32> to vector<8x8xf32>
    %167 = arith.mulf %160, %166 : vector<8x8xf32>
    %cst_84 = arith.constant dense<0.000000e+00> : vector<8x16xf32>
    %168 = tpu.matmul %167, %150, %cst_84 {dimension_numbers = #tpu.dot_dimension_numbers<[1], [0], [0], [1], [0, 0, 1, 1], [], []>} : vector<8x8xf32>, vector<8x16xf32>, vector<8x16xf32> -> vector<8x16xf32>
    %169 = vector.extract_strided_slice %105 {offsets = [0, 48], sizes = [8, 16], strides = [1, 1]} : vector<8x192xf32> to vector<8x16xf32>
    %170 = vector.extract_strided_slice %105 {offsets = [0, 112], sizes = [8, 16], strides = [1, 1]} : vector<8x192xf32> to vector<8x16xf32>
    %171 = vector.extract_strided_slice %105 {offsets = [0, 176], sizes = [8, 16], strides = [1, 1]} : vector<8x192xf32> to vector<8x16xf32>
    %cst_85 = arith.constant dense<0.000000e+00> : vector<8x8xf32>
    %172 = tpu.matmul %169, %170, %cst_85 {dimension_numbers = #tpu.dot_dimension_numbers<[1], [1], [0], [0], [0, 0, 1, 0], [], []>} : vector<8x16xf32>, vector<8x16xf32>, vector<8x8xf32> -> vector<8x8xf32>
    %cst_86 = arith.constant 2.500000e-01 : f32
    %173 = vector.broadcast %cst_86 : f32 to vector<8x8xf32>
    %174 = arith.mulf %172, %173 : vector<8x8xf32>
    %175 = vector.broadcast %27 : vector<1x8xf32> to vector<8x8xf32>
    %176 = arith.addf %174, %175 : vector<8x8xf32>
    %cst_87 = arith.constant dense<0xFF800000> : vector<8xf32>
    %177 = vector.multi_reduction <maximumf>, %176, %cst_87 [1] : vector<8x8xf32> to vector<8xf32>
    %178 = vector.shape_cast %177 : vector<8xf32> to vector<8x1xf32>
    %179 = vector.broadcast %178 : vector<8x1xf32> to vector<8x8xf32>
    %180 = arith.subf %176, %179 : vector<8x8xf32>
    %181 = math.exp %180 : vector<8x8xf32>
    %cst_88 = arith.constant dense<0.000000e+00> : vector<8xf32>
    %182 = vector.multi_reduction <add>, %181, %cst_88 [1] : vector<8x8xf32> to vector<8xf32>
    %183 = vector.shape_cast %182 : vector<8xf32> to vector<8x1xf32>
    %cst_89 = arith.constant 9.99999971E-10 : f32
    %184 = vector.broadcast %cst_89 : f32 to vector<8x1xf32>
    %185 = arith.addf %183, %184 : vector<8x1xf32>
    %186 = tpu.reciprocal %185 {approx = true} : vector<8x1xf32> -> vector<8x1xf32>
    %187 = vector.broadcast %186 : vector<8x1xf32> to vector<8x8xf32>
    %188 = arith.mulf %181, %187 : vector<8x8xf32>
    %cst_90 = arith.constant dense<0.000000e+00> : vector<8x16xf32>
    %189 = tpu.matmul %188, %171, %cst_90 {dimension_numbers = #tpu.dot_dimension_numbers<[1], [0], [0], [1], [0, 0, 1, 1], [], []>} : vector<8x8xf32>, vector<8x16xf32>, vector<8x16xf32> -> vector<8x16xf32>
    %190 = tpu.concatenate %126, %147, %168, %189 in 1 : vector<8x16xf32>, vector<8x16xf32>, vector<8x16xf32>, vector<8x16xf32> -> vector<8x64xf32>
    %cst_91 = arith.constant dense<0.000000e+00> : vector<8x64xf32>
    %191 = tpu.matmul %190, %101, %cst_91 {dimension_numbers = #tpu.dot_dimension_numbers<[1], [0], [0], [1], [0, 0, 1, 1], [], []>} : vector<8x64xf32>, vector<64x64xf32>, vector<8x64xf32> -> vector<8x64xf32>
    %192 = vector.broadcast %102 : vector<1x64xf32> to vector<8x64xf32>
    %193 = arith.addf %191, %192 : vector<8x64xf32>
    %194 = arith.addf %53, %193 : vector<8x64xf32>
    %c464 = arith.constant 464 : index
    %c0_92 = arith.constant 0 : index
    %195 = vector.load %arg8[%c464, %c0_92] : memref<976x64xf32, #tpu.memory_space<vmem>>, vector<1x64xf32>
    %c472 = arith.constant 472 : index
    %c0_93 = arith.constant 0 : index
    %196 = vector.load %arg8[%c472, %c0_93] : memref<976x64xf32, #tpu.memory_space<vmem>>, vector<1x64xf32>
    %cst_94 = arith.constant dense<0.000000e+00> : vector<8xf32>
    %197 = vector.multi_reduction <add>, %194, %cst_94 [1] : vector<8x64xf32> to vector<8xf32>
    %198 = vector.shape_cast %197 : vector<8xf32> to vector<8x1xf32>
    %cst_95 = arith.constant 6.400000e+01 : f32
    %199 = vector.broadcast %cst_95 : f32 to vector<8x1xf32>
    %200 = arith.divf %198, %199 : vector<8x1xf32>
    %201 = vector.broadcast %200 : vector<8x1xf32> to vector<8x64xf32>
    %202 = arith.subf %194, %201 : vector<8x64xf32>
    %203 = arith.mulf %202, %202 : vector<8x64xf32>
    %cst_96 = arith.constant dense<0.000000e+00> : vector<8xf32>
    %204 = vector.multi_reduction <add>, %203, %cst_96 [1] : vector<8x64xf32> to vector<8xf32>
    %205 = vector.shape_cast %204 : vector<8xf32> to vector<8x1xf32>
    %cst_97 = arith.constant 6.400000e+01 : f32
    %206 = vector.broadcast %cst_97 : f32 to vector<8x1xf32>
    %207 = arith.divf %205, %206 : vector<8x1xf32>
    %cst_98 = arith.constant 9.99999997E-7 : f32
    %208 = vector.broadcast %cst_98 : f32 to vector<8x1xf32>
    %209 = arith.addf %207, %208 : vector<8x1xf32>
    %210 = math.rsqrt %209 : vector<8x1xf32>
    %211 = vector.broadcast %210 : vector<8x1xf32> to vector<8x64xf32>
    %212 = arith.mulf %202, %211 : vector<8x64xf32>
    %213 = vector.broadcast %195 : vector<1x64xf32> to vector<8x64xf32>
    %214 = arith.mulf %212, %213 : vector<8x64xf32>
    %215 = vector.broadcast %196 : vector<1x64xf32> to vector<8x64xf32>
    %216 = arith.addf %214, %215 : vector<8x64xf32>
    %c72_99 = arith.constant 72 : index
    %c0_100 = arith.constant 0 : index
    %217 = vector.load %arg10[%c72_99, %c0_100] : memref<432x192xf32, #tpu.memory_space<vmem>>, vector<64x192xf32>
    %c136 = arith.constant 136 : index
    %c0_101 = arith.constant 0 : index
    %218 = vector.load %arg10[%c136, %c0_101] : memref<432x192xf32, #tpu.memory_space<vmem>>, vector<1x192xf32>
    %c168 = arith.constant 168 : index
    %c0_102 = arith.constant 0 : index
    %219 = vector.load %arg8[%c168, %c0_102] : memref<976x64xf32, #tpu.memory_space<vmem>>, vector<64x64xf32>
    %c232 = arith.constant 232 : index
    %c0_103 = arith.constant 0 : index
    %220 = vector.load %arg8[%c232, %c0_103] : memref<976x64xf32, #tpu.memory_space<vmem>>, vector<1x64xf32>
    %cst_104 = arith.constant dense<0.000000e+00> : vector<8x192xf32>
    %221 = tpu.matmul %216, %217, %cst_104 {dimension_numbers = #tpu.dot_dimension_numbers<[1], [0], [0], [1], [0, 0, 1, 1], [], []>} : vector<8x64xf32>, vector<64x192xf32>, vector<8x192xf32> -> vector<8x192xf32>
    %222 = vector.broadcast %218 : vector<1x192xf32> to vector<8x192xf32>
    %223 = arith.addf %221, %222 : vector<8x192xf32>
    %cst_105 = arith.constant dense<0.000000e+00> : vector<4x192xf32>
    %224 = tpu.matmul %66, %217, %cst_105 {dimension_numbers = #tpu.dot_dimension_numbers<[1], [0], [0], [1], [0, 0, 1, 1], [], []>} : vector<4x64xf32>, vector<64x192xf32>, vector<4x192xf32> -> vector<4x192xf32>
    %225 = vector.broadcast %218 : vector<1x192xf32> to vector<4x192xf32>
    %226 = arith.addf %224, %225 : vector<4x192xf32>
    %227 = vector.extract_strided_slice %223 {offsets = [0, 0], sizes = [8, 16], strides = [1, 1]} : vector<8x192xf32> to vector<8x16xf32>
    %228 = vector.extract_strided_slice %226 {offsets = [0, 64], sizes = [4, 16], strides = [1, 1]} : vector<4x192xf32> to vector<4x16xf32>
    %229 = vector.extract_strided_slice %226 {offsets = [0, 128], sizes = [4, 16], strides = [1, 1]} : vector<4x192xf32> to vector<4x16xf32>
    %cst_106 = arith.constant dense<0.000000e+00> : vector<8x4xf32>
    %230 = tpu.matmul %227, %228, %cst_106 {dimension_numbers = #tpu.dot_dimension_numbers<[1], [1], [0], [0], [0, 0, 1, 0], [], []>} : vector<8x16xf32>, vector<4x16xf32>, vector<8x4xf32> -> vector<8x4xf32>
    %cst_107 = arith.constant 2.500000e-01 : f32
    %231 = vector.broadcast %cst_107 : f32 to vector<8x4xf32>
    %232 = arith.mulf %230, %231 : vector<8x4xf32>
    %233 = vector.broadcast %33 : vector<1x4xf32> to vector<8x4xf32>
    %234 = arith.addf %232, %233 : vector<8x4xf32>
    %cst_108 = arith.constant dense<0xFF800000> : vector<8xf32>
    %235 = vector.multi_reduction <maximumf>, %234, %cst_108 [1] : vector<8x4xf32> to vector<8xf32>
    %236 = vector.shape_cast %235 : vector<8xf32> to vector<8x1xf32>
    %237 = vector.broadcast %236 : vector<8x1xf32> to vector<8x4xf32>
    %238 = arith.subf %234, %237 : vector<8x4xf32>
    %239 = math.exp %238 : vector<8x4xf32>
    %cst_109 = arith.constant dense<0.000000e+00> : vector<8xf32>
    %240 = vector.multi_reduction <add>, %239, %cst_109 [1] : vector<8x4xf32> to vector<8xf32>
    %241 = vector.shape_cast %240 : vector<8xf32> to vector<8x1xf32>
    %cst_110 = arith.constant 9.99999971E-10 : f32
    %242 = vector.broadcast %cst_110 : f32 to vector<8x1xf32>
    %243 = arith.addf %241, %242 : vector<8x1xf32>
    %244 = tpu.reciprocal %243 {approx = true} : vector<8x1xf32> -> vector<8x1xf32>
    %245 = vector.broadcast %244 : vector<8x1xf32> to vector<8x4xf32>
    %246 = arith.mulf %239, %245 : vector<8x4xf32>
    %cst_111 = arith.constant dense<0.000000e+00> : vector<8x16xf32>
    %247 = tpu.matmul %246, %229, %cst_111 {dimension_numbers = #tpu.dot_dimension_numbers<[1], [0], [0], [1], [0, 0, 1, 1], [], []>} : vector<8x4xf32>, vector<4x16xf32>, vector<8x16xf32> -> vector<8x16xf32>
    %248 = vector.extract_strided_slice %223 {offsets = [0, 16], sizes = [8, 16], strides = [1, 1]} : vector<8x192xf32> to vector<8x16xf32>
    %249 = vector.extract_strided_slice %226 {offsets = [0, 80], sizes = [4, 16], strides = [1, 1]} : vector<4x192xf32> to vector<4x16xf32>
    %250 = vector.extract_strided_slice %226 {offsets = [0, 144], sizes = [4, 16], strides = [1, 1]} : vector<4x192xf32> to vector<4x16xf32>
    %cst_112 = arith.constant dense<0.000000e+00> : vector<8x4xf32>
    %251 = tpu.matmul %248, %249, %cst_112 {dimension_numbers = #tpu.dot_dimension_numbers<[1], [1], [0], [0], [0, 0, 1, 0], [], []>} : vector<8x16xf32>, vector<4x16xf32>, vector<8x4xf32> -> vector<8x4xf32>
    %cst_113 = arith.constant 2.500000e-01 : f32
    %252 = vector.broadcast %cst_113 : f32 to vector<8x4xf32>
    %253 = arith.mulf %251, %252 : vector<8x4xf32>
    %254 = vector.broadcast %33 : vector<1x4xf32> to vector<8x4xf32>
    %255 = arith.addf %253, %254 : vector<8x4xf32>
    %cst_114 = arith.constant dense<0xFF800000> : vector<8xf32>
    %256 = vector.multi_reduction <maximumf>, %255, %cst_114 [1] : vector<8x4xf32> to vector<8xf32>
    %257 = vector.shape_cast %256 : vector<8xf32> to vector<8x1xf32>
    %258 = vector.broadcast %257 : vector<8x1xf32> to vector<8x4xf32>
    %259 = arith.subf %255, %258 : vector<8x4xf32>
    %260 = math.exp %259 : vector<8x4xf32>
    %cst_115 = arith.constant dense<0.000000e+00> : vector<8xf32>
    %261 = vector.multi_reduction <add>, %260, %cst_115 [1] : vector<8x4xf32> to vector<8xf32>
    %262 = vector.shape_cast %261 : vector<8xf32> to vector<8x1xf32>
    %cst_116 = arith.constant 9.99999971E-10 : f32
    %263 = vector.broadcast %cst_116 : f32 to vector<8x1xf32>
    %264 = arith.addf %262, %263 : vector<8x1xf32>
    %265 = tpu.reciprocal %264 {approx = true} : vector<8x1xf32> -> vector<8x1xf32>
    %266 = vector.broadcast %265 : vector<8x1xf32> to vector<8x4xf32>
    %267 = arith.mulf %260, %266 : vector<8x4xf32>
    %cst_117 = arith.constant dense<0.000000e+00> : vector<8x16xf32>
    %268 = tpu.matmul %267, %250, %cst_117 {dimension_numbers = #tpu.dot_dimension_numbers<[1], [0], [0], [1], [0, 0, 1, 1], [], []>} : vector<8x4xf32>, vector<4x16xf32>, vector<8x16xf32> -> vector<8x16xf32>
    %269 = vector.extract_strided_slice %223 {offsets = [0, 32], sizes = [8, 16], strides = [1, 1]} : vector<8x192xf32> to vector<8x16xf32>
    %270 = vector.extract_strided_slice %226 {offsets = [0, 96], sizes = [4, 16], strides = [1, 1]} : vector<4x192xf32> to vector<4x16xf32>
    %271 = vector.extract_strided_slice %226 {offsets = [0, 160], sizes = [4, 16], strides = [1, 1]} : vector<4x192xf32> to vector<4x16xf32>
    %cst_118 = arith.constant dense<0.000000e+00> : vector<8x4xf32>
    %272 = tpu.matmul %269, %270, %cst_118 {dimension_numbers = #tpu.dot_dimension_numbers<[1], [1], [0], [0], [0, 0, 1, 0], [], []>} : vector<8x16xf32>, vector<4x16xf32>, vector<8x4xf32> -> vector<8x4xf32>
    %cst_119 = arith.constant 2.500000e-01 : f32
    %273 = vector.broadcast %cst_119 : f32 to vector<8x4xf32>
    %274 = arith.mulf %272, %273 : vector<8x4xf32>
    %275 = vector.broadcast %33 : vector<1x4xf32> to vector<8x4xf32>
    %276 = arith.addf %274, %275 : vector<8x4xf32>
    %cst_120 = arith.constant dense<0xFF800000> : vector<8xf32>
    %277 = vector.multi_reduction <maximumf>, %276, %cst_120 [1] : vector<8x4xf32> to vector<8xf32>
    %278 = vector.shape_cast %277 : vector<8xf32> to vector<8x1xf32>
    %279 = vector.broadcast %278 : vector<8x1xf32> to vector<8x4xf32>
    %280 = arith.subf %276, %279 : vector<8x4xf32>
    %281 = math.exp %280 : vector<8x4xf32>
    %cst_121 = arith.constant dense<0.000000e+00> : vector<8xf32>
    %282 = vector.multi_reduction <add>, %281, %cst_121 [1] : vector<8x4xf32> to vector<8xf32>
    %283 = vector.shape_cast %282 : vector<8xf32> to vector<8x1xf32>
    %cst_122 = arith.constant 9.99999971E-10 : f32
    %284 = vector.broadcast %cst_122 : f32 to vector<8x1xf32>
    %285 = arith.addf %283, %284 : vector<8x1xf32>
    %286 = tpu.reciprocal %285 {approx = true} : vector<8x1xf32> -> vector<8x1xf32>
    %287 = vector.broadcast %286 : vector<8x1xf32> to vector<8x4xf32>
    %288 = arith.mulf %281, %287 : vector<8x4xf32>
    %cst_123 = arith.constant dense<0.000000e+00> : vector<8x16xf32>
    %289 = tpu.matmul %288, %271, %cst_123 {dimension_numbers = #tpu.dot_dimension_numbers<[1], [0], [0], [1], [0, 0, 1, 1], [], []>} : vector<8x4xf32>, vector<4x16xf32>, vector<8x16xf32> -> vector<8x16xf32>
    %290 = vector.extract_strided_slice %223 {offsets = [0, 48], sizes = [8, 16], strides = [1, 1]} : vector<8x192xf32> to vector<8x16xf32>
    %291 = vector.extract_strided_slice %226 {offsets = [0, 112], sizes = [4, 16], strides = [1, 1]} : vector<4x192xf32> to vector<4x16xf32>
    %292 = vector.extract_strided_slice %226 {offsets = [0, 176], sizes = [4, 16], strides = [1, 1]} : vector<4x192xf32> to vector<4x16xf32>
    %cst_124 = arith.constant dense<0.000000e+00> : vector<8x4xf32>
    %293 = tpu.matmul %290, %291, %cst_124 {dimension_numbers = #tpu.dot_dimension_numbers<[1], [1], [0], [0], [0, 0, 1, 0], [], []>} : vector<8x16xf32>, vector<4x16xf32>, vector<8x4xf32> -> vector<8x4xf32>
    %cst_125 = arith.constant 2.500000e-01 : f32
    %294 = vector.broadcast %cst_125 : f32 to vector<8x4xf32>
    %295 = arith.mulf %293, %294 : vector<8x4xf32>
    %296 = vector.broadcast %33 : vector<1x4xf32> to vector<8x4xf32>
    %297 = arith.addf %295, %296 : vector<8x4xf32>
    %cst_126 = arith.constant dense<0xFF800000> : vector<8xf32>
    %298 = vector.multi_reduction <maximumf>, %297, %cst_126 [1] : vector<8x4xf32> to vector<8xf32>
    %299 = vector.shape_cast %298 : vector<8xf32> to vector<8x1xf32>
    %300 = vector.broadcast %299 : vector<8x1xf32> to vector<8x4xf32>
    %301 = arith.subf %297, %300 : vector<8x4xf32>
    %302 = math.exp %301 : vector<8x4xf32>
    %cst_127 = arith.constant dense<0.000000e+00> : vector<8xf32>
    %303 = vector.multi_reduction <add>, %302, %cst_127 [1] : vector<8x4xf32> to vector<8xf32>
    %304 = vector.shape_cast %303 : vector<8xf32> to vector<8x1xf32>
    %cst_128 = arith.constant 9.99999971E-10 : f32
    %305 = vector.broadcast %cst_128 : f32 to vector<8x1xf32>
    %306 = arith.addf %304, %305 : vector<8x1xf32>
    %307 = tpu.reciprocal %306 {approx = true} : vector<8x1xf32> -> vector<8x1xf32>
    %308 = vector.broadcast %307 : vector<8x1xf32> to vector<8x4xf32>
    %309 = arith.mulf %302, %308 : vector<8x4xf32>
    %cst_129 = arith.constant dense<0.000000e+00> : vector<8x16xf32>
    %310 = tpu.matmul %309, %292, %cst_129 {dimension_numbers = #tpu.dot_dimension_numbers<[1], [0], [0], [1], [0, 0, 1, 1], [], []>} : vector<8x4xf32>, vector<4x16xf32>, vector<8x16xf32> -> vector<8x16xf32>
    %311 = tpu.concatenate %247, %268, %289, %310 in 1 : vector<8x16xf32>, vector<8x16xf32>, vector<8x16xf32>, vector<8x16xf32> -> vector<8x64xf32>
    %cst_130 = arith.constant dense<0.000000e+00> : vector<8x64xf32>
    %312 = tpu.matmul %311, %219, %cst_130 {dimension_numbers = #tpu.dot_dimension_numbers<[1], [0], [0], [1], [0, 0, 1, 1], [], []>} : vector<8x64xf32>, vector<64x64xf32>, vector<8x64xf32> -> vector<8x64xf32>
    %313 = vector.broadcast %220 : vector<1x64xf32> to vector<8x64xf32>
    %314 = arith.addf %312, %313 : vector<8x64xf32>
    %315 = arith.addf %194, %314 : vector<8x64xf32>
    %c480 = arith.constant 480 : index
    %c0_131 = arith.constant 0 : index
    %316 = vector.load %arg8[%c480, %c0_131] : memref<976x64xf32, #tpu.memory_space<vmem>>, vector<1x64xf32>
    %c488 = arith.constant 488 : index
    %c0_132 = arith.constant 0 : index
    %317 = vector.load %arg8[%c488, %c0_132] : memref<976x64xf32, #tpu.memory_space<vmem>>, vector<1x64xf32>
    %cst_133 = arith.constant dense<0.000000e+00> : vector<8xf32>
    %318 = vector.multi_reduction <add>, %315, %cst_133 [1] : vector<8x64xf32> to vector<8xf32>
    %319 = vector.shape_cast %318 : vector<8xf32> to vector<8x1xf32>
    %cst_134 = arith.constant 6.400000e+01 : f32
    %320 = vector.broadcast %cst_134 : f32 to vector<8x1xf32>
    %321 = arith.divf %319, %320 : vector<8x1xf32>
    %322 = vector.broadcast %321 : vector<8x1xf32> to vector<8x64xf32>
    %323 = arith.subf %315, %322 : vector<8x64xf32>
    %324 = arith.mulf %323, %323 : vector<8x64xf32>
    %cst_135 = arith.constant dense<0.000000e+00> : vector<8xf32>
    %325 = vector.multi_reduction <add>, %324, %cst_135 [1] : vector<8x64xf32> to vector<8xf32>
    %326 = vector.shape_cast %325 : vector<8xf32> to vector<8x1xf32>
    %cst_136 = arith.constant 6.400000e+01 : f32
    %327 = vector.broadcast %cst_136 : f32 to vector<8x1xf32>
    %328 = arith.divf %326, %327 : vector<8x1xf32>
    %cst_137 = arith.constant 9.99999997E-7 : f32
    %329 = vector.broadcast %cst_137 : f32 to vector<8x1xf32>
    %330 = arith.addf %328, %329 : vector<8x1xf32>
    %331 = math.rsqrt %330 : vector<8x1xf32>
    %332 = vector.broadcast %331 : vector<8x1xf32> to vector<8x64xf32>
    %333 = arith.mulf %323, %332 : vector<8x64xf32>
    %334 = vector.broadcast %316 : vector<1x64xf32> to vector<8x64xf32>
    %335 = arith.mulf %333, %334 : vector<8x64xf32>
    %336 = vector.broadcast %317 : vector<1x64xf32> to vector<8x64xf32>
    %337 = arith.addf %335, %336 : vector<8x64xf32>
    %c144 = arith.constant 144 : index
    %c0_138 = arith.constant 0 : index
    %338 = vector.load %arg10[%c144, %c0_138] : memref<432x192xf32, #tpu.memory_space<vmem>>, vector<64x192xf32>
    %c208 = arith.constant 208 : index
    %c0_139 = arith.constant 0 : index
    %339 = vector.load %arg10[%c208, %c0_139] : memref<432x192xf32, #tpu.memory_space<vmem>>, vector<1x192xf32>
    %c240 = arith.constant 240 : index
    %c0_140 = arith.constant 0 : index
    %340 = vector.load %arg8[%c240, %c0_140] : memref<976x64xf32, #tpu.memory_space<vmem>>, vector<64x64xf32>
    %c304 = arith.constant 304 : index
    %c0_141 = arith.constant 0 : index
    %341 = vector.load %arg8[%c304, %c0_141] : memref<976x64xf32, #tpu.memory_space<vmem>>, vector<1x64xf32>
    %cst_142 = arith.constant dense<0.000000e+00> : vector<8x192xf32>
    %342 = tpu.matmul %337, %338, %cst_142 {dimension_numbers = #tpu.dot_dimension_numbers<[1], [0], [0], [1], [0, 0, 1, 1], [], []>} : vector<8x64xf32>, vector<64x192xf32>, vector<8x192xf32> -> vector<8x192xf32>
    %343 = vector.broadcast %339 : vector<1x192xf32> to vector<8x192xf32>
    %344 = arith.addf %342, %343 : vector<8x192xf32>
    %cst_143 = arith.constant dense<0.000000e+00> : vector<4x192xf32>
    %345 = tpu.matmul %76, %338, %cst_143 {dimension_numbers = #tpu.dot_dimension_numbers<[1], [0], [0], [1], [0, 0, 1, 1], [], []>} : vector<4x64xf32>, vector<64x192xf32>, vector<4x192xf32> -> vector<4x192xf32>
    %346 = vector.broadcast %339 : vector<1x192xf32> to vector<4x192xf32>
    %347 = arith.addf %345, %346 : vector<4x192xf32>
    %348 = vector.extract_strided_slice %344 {offsets = [0, 0], sizes = [8, 16], strides = [1, 1]} : vector<8x192xf32> to vector<8x16xf32>
    %349 = vector.extract_strided_slice %347 {offsets = [0, 64], sizes = [4, 16], strides = [1, 1]} : vector<4x192xf32> to vector<4x16xf32>
    %350 = vector.extract_strided_slice %347 {offsets = [0, 128], sizes = [4, 16], strides = [1, 1]} : vector<4x192xf32> to vector<4x16xf32>
    %cst_144 = arith.constant dense<0.000000e+00> : vector<8x4xf32>
    %351 = tpu.matmul %348, %349, %cst_144 {dimension_numbers = #tpu.dot_dimension_numbers<[1], [1], [0], [0], [0, 0, 1, 0], [], []>} : vector<8x16xf32>, vector<4x16xf32>, vector<8x4xf32> -> vector<8x4xf32>
    %cst_145 = arith.constant 2.500000e-01 : f32
    %352 = vector.broadcast %cst_145 : f32 to vector<8x4xf32>
    %353 = arith.mulf %351, %352 : vector<8x4xf32>
    %354 = vector.broadcast %39 : vector<1x4xf32> to vector<8x4xf32>
    %355 = arith.addf %353, %354 : vector<8x4xf32>
    %cst_146 = arith.constant dense<0xFF800000> : vector<8xf32>
    %356 = vector.multi_reduction <maximumf>, %355, %cst_146 [1] : vector<8x4xf32> to vector<8xf32>
    %357 = vector.shape_cast %356 : vector<8xf32> to vector<8x1xf32>
    %358 = vector.broadcast %357 : vector<8x1xf32> to vector<8x4xf32>
    %359 = arith.subf %355, %358 : vector<8x4xf32>
    %360 = math.exp %359 : vector<8x4xf32>
    %cst_147 = arith.constant dense<0.000000e+00> : vector<8xf32>
    %361 = vector.multi_reduction <add>, %360, %cst_147 [1] : vector<8x4xf32> to vector<8xf32>
    %362 = vector.shape_cast %361 : vector<8xf32> to vector<8x1xf32>
    %cst_148 = arith.constant 9.99999971E-10 : f32
    %363 = vector.broadcast %cst_148 : f32 to vector<8x1xf32>
    %364 = arith.addf %362, %363 : vector<8x1xf32>
    %365 = tpu.reciprocal %364 {approx = true} : vector<8x1xf32> -> vector<8x1xf32>
    %366 = vector.broadcast %365 : vector<8x1xf32> to vector<8x4xf32>
    %367 = arith.mulf %360, %366 : vector<8x4xf32>
    %cst_149 = arith.constant dense<0.000000e+00> : vector<8x16xf32>
    %368 = tpu.matmul %367, %350, %cst_149 {dimension_numbers = #tpu.dot_dimension_numbers<[1], [0], [0], [1], [0, 0, 1, 1], [], []>} : vector<8x4xf32>, vector<4x16xf32>, vector<8x16xf32> -> vector<8x16xf32>
    %369 = vector.extract_strided_slice %344 {offsets = [0, 16], sizes = [8, 16], strides = [1, 1]} : vector<8x192xf32> to vector<8x16xf32>
    %370 = vector.extract_strided_slice %347 {offsets = [0, 80], sizes = [4, 16], strides = [1, 1]} : vector<4x192xf32> to vector<4x16xf32>
    %371 = vector.extract_strided_slice %347 {offsets = [0, 144], sizes = [4, 16], strides = [1, 1]} : vector<4x192xf32> to vector<4x16xf32>
    %cst_150 = arith.constant dense<0.000000e+00> : vector<8x4xf32>
    %372 = tpu.matmul %369, %370, %cst_150 {dimension_numbers = #tpu.dot_dimension_numbers<[1], [1], [0], [0], [0, 0, 1, 0], [], []>} : vector<8x16xf32>, vector<4x16xf32>, vector<8x4xf32> -> vector<8x4xf32>
    %cst_151 = arith.constant 2.500000e-01 : f32
    %373 = vector.broadcast %cst_151 : f32 to vector<8x4xf32>
    %374 = arith.mulf %372, %373 : vector<8x4xf32>
    %375 = vector.broadcast %39 : vector<1x4xf32> to vector<8x4xf32>
    %376 = arith.addf %374, %375 : vector<8x4xf32>
    %cst_152 = arith.constant dense<0xFF800000> : vector<8xf32>
    %377 = vector.multi_reduction <maximumf>, %376, %cst_152 [1] : vector<8x4xf32> to vector<8xf32>
    %378 = vector.shape_cast %377 : vector<8xf32> to vector<8x1xf32>
    %379 = vector.broadcast %378 : vector<8x1xf32> to vector<8x4xf32>
    %380 = arith.subf %376, %379 : vector<8x4xf32>
    %381 = math.exp %380 : vector<8x4xf32>
    %cst_153 = arith.constant dense<0.000000e+00> : vector<8xf32>
    %382 = vector.multi_reduction <add>, %381, %cst_153 [1] : vector<8x4xf32> to vector<8xf32>
    %383 = vector.shape_cast %382 : vector<8xf32> to vector<8x1xf32>
    %cst_154 = arith.constant 9.99999971E-10 : f32
    %384 = vector.broadcast %cst_154 : f32 to vector<8x1xf32>
    %385 = arith.addf %383, %384 : vector<8x1xf32>
    %386 = tpu.reciprocal %385 {approx = true} : vector<8x1xf32> -> vector<8x1xf32>
    %387 = vector.broadcast %386 : vector<8x1xf32> to vector<8x4xf32>
    %388 = arith.mulf %381, %387 : vector<8x4xf32>
    %cst_155 = arith.constant dense<0.000000e+00> : vector<8x16xf32>
    %389 = tpu.matmul %388, %371, %cst_155 {dimension_numbers = #tpu.dot_dimension_numbers<[1], [0], [0], [1], [0, 0, 1, 1], [], []>} : vector<8x4xf32>, vector<4x16xf32>, vector<8x16xf32> -> vector<8x16xf32>
    %390 = vector.extract_strided_slice %344 {offsets = [0, 32], sizes = [8, 16], strides = [1, 1]} : vector<8x192xf32> to vector<8x16xf32>
    %391 = vector.extract_strided_slice %347 {offsets = [0, 96], sizes = [4, 16], strides = [1, 1]} : vector<4x192xf32> to vector<4x16xf32>
    %392 = vector.extract_strided_slice %347 {offsets = [0, 160], sizes = [4, 16], strides = [1, 1]} : vector<4x192xf32> to vector<4x16xf32>
    %cst_156 = arith.constant dense<0.000000e+00> : vector<8x4xf32>
    %393 = tpu.matmul %390, %391, %cst_156 {dimension_numbers = #tpu.dot_dimension_numbers<[1], [1], [0], [0], [0, 0, 1, 0], [], []>} : vector<8x16xf32>, vector<4x16xf32>, vector<8x4xf32> -> vector<8x4xf32>
    %cst_157 = arith.constant 2.500000e-01 : f32
    %394 = vector.broadcast %cst_157 : f32 to vector<8x4xf32>
    %395 = arith.mulf %393, %394 : vector<8x4xf32>
    %396 = vector.broadcast %39 : vector<1x4xf32> to vector<8x4xf32>
    %397 = arith.addf %395, %396 : vector<8x4xf32>
    %cst_158 = arith.constant dense<0xFF800000> : vector<8xf32>
    %398 = vector.multi_reduction <maximumf>, %397, %cst_158 [1] : vector<8x4xf32> to vector<8xf32>
    %399 = vector.shape_cast %398 : vector<8xf32> to vector<8x1xf32>
    %400 = vector.broadcast %399 : vector<8x1xf32> to vector<8x4xf32>
    %401 = arith.subf %397, %400 : vector<8x4xf32>
    %402 = math.exp %401 : vector<8x4xf32>
    %cst_159 = arith.constant dense<0.000000e+00> : vector<8xf32>
    %403 = vector.multi_reduction <add>, %402, %cst_159 [1] : vector<8x4xf32> to vector<8xf32>
    %404 = vector.shape_cast %403 : vector<8xf32> to vector<8x1xf32>
    %cst_160 = arith.constant 9.99999971E-10 : f32
    %405 = vector.broadcast %cst_160 : f32 to vector<8x1xf32>
    %406 = arith.addf %404, %405 : vector<8x1xf32>
    %407 = tpu.reciprocal %406 {approx = true} : vector<8x1xf32> -> vector<8x1xf32>
    %408 = vector.broadcast %407 : vector<8x1xf32> to vector<8x4xf32>
    %409 = arith.mulf %402, %408 : vector<8x4xf32>
    %cst_161 = arith.constant dense<0.000000e+00> : vector<8x16xf32>
    %410 = tpu.matmul %409, %392, %cst_161 {dimension_numbers = #tpu.dot_dimension_numbers<[1], [0], [0], [1], [0, 0, 1, 1], [], []>} : vector<8x4xf32>, vector<4x16xf32>, vector<8x16xf32> -> vector<8x16xf32>
    %411 = vector.extract_strided_slice %344 {offsets = [0, 48], sizes = [8, 16], strides = [1, 1]} : vector<8x192xf32> to vector<8x16xf32>
    %412 = vector.extract_strided_slice %347 {offsets = [0, 112], sizes = [4, 16], strides = [1, 1]} : vector<4x192xf32> to vector<4x16xf32>
    %413 = vector.extract_strided_slice %347 {offsets = [0, 176], sizes = [4, 16], strides = [1, 1]} : vector<4x192xf32> to vector<4x16xf32>
    %cst_162 = arith.constant dense<0.000000e+00> : vector<8x4xf32>
    %414 = tpu.matmul %411, %412, %cst_162 {dimension_numbers = #tpu.dot_dimension_numbers<[1], [1], [0], [0], [0, 0, 1, 0], [], []>} : vector<8x16xf32>, vector<4x16xf32>, vector<8x4xf32> -> vector<8x4xf32>
    %cst_163 = arith.constant 2.500000e-01 : f32
    %415 = vector.broadcast %cst_163 : f32 to vector<8x4xf32>
    %416 = arith.mulf %414, %415 : vector<8x4xf32>
    %417 = vector.broadcast %39 : vector<1x4xf32> to vector<8x4xf32>
    %418 = arith.addf %416, %417 : vector<8x4xf32>
    %cst_164 = arith.constant dense<0xFF800000> : vector<8xf32>
    %419 = vector.multi_reduction <maximumf>, %418, %cst_164 [1] : vector<8x4xf32> to vector<8xf32>
    %420 = vector.shape_cast %419 : vector<8xf32> to vector<8x1xf32>
    %421 = vector.broadcast %420 : vector<8x1xf32> to vector<8x4xf32>
    %422 = arith.subf %418, %421 : vector<8x4xf32>
    %423 = math.exp %422 : vector<8x4xf32>
    %cst_165 = arith.constant dense<0.000000e+00> : vector<8xf32>
    %424 = vector.multi_reduction <add>, %423, %cst_165 [1] : vector<8x4xf32> to vector<8xf32>
    %425 = vector.shape_cast %424 : vector<8xf32> to vector<8x1xf32>
    %cst_166 = arith.constant 9.99999971E-10 : f32
    %426 = vector.broadcast %cst_166 : f32 to vector<8x1xf32>
    %427 = arith.addf %425, %426 : vector<8x1xf32>
    %428 = tpu.reciprocal %427 {approx = true} : vector<8x1xf32> -> vector<8x1xf32>
    %429 = vector.broadcast %428 : vector<8x1xf32> to vector<8x4xf32>
    %430 = arith.mulf %423, %429 : vector<8x4xf32>
    %cst_167 = arith.constant dense<0.000000e+00> : vector<8x16xf32>
    %431 = tpu.matmul %430, %413, %cst_167 {dimension_numbers = #tpu.dot_dimension_numbers<[1], [0], [0], [1], [0, 0, 1, 1], [], []>} : vector<8x4xf32>, vector<4x16xf32>, vector<8x16xf32> -> vector<8x16xf32>
    %432 = tpu.concatenate %368, %389, %410, %431 in 1 : vector<8x16xf32>, vector<8x16xf32>, vector<8x16xf32>, vector<8x16xf32> -> vector<8x64xf32>
    %cst_168 = arith.constant dense<0.000000e+00> : vector<8x64xf32>
    %433 = tpu.matmul %432, %340, %cst_168 {dimension_numbers = #tpu.dot_dimension_numbers<[1], [0], [0], [1], [0, 0, 1, 1], [], []>} : vector<8x64xf32>, vector<64x64xf32>, vector<8x64xf32> -> vector<8x64xf32>
    %434 = vector.broadcast %341 : vector<1x64xf32> to vector<8x64xf32>
    %435 = arith.addf %433, %434 : vector<8x64xf32>
    %436 = arith.addf %315, %435 : vector<8x64xf32>
    %c496 = arith.constant 496 : index
    %c0_169 = arith.constant 0 : index
    %437 = vector.load %arg8[%c496, %c0_169] : memref<976x64xf32, #tpu.memory_space<vmem>>, vector<1x64xf32>
    %c504 = arith.constant 504 : index
    %c0_170 = arith.constant 0 : index
    %438 = vector.load %arg8[%c504, %c0_170] : memref<976x64xf32, #tpu.memory_space<vmem>>, vector<1x64xf32>
    %cst_171 = arith.constant dense<0.000000e+00> : vector<8xf32>
    %439 = vector.multi_reduction <add>, %436, %cst_171 [1] : vector<8x64xf32> to vector<8xf32>
    %440 = vector.shape_cast %439 : vector<8xf32> to vector<8x1xf32>
    %cst_172 = arith.constant 6.400000e+01 : f32
    %441 = vector.broadcast %cst_172 : f32 to vector<8x1xf32>
    %442 = arith.divf %440, %441 : vector<8x1xf32>
    %443 = vector.broadcast %442 : vector<8x1xf32> to vector<8x64xf32>
    %444 = arith.subf %436, %443 : vector<8x64xf32>
    %445 = arith.mulf %444, %444 : vector<8x64xf32>
    %cst_173 = arith.constant dense<0.000000e+00> : vector<8xf32>
    %446 = vector.multi_reduction <add>, %445, %cst_173 [1] : vector<8x64xf32> to vector<8xf32>
    %447 = vector.shape_cast %446 : vector<8xf32> to vector<8x1xf32>
    %cst_174 = arith.constant 6.400000e+01 : f32
    %448 = vector.broadcast %cst_174 : f32 to vector<8x1xf32>
    %449 = arith.divf %447, %448 : vector<8x1xf32>
    %cst_175 = arith.constant 9.99999997E-7 : f32
    %450 = vector.broadcast %cst_175 : f32 to vector<8x1xf32>
    %451 = arith.addf %449, %450 : vector<8x1xf32>
    %452 = math.rsqrt %451 : vector<8x1xf32>
    %453 = vector.broadcast %452 : vector<8x1xf32> to vector<8x64xf32>
    %454 = arith.mulf %444, %453 : vector<8x64xf32>
    %455 = vector.broadcast %437 : vector<1x64xf32> to vector<8x64xf32>
    %456 = arith.mulf %454, %455 : vector<8x64xf32>
    %457 = vector.broadcast %438 : vector<1x64xf32> to vector<8x64xf32>
    %458 = arith.addf %456, %457 : vector<8x64xf32>
    %c72_176 = arith.constant 72 : index
    %c0_177 = arith.constant 0 : index
    %459 = vector.load %arg9[%c72_176, %c0_177] : memref<216x128xf32, #tpu.memory_space<vmem>>, vector<64x128xf32>
    %c136_178 = arith.constant 136 : index
    %c0_179 = arith.constant 0 : index
    %460 = vector.load %arg9[%c136_178, %c0_179] : memref<216x128xf32, #tpu.memory_space<vmem>>, vector<1x128xf32>
    %c312 = arith.constant 312 : index
    %c0_180 = arith.constant 0 : index
    %461 = vector.load %arg8[%c312, %c0_180] : memref<976x64xf32, #tpu.memory_space<vmem>>, vector<128x64xf32>
    %c440 = arith.constant 440 : index
    %c0_181 = arith.constant 0 : index
    %462 = vector.load %arg8[%c440, %c0_181] : memref<976x64xf32, #tpu.memory_space<vmem>>, vector<1x64xf32>
    %cst_182 = arith.constant dense<0.000000e+00> : vector<8x128xf32>
    %463 = tpu.matmul %458, %459, %cst_182 {dimension_numbers = #tpu.dot_dimension_numbers<[1], [0], [0], [1], [0, 0, 1, 1], [], []>} : vector<8x64xf32>, vector<64x128xf32>, vector<8x128xf32> -> vector<8x128xf32>
    %464 = vector.broadcast %460 : vector<1x128xf32> to vector<8x128xf32>
    %465 = arith.addf %463, %464 : vector<8x128xf32>
    %cst_183 = arith.constant 0.000000e+00 : f32
    %466 = vector.broadcast %cst_183 : f32 to vector<8x128xf32>
    %467 = arith.maximumf %465, %466 : vector<8x128xf32>
    %cst_184 = arith.constant dense<0.000000e+00> : vector<8x64xf32>
    %468 = tpu.matmul %467, %461, %cst_184 {dimension_numbers = #tpu.dot_dimension_numbers<[1], [0], [0], [1], [0, 0, 1, 1], [], []>} : vector<8x128xf32>, vector<128x64xf32>, vector<8x64xf32> -> vector<8x64xf32>
    %469 = vector.broadcast %462 : vector<1x64xf32> to vector<8x64xf32>
    %470 = arith.addf %468, %469 : vector<8x64xf32>
    %471 = arith.addf %436, %470 : vector<8x64xf32>
    %c512 = arith.constant 512 : index
    %c0_185 = arith.constant 0 : index
    %472 = vector.load %arg8[%c512, %c0_185] : memref<976x64xf32, #tpu.memory_space<vmem>>, vector<1x64xf32>
    %c520 = arith.constant 520 : index
    %c0_186 = arith.constant 0 : index
    %473 = vector.load %arg8[%c520, %c0_186] : memref<976x64xf32, #tpu.memory_space<vmem>>, vector<1x64xf32>
    %cst_187 = arith.constant dense<0.000000e+00> : vector<8xf32>
    %474 = vector.multi_reduction <add>, %471, %cst_187 [1] : vector<8x64xf32> to vector<8xf32>
    %475 = vector.shape_cast %474 : vector<8xf32> to vector<8x1xf32>
    %cst_188 = arith.constant 6.400000e+01 : f32
    %476 = vector.broadcast %cst_188 : f32 to vector<8x1xf32>
    %477 = arith.divf %475, %476 : vector<8x1xf32>
    %478 = vector.broadcast %477 : vector<8x1xf32> to vector<8x64xf32>
    %479 = arith.subf %471, %478 : vector<8x64xf32>
    %480 = arith.mulf %479, %479 : vector<8x64xf32>
    %cst_189 = arith.constant dense<0.000000e+00> : vector<8xf32>
    %481 = vector.multi_reduction <add>, %480, %cst_189 [1] : vector<8x64xf32> to vector<8xf32>
    %482 = vector.shape_cast %481 : vector<8xf32> to vector<8x1xf32>
    %cst_190 = arith.constant 6.400000e+01 : f32
    %483 = vector.broadcast %cst_190 : f32 to vector<8x1xf32>
    %484 = arith.divf %482, %483 : vector<8x1xf32>
    %cst_191 = arith.constant 9.99999997E-7 : f32
    %485 = vector.broadcast %cst_191 : f32 to vector<8x1xf32>
    %486 = arith.addf %484, %485 : vector<8x1xf32>
    %487 = math.rsqrt %486 : vector<8x1xf32>
    %488 = vector.broadcast %487 : vector<8x1xf32> to vector<8x64xf32>
    %489 = arith.mulf %479, %488 : vector<8x64xf32>
    %490 = vector.broadcast %472 : vector<1x64xf32> to vector<8x64xf32>
    %491 = arith.mulf %489, %490 : vector<8x64xf32>
    %492 = vector.broadcast %473 : vector<1x64xf32> to vector<8x64xf32>
    %493 = arith.addf %491, %492 : vector<8x64xf32>
    %c880 = arith.constant 880 : index
    %c0_192 = arith.constant 0 : index
    %494 = vector.load %arg8[%c880, %c0_192] : memref<976x64xf32, #tpu.memory_space<vmem>>, vector<1x64xf32>
    %c888 = arith.constant 888 : index
    %c0_193 = arith.constant 0 : index
    %495 = vector.load %arg8[%c888, %c0_193] : memref<976x64xf32, #tpu.memory_space<vmem>>, vector<1x64xf32>
    %cst_194 = arith.constant dense<0.000000e+00> : vector<6xf32>
    %496 = vector.multi_reduction <add>, %61, %cst_194 [1] : vector<6x64xf32> to vector<6xf32>
    %497 = vector.shape_cast %496 : vector<6xf32> to vector<6x1xf32>
    %cst_195 = arith.constant 6.400000e+01 : f32
    %498 = vector.broadcast %cst_195 : f32 to vector<6x1xf32>
    %499 = arith.divf %497, %498 : vector<6x1xf32>
    %500 = vector.broadcast %499 : vector<6x1xf32> to vector<6x64xf32>
    %501 = arith.subf %61, %500 : vector<6x64xf32>
    %502 = arith.mulf %501, %501 : vector<6x64xf32>
    %cst_196 = arith.constant dense<0.000000e+00> : vector<6xf32>
    %503 = vector.multi_reduction <add>, %502, %cst_196 [1] : vector<6x64xf32> to vector<6xf32>
    %504 = vector.shape_cast %503 : vector<6xf32> to vector<6x1xf32>
    %cst_197 = arith.constant 6.400000e+01 : f32
    %505 = vector.broadcast %cst_197 : f32 to vector<6x1xf32>
    %506 = arith.divf %504, %505 : vector<6x1xf32>
    %cst_198 = arith.constant 9.99999997E-7 : f32
    %507 = vector.broadcast %cst_198 : f32 to vector<6x1xf32>
    %508 = arith.addf %506, %507 : vector<6x1xf32>
    %509 = math.rsqrt %508 : vector<6x1xf32>
    %510 = vector.broadcast %509 : vector<6x1xf32> to vector<6x64xf32>
    %511 = arith.mulf %501, %510 : vector<6x64xf32>
    %512 = vector.broadcast %494 : vector<1x64xf32> to vector<6x64xf32>
    %513 = arith.mulf %511, %512 : vector<6x64xf32>
    %514 = vector.broadcast %495 : vector<1x64xf32> to vector<6x64xf32>
    %515 = arith.addf %513, %514 : vector<6x64xf32>
    %c216 = arith.constant 216 : index
    %c0_199 = arith.constant 0 : index
    %516 = vector.load %arg10[%c216, %c0_199] : memref<432x192xf32, #tpu.memory_space<vmem>>, vector<64x192xf32>
    %c280 = arith.constant 280 : index
    %c0_200 = arith.constant 0 : index
    %517 = vector.load %arg10[%c280, %c0_200] : memref<432x192xf32, #tpu.memory_space<vmem>>, vector<1x192xf32>
    %c528 = arith.constant 528 : index
    %c0_201 = arith.constant 0 : index
    %518 = vector.load %arg8[%c528, %c0_201] : memref<976x64xf32, #tpu.memory_space<vmem>>, vector<64x64xf32>
    %c592 = arith.constant 592 : index
    %c0_202 = arith.constant 0 : index
    %519 = vector.load %arg8[%c592, %c0_202] : memref<976x64xf32, #tpu.memory_space<vmem>>, vector<1x64xf32>
    %cst_203 = arith.constant dense<0.000000e+00> : vector<6x192xf32>
    %520 = tpu.matmul %515, %516, %cst_203 {dimension_numbers = #tpu.dot_dimension_numbers<[1], [0], [0], [1], [0, 0, 1, 1], [], []>} : vector<6x64xf32>, vector<64x192xf32>, vector<6x192xf32> -> vector<6x192xf32>
    %521 = vector.broadcast %517 : vector<1x192xf32> to vector<6x192xf32>
    %522 = arith.addf %520, %521 : vector<6x192xf32>
    %523 = vector.extract_strided_slice %522 {offsets = [0, 0], sizes = [6, 16], strides = [1, 1]} : vector<6x192xf32> to vector<6x16xf32>
    %524 = vector.extract_strided_slice %522 {offsets = [0, 64], sizes = [6, 16], strides = [1, 1]} : vector<6x192xf32> to vector<6x16xf32>
    %525 = vector.extract_strided_slice %522 {offsets = [0, 128], sizes = [6, 16], strides = [1, 1]} : vector<6x192xf32> to vector<6x16xf32>
    %cst_204 = arith.constant dense<0.000000e+00> : vector<6x6xf32>
    %526 = tpu.matmul %523, %524, %cst_204 {dimension_numbers = #tpu.dot_dimension_numbers<[1], [1], [0], [0], [0, 0, 1, 0], [], []>} : vector<6x16xf32>, vector<6x16xf32>, vector<6x6xf32> -> vector<6x6xf32>
    %cst_205 = arith.constant 2.500000e-01 : f32
    %527 = vector.broadcast %cst_205 : f32 to vector<6x6xf32>
    %528 = arith.mulf %526, %527 : vector<6x6xf32>
    %529 = arith.addf %528, %5 : vector<6x6xf32>
    %cst_206 = arith.constant dense<0xFF800000> : vector<6xf32>
    %530 = vector.multi_reduction <maximumf>, %529, %cst_206 [1] : vector<6x6xf32> to vector<6xf32>
    %531 = vector.shape_cast %530 : vector<6xf32> to vector<6x1xf32>
    %532 = vector.broadcast %531 : vector<6x1xf32> to vector<6x6xf32>
    %533 = arith.subf %529, %532 : vector<6x6xf32>
    %534 = math.exp %533 : vector<6x6xf32>
    %cst_207 = arith.constant dense<0.000000e+00> : vector<6xf32>
    %535 = vector.multi_reduction <add>, %534, %cst_207 [1] : vector<6x6xf32> to vector<6xf32>
    %536 = vector.shape_cast %535 : vector<6xf32> to vector<6x1xf32>
    %cst_208 = arith.constant 9.99999971E-10 : f32
    %537 = vector.broadcast %cst_208 : f32 to vector<6x1xf32>
    %538 = arith.addf %536, %537 : vector<6x1xf32>
    %539 = tpu.reciprocal %538 {approx = true} : vector<6x1xf32> -> vector<6x1xf32>
    %540 = vector.broadcast %539 : vector<6x1xf32> to vector<6x6xf32>
    %541 = arith.mulf %534, %540 : vector<6x6xf32>
    %cst_209 = arith.constant dense<0.000000e+00> : vector<6x16xf32>
    %542 = tpu.matmul %541, %525, %cst_209 {dimension_numbers = #tpu.dot_dimension_numbers<[1], [0], [0], [1], [0, 0, 1, 1], [], []>} : vector<6x6xf32>, vector<6x16xf32>, vector<6x16xf32> -> vector<6x16xf32>
    %543 = vector.extract_strided_slice %522 {offsets = [0, 16], sizes = [6, 16], strides = [1, 1]} : vector<6x192xf32> to vector<6x16xf32>
    %544 = vector.extract_strided_slice %522 {offsets = [0, 80], sizes = [6, 16], strides = [1, 1]} : vector<6x192xf32> to vector<6x16xf32>
    %545 = vector.extract_strided_slice %522 {offsets = [0, 144], sizes = [6, 16], strides = [1, 1]} : vector<6x192xf32> to vector<6x16xf32>
    %cst_210 = arith.constant dense<0.000000e+00> : vector<6x6xf32>
    %546 = tpu.matmul %543, %544, %cst_210 {dimension_numbers = #tpu.dot_dimension_numbers<[1], [1], [0], [0], [0, 0, 1, 0], [], []>} : vector<6x16xf32>, vector<6x16xf32>, vector<6x6xf32> -> vector<6x6xf32>
    %cst_211 = arith.constant 2.500000e-01 : f32
    %547 = vector.broadcast %cst_211 : f32 to vector<6x6xf32>
    %548 = arith.mulf %546, %547 : vector<6x6xf32>
    %549 = arith.addf %548, %5 : vector<6x6xf32>
    %cst_212 = arith.constant dense<0xFF800000> : vector<6xf32>
    %550 = vector.multi_reduction <maximumf>, %549, %cst_212 [1] : vector<6x6xf32> to vector<6xf32>
    %551 = vector.shape_cast %550 : vector<6xf32> to vector<6x1xf32>
    %552 = vector.broadcast %551 : vector<6x1xf32> to vector<6x6xf32>
    %553 = arith.subf %549, %552 : vector<6x6xf32>
    %554 = math.exp %553 : vector<6x6xf32>
    %cst_213 = arith.constant dense<0.000000e+00> : vector<6xf32>
    %555 = vector.multi_reduction <add>, %554, %cst_213 [1] : vector<6x6xf32> to vector<6xf32>
    %556 = vector.shape_cast %555 : vector<6xf32> to vector<6x1xf32>
    %cst_214 = arith.constant 9.99999971E-10 : f32
    %557 = vector.broadcast %cst_214 : f32 to vector<6x1xf32>
    %558 = arith.addf %556, %557 : vector<6x1xf32>
    %559 = tpu.reciprocal %558 {approx = true} : vector<6x1xf32> -> vector<6x1xf32>
    %560 = vector.broadcast %559 : vector<6x1xf32> to vector<6x6xf32>
    %561 = arith.mulf %554, %560 : vector<6x6xf32>
    %cst_215 = arith.constant dense<0.000000e+00> : vector<6x16xf32>
    %562 = tpu.matmul %561, %545, %cst_215 {dimension_numbers = #tpu.dot_dimension_numbers<[1], [0], [0], [1], [0, 0, 1, 1], [], []>} : vector<6x6xf32>, vector<6x16xf32>, vector<6x16xf32> -> vector<6x16xf32>
    %563 = vector.extract_strided_slice %522 {offsets = [0, 32], sizes = [6, 16], strides = [1, 1]} : vector<6x192xf32> to vector<6x16xf32>
    %564 = vector.extract_strided_slice %522 {offsets = [0, 96], sizes = [6, 16], strides = [1, 1]} : vector<6x192xf32> to vector<6x16xf32>
    %565 = vector.extract_strided_slice %522 {offsets = [0, 160], sizes = [6, 16], strides = [1, 1]} : vector<6x192xf32> to vector<6x16xf32>
    %cst_216 = arith.constant dense<0.000000e+00> : vector<6x6xf32>
    %566 = tpu.matmul %563, %564, %cst_216 {dimension_numbers = #tpu.dot_dimension_numbers<[1], [1], [0], [0], [0, 0, 1, 0], [], []>} : vector<6x16xf32>, vector<6x16xf32>, vector<6x6xf32> -> vector<6x6xf32>
    %cst_217 = arith.constant 2.500000e-01 : f32
    %567 = vector.broadcast %cst_217 : f32 to vector<6x6xf32>
    %568 = arith.mulf %566, %567 : vector<6x6xf32>
    %569 = arith.addf %568, %5 : vector<6x6xf32>
    %cst_218 = arith.constant dense<0xFF800000> : vector<6xf32>
    %570 = vector.multi_reduction <maximumf>, %569, %cst_218 [1] : vector<6x6xf32> to vector<6xf32>
    %571 = vector.shape_cast %570 : vector<6xf32> to vector<6x1xf32>
    %572 = vector.broadcast %571 : vector<6x1xf32> to vector<6x6xf32>
    %573 = arith.subf %569, %572 : vector<6x6xf32>
    %574 = math.exp %573 : vector<6x6xf32>
    %cst_219 = arith.constant dense<0.000000e+00> : vector<6xf32>
    %575 = vector.multi_reduction <add>, %574, %cst_219 [1] : vector<6x6xf32> to vector<6xf32>
    %576 = vector.shape_cast %575 : vector<6xf32> to vector<6x1xf32>
    %cst_220 = arith.constant 9.99999971E-10 : f32
    %577 = vector.broadcast %cst_220 : f32 to vector<6x1xf32>
    %578 = arith.addf %576, %577 : vector<6x1xf32>
    %579 = tpu.reciprocal %578 {approx = true} : vector<6x1xf32> -> vector<6x1xf32>
    %580 = vector.broadcast %579 : vector<6x1xf32> to vector<6x6xf32>
    %581 = arith.mulf %574, %580 : vector<6x6xf32>
    %cst_221 = arith.constant dense<0.000000e+00> : vector<6x16xf32>
    %582 = tpu.matmul %581, %565, %cst_221 {dimension_numbers = #tpu.dot_dimension_numbers<[1], [0], [0], [1], [0, 0, 1, 1], [], []>} : vector<6x6xf32>, vector<6x16xf32>, vector<6x16xf32> -> vector<6x16xf32>
    %583 = vector.extract_strided_slice %522 {offsets = [0, 48], sizes = [6, 16], strides = [1, 1]} : vector<6x192xf32> to vector<6x16xf32>
    %584 = vector.extract_strided_slice %522 {offsets = [0, 112], sizes = [6, 16], strides = [1, 1]} : vector<6x192xf32> to vector<6x16xf32>
    %585 = vector.extract_strided_slice %522 {offsets = [0, 176], sizes = [6, 16], strides = [1, 1]} : vector<6x192xf32> to vector<6x16xf32>
    %cst_222 = arith.constant dense<0.000000e+00> : vector<6x6xf32>
    %586 = tpu.matmul %583, %584, %cst_222 {dimension_numbers = #tpu.dot_dimension_numbers<[1], [1], [0], [0], [0, 0, 1, 0], [], []>} : vector<6x16xf32>, vector<6x16xf32>, vector<6x6xf32> -> vector<6x6xf32>
    %cst_223 = arith.constant 2.500000e-01 : f32
    %587 = vector.broadcast %cst_223 : f32 to vector<6x6xf32>
    %588 = arith.mulf %586, %587 : vector<6x6xf32>
    %589 = arith.addf %588, %5 : vector<6x6xf32>
    %cst_224 = arith.constant dense<0xFF800000> : vector<6xf32>
    %590 = vector.multi_reduction <maximumf>, %589, %cst_224 [1] : vector<6x6xf32> to vector<6xf32>
    %591 = vector.shape_cast %590 : vector<6xf32> to vector<6x1xf32>
    %592 = vector.broadcast %591 : vector<6x1xf32> to vector<6x6xf32>
    %593 = arith.subf %589, %592 : vector<6x6xf32>
    %594 = math.exp %593 : vector<6x6xf32>
    %cst_225 = arith.constant dense<0.000000e+00> : vector<6xf32>
    %595 = vector.multi_reduction <add>, %594, %cst_225 [1] : vector<6x6xf32> to vector<6xf32>
    %596 = vector.shape_cast %595 : vector<6xf32> to vector<6x1xf32>
    %cst_226 = arith.constant 9.99999971E-10 : f32
    %597 = vector.broadcast %cst_226 : f32 to vector<6x1xf32>
    %598 = arith.addf %596, %597 : vector<6x1xf32>
    %599 = tpu.reciprocal %598 {approx = true} : vector<6x1xf32> -> vector<6x1xf32>
    %600 = vector.broadcast %599 : vector<6x1xf32> to vector<6x6xf32>
    %601 = arith.mulf %594, %600 : vector<6x6xf32>
    %cst_227 = arith.constant dense<0.000000e+00> : vector<6x16xf32>
    %602 = tpu.matmul %601, %585, %cst_227 {dimension_numbers = #tpu.dot_dimension_numbers<[1], [0], [0], [1], [0, 0, 1, 1], [], []>} : vector<6x6xf32>, vector<6x16xf32>, vector<6x16xf32> -> vector<6x16xf32>
    %603 = tpu.concatenate %542, %562, %582, %602 in 1 : vector<6x16xf32>, vector<6x16xf32>, vector<6x16xf32>, vector<6x16xf32> -> vector<6x64xf32>
    %cst_228 = arith.constant dense<0.000000e+00> : vector<6x64xf32>
    %604 = tpu.matmul %603, %518, %cst_228 {dimension_numbers = #tpu.dot_dimension_numbers<[1], [0], [0], [1], [0, 0, 1, 1], [], []>} : vector<6x64xf32>, vector<64x64xf32>, vector<6x64xf32> -> vector<6x64xf32>
    %605 = vector.broadcast %519 : vector<1x64xf32> to vector<6x64xf32>
    %606 = arith.addf %604, %605 : vector<6x64xf32>
    %607 = arith.addf %61, %606 : vector<6x64xf32>
    %c896 = arith.constant 896 : index
    %c0_229 = arith.constant 0 : index
    %608 = vector.load %arg8[%c896, %c0_229] : memref<976x64xf32, #tpu.memory_space<vmem>>, vector<1x64xf32>
    %c904 = arith.constant 904 : index
    %c0_230 = arith.constant 0 : index
    %609 = vector.load %arg8[%c904, %c0_230] : memref<976x64xf32, #tpu.memory_space<vmem>>, vector<1x64xf32>
    %cst_231 = arith.constant dense<0.000000e+00> : vector<6xf32>
    %610 = vector.multi_reduction <add>, %607, %cst_231 [1] : vector<6x64xf32> to vector<6xf32>
    %611 = vector.shape_cast %610 : vector<6xf32> to vector<6x1xf32>
    %cst_232 = arith.constant 6.400000e+01 : f32
    %612 = vector.broadcast %cst_232 : f32 to vector<6x1xf32>
    %613 = arith.divf %611, %612 : vector<6x1xf32>
    %614 = vector.broadcast %613 : vector<6x1xf32> to vector<6x64xf32>
    %615 = arith.subf %607, %614 : vector<6x64xf32>
    %616 = arith.mulf %615, %615 : vector<6x64xf32>
    %cst_233 = arith.constant dense<0.000000e+00> : vector<6xf32>
    %617 = vector.multi_reduction <add>, %616, %cst_233 [1] : vector<6x64xf32> to vector<6xf32>
    %618 = vector.shape_cast %617 : vector<6xf32> to vector<6x1xf32>
    %cst_234 = arith.constant 6.400000e+01 : f32
    %619 = vector.broadcast %cst_234 : f32 to vector<6x1xf32>
    %620 = arith.divf %618, %619 : vector<6x1xf32>
    %cst_235 = arith.constant 9.99999997E-7 : f32
    %621 = vector.broadcast %cst_235 : f32 to vector<6x1xf32>
    %622 = arith.addf %620, %621 : vector<6x1xf32>
    %623 = math.rsqrt %622 : vector<6x1xf32>
    %624 = vector.broadcast %623 : vector<6x1xf32> to vector<6x64xf32>
    %625 = arith.mulf %615, %624 : vector<6x64xf32>
    %626 = vector.broadcast %608 : vector<1x64xf32> to vector<6x64xf32>
    %627 = arith.mulf %625, %626 : vector<6x64xf32>
    %628 = vector.broadcast %609 : vector<1x64xf32> to vector<6x64xf32>
    %629 = arith.addf %627, %628 : vector<6x64xf32>
    %c288 = arith.constant 288 : index
    %c0_236 = arith.constant 0 : index
    %630 = vector.load %arg10[%c288, %c0_236] : memref<432x192xf32, #tpu.memory_space<vmem>>, vector<64x192xf32>
    %c352 = arith.constant 352 : index
    %c0_237 = arith.constant 0 : index
    %631 = vector.load %arg10[%c352, %c0_237] : memref<432x192xf32, #tpu.memory_space<vmem>>, vector<1x192xf32>
    %c600 = arith.constant 600 : index
    %c0_238 = arith.constant 0 : index
    %632 = vector.load %arg8[%c600, %c0_238] : memref<976x64xf32, #tpu.memory_space<vmem>>, vector<64x64xf32>
    %c664 = arith.constant 664 : index
    %c0_239 = arith.constant 0 : index
    %633 = vector.load %arg8[%c664, %c0_239] : memref<976x64xf32, #tpu.memory_space<vmem>>, vector<1x64xf32>
    %cst_240 = arith.constant dense<0.000000e+00> : vector<6x192xf32>
    %634 = tpu.matmul %629, %630, %cst_240 {dimension_numbers = #tpu.dot_dimension_numbers<[1], [0], [0], [1], [0, 0, 1, 1], [], []>} : vector<6x64xf32>, vector<64x192xf32>, vector<6x192xf32> -> vector<6x192xf32>
    %635 = vector.broadcast %631 : vector<1x192xf32> to vector<6x192xf32>
    %636 = arith.addf %634, %635 : vector<6x192xf32>
    %cst_241 = arith.constant dense<0.000000e+00> : vector<8x192xf32>
    %637 = tpu.matmul %493, %630, %cst_241 {dimension_numbers = #tpu.dot_dimension_numbers<[1], [0], [0], [1], [0, 0, 1, 1], [], []>} : vector<8x64xf32>, vector<64x192xf32>, vector<8x192xf32> -> vector<8x192xf32>
    %638 = vector.broadcast %631 : vector<1x192xf32> to vector<8x192xf32>
    %639 = arith.addf %637, %638 : vector<8x192xf32>
    %640 = vector.extract_strided_slice %636 {offsets = [0, 0], sizes = [6, 16], strides = [1, 1]} : vector<6x192xf32> to vector<6x16xf32>
    %641 = vector.extract_strided_slice %639 {offsets = [0, 64], sizes = [8, 16], strides = [1, 1]} : vector<8x192xf32> to vector<8x16xf32>
    %642 = vector.extract_strided_slice %639 {offsets = [0, 128], sizes = [8, 16], strides = [1, 1]} : vector<8x192xf32> to vector<8x16xf32>
    %cst_242 = arith.constant dense<0.000000e+00> : vector<6x8xf32>
    %643 = tpu.matmul %640, %641, %cst_242 {dimension_numbers = #tpu.dot_dimension_numbers<[1], [1], [0], [0], [0, 0, 1, 0], [], []>} : vector<6x16xf32>, vector<8x16xf32>, vector<6x8xf32> -> vector<6x8xf32>
    %cst_243 = arith.constant 2.500000e-01 : f32
    %644 = vector.broadcast %cst_243 : f32 to vector<6x8xf32>
    %645 = arith.mulf %643, %644 : vector<6x8xf32>
    %646 = vector.broadcast %27 : vector<1x8xf32> to vector<6x8xf32>
    %647 = arith.addf %645, %646 : vector<6x8xf32>
    %cst_244 = arith.constant dense<0xFF800000> : vector<6xf32>
    %648 = vector.multi_reduction <maximumf>, %647, %cst_244 [1] : vector<6x8xf32> to vector<6xf32>
    %649 = vector.shape_cast %648 : vector<6xf32> to vector<6x1xf32>
    %650 = vector.broadcast %649 : vector<6x1xf32> to vector<6x8xf32>
    %651 = arith.subf %647, %650 : vector<6x8xf32>
    %652 = math.exp %651 : vector<6x8xf32>
    %cst_245 = arith.constant dense<0.000000e+00> : vector<6xf32>
    %653 = vector.multi_reduction <add>, %652, %cst_245 [1] : vector<6x8xf32> to vector<6xf32>
    %654 = vector.shape_cast %653 : vector<6xf32> to vector<6x1xf32>
    %cst_246 = arith.constant 9.99999971E-10 : f32
    %655 = vector.broadcast %cst_246 : f32 to vector<6x1xf32>
    %656 = arith.addf %654, %655 : vector<6x1xf32>
    %657 = tpu.reciprocal %656 {approx = true} : vector<6x1xf32> -> vector<6x1xf32>
    %658 = vector.broadcast %657 : vector<6x1xf32> to vector<6x8xf32>
    %659 = arith.mulf %652, %658 : vector<6x8xf32>
    %cst_247 = arith.constant dense<0.000000e+00> : vector<6x16xf32>
    %660 = tpu.matmul %659, %642, %cst_247 {dimension_numbers = #tpu.dot_dimension_numbers<[1], [0], [0], [1], [0, 0, 1, 1], [], []>} : vector<6x8xf32>, vector<8x16xf32>, vector<6x16xf32> -> vector<6x16xf32>
    %661 = vector.extract_strided_slice %636 {offsets = [0, 16], sizes = [6, 16], strides = [1, 1]} : vector<6x192xf32> to vector<6x16xf32>
    %662 = vector.extract_strided_slice %639 {offsets = [0, 80], sizes = [8, 16], strides = [1, 1]} : vector<8x192xf32> to vector<8x16xf32>
    %663 = vector.extract_strided_slice %639 {offsets = [0, 144], sizes = [8, 16], strides = [1, 1]} : vector<8x192xf32> to vector<8x16xf32>
    %cst_248 = arith.constant dense<0.000000e+00> : vector<6x8xf32>
    %664 = tpu.matmul %661, %662, %cst_248 {dimension_numbers = #tpu.dot_dimension_numbers<[1], [1], [0], [0], [0, 0, 1, 0], [], []>} : vector<6x16xf32>, vector<8x16xf32>, vector<6x8xf32> -> vector<6x8xf32>
    %cst_249 = arith.constant 2.500000e-01 : f32
    %665 = vector.broadcast %cst_249 : f32 to vector<6x8xf32>
    %666 = arith.mulf %664, %665 : vector<6x8xf32>
    %667 = vector.broadcast %27 : vector<1x8xf32> to vector<6x8xf32>
    %668 = arith.addf %666, %667 : vector<6x8xf32>
    %cst_250 = arith.constant dense<0xFF800000> : vector<6xf32>
    %669 = vector.multi_reduction <maximumf>, %668, %cst_250 [1] : vector<6x8xf32> to vector<6xf32>
    %670 = vector.shape_cast %669 : vector<6xf32> to vector<6x1xf32>
    %671 = vector.broadcast %670 : vector<6x1xf32> to vector<6x8xf32>
    %672 = arith.subf %668, %671 : vector<6x8xf32>
    %673 = math.exp %672 : vector<6x8xf32>
    %cst_251 = arith.constant dense<0.000000e+00> : vector<6xf32>
    %674 = vector.multi_reduction <add>, %673, %cst_251 [1] : vector<6x8xf32> to vector<6xf32>
    %675 = vector.shape_cast %674 : vector<6xf32> to vector<6x1xf32>
    %cst_252 = arith.constant 9.99999971E-10 : f32
    %676 = vector.broadcast %cst_252 : f32 to vector<6x1xf32>
    %677 = arith.addf %675, %676 : vector<6x1xf32>
    %678 = tpu.reciprocal %677 {approx = true} : vector<6x1xf32> -> vector<6x1xf32>
    %679 = vector.broadcast %678 : vector<6x1xf32> to vector<6x8xf32>
    %680 = arith.mulf %673, %679 : vector<6x8xf32>
    %cst_253 = arith.constant dense<0.000000e+00> : vector<6x16xf32>
    %681 = tpu.matmul %680, %663, %cst_253 {dimension_numbers = #tpu.dot_dimension_numbers<[1], [0], [0], [1], [0, 0, 1, 1], [], []>} : vector<6x8xf32>, vector<8x16xf32>, vector<6x16xf32> -> vector<6x16xf32>
    %682 = vector.extract_strided_slice %636 {offsets = [0, 32], sizes = [6, 16], strides = [1, 1]} : vector<6x192xf32> to vector<6x16xf32>
    %683 = vector.extract_strided_slice %639 {offsets = [0, 96], sizes = [8, 16], strides = [1, 1]} : vector<8x192xf32> to vector<8x16xf32>
    %684 = vector.extract_strided_slice %639 {offsets = [0, 160], sizes = [8, 16], strides = [1, 1]} : vector<8x192xf32> to vector<8x16xf32>
    %cst_254 = arith.constant dense<0.000000e+00> : vector<6x8xf32>
    %685 = tpu.matmul %682, %683, %cst_254 {dimension_numbers = #tpu.dot_dimension_numbers<[1], [1], [0], [0], [0, 0, 1, 0], [], []>} : vector<6x16xf32>, vector<8x16xf32>, vector<6x8xf32> -> vector<6x8xf32>
    %cst_255 = arith.constant 2.500000e-01 : f32
    %686 = vector.broadcast %cst_255 : f32 to vector<6x8xf32>
    %687 = arith.mulf %685, %686 : vector<6x8xf32>
    %688 = vector.broadcast %27 : vector<1x8xf32> to vector<6x8xf32>
    %689 = arith.addf %687, %688 : vector<6x8xf32>
    %cst_256 = arith.constant dense<0xFF800000> : vector<6xf32>
    %690 = vector.multi_reduction <maximumf>, %689, %cst_256 [1] : vector<6x8xf32> to vector<6xf32>
    %691 = vector.shape_cast %690 : vector<6xf32> to vector<6x1xf32>
    %692 = vector.broadcast %691 : vector<6x1xf32> to vector<6x8xf32>
    %693 = arith.subf %689, %692 : vector<6x8xf32>
    %694 = math.exp %693 : vector<6x8xf32>
    %cst_257 = arith.constant dense<0.000000e+00> : vector<6xf32>
    %695 = vector.multi_reduction <add>, %694, %cst_257 [1] : vector<6x8xf32> to vector<6xf32>
    %696 = vector.shape_cast %695 : vector<6xf32> to vector<6x1xf32>
    %cst_258 = arith.constant 9.99999971E-10 : f32
    %697 = vector.broadcast %cst_258 : f32 to vector<6x1xf32>
    %698 = arith.addf %696, %697 : vector<6x1xf32>
    %699 = tpu.reciprocal %698 {approx = true} : vector<6x1xf32> -> vector<6x1xf32>
    %700 = vector.broadcast %699 : vector<6x1xf32> to vector<6x8xf32>
    %701 = arith.mulf %694, %700 : vector<6x8xf32>
    %cst_259 = arith.constant dense<0.000000e+00> : vector<6x16xf32>
    %702 = tpu.matmul %701, %684, %cst_259 {dimension_numbers = #tpu.dot_dimension_numbers<[1], [0], [0], [1], [0, 0, 1, 1], [], []>} : vector<6x8xf32>, vector<8x16xf32>, vector<6x16xf32> -> vector<6x16xf32>
    %703 = vector.extract_strided_slice %636 {offsets = [0, 48], sizes = [6, 16], strides = [1, 1]} : vector<6x192xf32> to vector<6x16xf32>
    %704 = vector.extract_strided_slice %639 {offsets = [0, 112], sizes = [8, 16], strides = [1, 1]} : vector<8x192xf32> to vector<8x16xf32>
    %705 = vector.extract_strided_slice %639 {offsets = [0, 176], sizes = [8, 16], strides = [1, 1]} : vector<8x192xf32> to vector<8x16xf32>
    %cst_260 = arith.constant dense<0.000000e+00> : vector<6x8xf32>
    %706 = tpu.matmul %703, %704, %cst_260 {dimension_numbers = #tpu.dot_dimension_numbers<[1], [1], [0], [0], [0, 0, 1, 0], [], []>} : vector<6x16xf32>, vector<8x16xf32>, vector<6x8xf32> -> vector<6x8xf32>
    %cst_261 = arith.constant 2.500000e-01 : f32
    %707 = vector.broadcast %cst_261 : f32 to vector<6x8xf32>
    %708 = arith.mulf %706, %707 : vector<6x8xf32>
    %709 = vector.broadcast %27 : vector<1x8xf32> to vector<6x8xf32>
    %710 = arith.addf %708, %709 : vector<6x8xf32>
    %cst_262 = arith.constant dense<0xFF800000> : vector<6xf32>
    %711 = vector.multi_reduction <maximumf>, %710, %cst_262 [1] : vector<6x8xf32> to vector<6xf32>
    %712 = vector.shape_cast %711 : vector<6xf32> to vector<6x1xf32>
    %713 = vector.broadcast %712 : vector<6x1xf32> to vector<6x8xf32>
    %714 = arith.subf %710, %713 : vector<6x8xf32>
    %715 = math.exp %714 : vector<6x8xf32>
    %cst_263 = arith.constant dense<0.000000e+00> : vector<6xf32>
    %716 = vector.multi_reduction <add>, %715, %cst_263 [1] : vector<6x8xf32> to vector<6xf32>
    %717 = vector.shape_cast %716 : vector<6xf32> to vector<6x1xf32>
    %cst_264 = arith.constant 9.99999971E-10 : f32
    %718 = vector.broadcast %cst_264 : f32 to vector<6x1xf32>
    %719 = arith.addf %717, %718 : vector<6x1xf32>
    %720 = tpu.reciprocal %719 {approx = true} : vector<6x1xf32> -> vector<6x1xf32>
    %721 = vector.broadcast %720 : vector<6x1xf32> to vector<6x8xf32>
    %722 = arith.mulf %715, %721 : vector<6x8xf32>
    %cst_265 = arith.constant dense<0.000000e+00> : vector<6x16xf32>
    %723 = tpu.matmul %722, %705, %cst_265 {dimension_numbers = #tpu.dot_dimension_numbers<[1], [0], [0], [1], [0, 0, 1, 1], [], []>} : vector<6x8xf32>, vector<8x16xf32>, vector<6x16xf32> -> vector<6x16xf32>
    %724 = tpu.concatenate %660, %681, %702, %723 in 1 : vector<6x16xf32>, vector<6x16xf32>, vector<6x16xf32>, vector<6x16xf32> -> vector<6x64xf32>
    %cst_266 = arith.constant dense<0.000000e+00> : vector<6x64xf32>
    %725 = tpu.matmul %724, %632, %cst_266 {dimension_numbers = #tpu.dot_dimension_numbers<[1], [0], [0], [1], [0, 0, 1, 1], [], []>} : vector<6x64xf32>, vector<64x64xf32>, vector<6x64xf32> -> vector<6x64xf32>
    %726 = vector.broadcast %633 : vector<1x64xf32> to vector<6x64xf32>
    %727 = arith.addf %725, %726 : vector<6x64xf32>
    %728 = arith.addf %607, %727 : vector<6x64xf32>
    %c912 = arith.constant 912 : index
    %c0_267 = arith.constant 0 : index
    %729 = vector.load %arg8[%c912, %c0_267] : memref<976x64xf32, #tpu.memory_space<vmem>>, vector<1x64xf32>
    %c920 = arith.constant 920 : index
    %c0_268 = arith.constant 0 : index
    %730 = vector.load %arg8[%c920, %c0_268] : memref<976x64xf32, #tpu.memory_space<vmem>>, vector<1x64xf32>
    %cst_269 = arith.constant dense<0.000000e+00> : vector<6xf32>
    %731 = vector.multi_reduction <add>, %728, %cst_269 [1] : vector<6x64xf32> to vector<6xf32>
    %732 = vector.shape_cast %731 : vector<6xf32> to vector<6x1xf32>
    %cst_270 = arith.constant 6.400000e+01 : f32
    %733 = vector.broadcast %cst_270 : f32 to vector<6x1xf32>
    %734 = arith.divf %732, %733 : vector<6x1xf32>
    %735 = vector.broadcast %734 : vector<6x1xf32> to vector<6x64xf32>
    %736 = arith.subf %728, %735 : vector<6x64xf32>
    %737 = arith.mulf %736, %736 : vector<6x64xf32>
    %cst_271 = arith.constant dense<0.000000e+00> : vector<6xf32>
    %738 = vector.multi_reduction <add>, %737, %cst_271 [1] : vector<6x64xf32> to vector<6xf32>
    %739 = vector.shape_cast %738 : vector<6xf32> to vector<6x1xf32>
    %cst_272 = arith.constant 6.400000e+01 : f32
    %740 = vector.broadcast %cst_272 : f32 to vector<6x1xf32>
    %741 = arith.divf %739, %740 : vector<6x1xf32>
    %cst_273 = arith.constant 9.99999997E-7 : f32
    %742 = vector.broadcast %cst_273 : f32 to vector<6x1xf32>
    %743 = arith.addf %741, %742 : vector<6x1xf32>
    %744 = math.rsqrt %743 : vector<6x1xf32>
    %745 = vector.broadcast %744 : vector<6x1xf32> to vector<6x64xf32>
    %746 = arith.mulf %736, %745 : vector<6x64xf32>
    %747 = vector.broadcast %729 : vector<1x64xf32> to vector<6x64xf32>
    %748 = arith.mulf %746, %747 : vector<6x64xf32>
    %749 = vector.broadcast %730 : vector<1x64xf32> to vector<6x64xf32>
    %750 = arith.addf %748, %749 : vector<6x64xf32>
    %c360 = arith.constant 360 : index
    %c0_274 = arith.constant 0 : index
    %751 = vector.load %arg10[%c360, %c0_274] : memref<432x192xf32, #tpu.memory_space<vmem>>, vector<64x192xf32>
    %c424 = arith.constant 424 : index
    %c0_275 = arith.constant 0 : index
    %752 = vector.load %arg10[%c424, %c0_275] : memref<432x192xf32, #tpu.memory_space<vmem>>, vector<1x192xf32>
    %c672 = arith.constant 672 : index
    %c0_276 = arith.constant 0 : index
    %753 = vector.load %arg8[%c672, %c0_276] : memref<976x64xf32, #tpu.memory_space<vmem>>, vector<64x64xf32>
    %c736 = arith.constant 736 : index
    %c0_277 = arith.constant 0 : index
    %754 = vector.load %arg8[%c736, %c0_277] : memref<976x64xf32, #tpu.memory_space<vmem>>, vector<1x64xf32>
    %cst_278 = arith.constant dense<0.000000e+00> : vector<6x192xf32>
    %755 = tpu.matmul %750, %751, %cst_278 {dimension_numbers = #tpu.dot_dimension_numbers<[1], [0], [0], [1], [0, 0, 1, 1], [], []>} : vector<6x64xf32>, vector<64x192xf32>, vector<6x192xf32> -> vector<6x192xf32>
    %756 = vector.broadcast %752 : vector<1x192xf32> to vector<6x192xf32>
    %757 = arith.addf %755, %756 : vector<6x192xf32>
    %cst_279 = arith.constant dense<0.000000e+00> : vector<4x192xf32>
    %758 = tpu.matmul %71, %751, %cst_279 {dimension_numbers = #tpu.dot_dimension_numbers<[1], [0], [0], [1], [0, 0, 1, 1], [], []>} : vector<4x64xf32>, vector<64x192xf32>, vector<4x192xf32> -> vector<4x192xf32>
    %759 = vector.broadcast %752 : vector<1x192xf32> to vector<4x192xf32>
    %760 = arith.addf %758, %759 : vector<4x192xf32>
    %761 = vector.extract_strided_slice %757 {offsets = [0, 0], sizes = [6, 16], strides = [1, 1]} : vector<6x192xf32> to vector<6x16xf32>
    %762 = vector.extract_strided_slice %760 {offsets = [0, 64], sizes = [4, 16], strides = [1, 1]} : vector<4x192xf32> to vector<4x16xf32>
    %763 = vector.extract_strided_slice %760 {offsets = [0, 128], sizes = [4, 16], strides = [1, 1]} : vector<4x192xf32> to vector<4x16xf32>
    %cst_280 = arith.constant dense<0.000000e+00> : vector<6x4xf32>
    %764 = tpu.matmul %761, %762, %cst_280 {dimension_numbers = #tpu.dot_dimension_numbers<[1], [1], [0], [0], [0, 0, 1, 0], [], []>} : vector<6x16xf32>, vector<4x16xf32>, vector<6x4xf32> -> vector<6x4xf32>
    %cst_281 = arith.constant 2.500000e-01 : f32
    %765 = vector.broadcast %cst_281 : f32 to vector<6x4xf32>
    %766 = arith.mulf %764, %765 : vector<6x4xf32>
    %767 = vector.broadcast %45 : vector<1x4xf32> to vector<6x4xf32>
    %768 = arith.addf %766, %767 : vector<6x4xf32>
    %cst_282 = arith.constant dense<0xFF800000> : vector<6xf32>
    %769 = vector.multi_reduction <maximumf>, %768, %cst_282 [1] : vector<6x4xf32> to vector<6xf32>
    %770 = vector.shape_cast %769 : vector<6xf32> to vector<6x1xf32>
    %771 = vector.broadcast %770 : vector<6x1xf32> to vector<6x4xf32>
    %772 = arith.subf %768, %771 : vector<6x4xf32>
    %773 = math.exp %772 : vector<6x4xf32>
    %cst_283 = arith.constant dense<0.000000e+00> : vector<6xf32>
    %774 = vector.multi_reduction <add>, %773, %cst_283 [1] : vector<6x4xf32> to vector<6xf32>
    %775 = vector.shape_cast %774 : vector<6xf32> to vector<6x1xf32>
    %cst_284 = arith.constant 9.99999971E-10 : f32
    %776 = vector.broadcast %cst_284 : f32 to vector<6x1xf32>
    %777 = arith.addf %775, %776 : vector<6x1xf32>
    %778 = tpu.reciprocal %777 {approx = true} : vector<6x1xf32> -> vector<6x1xf32>
    %779 = vector.broadcast %778 : vector<6x1xf32> to vector<6x4xf32>
    %780 = arith.mulf %773, %779 : vector<6x4xf32>
    %cst_285 = arith.constant dense<0.000000e+00> : vector<6x16xf32>
    %781 = tpu.matmul %780, %763, %cst_285 {dimension_numbers = #tpu.dot_dimension_numbers<[1], [0], [0], [1], [0, 0, 1, 1], [], []>} : vector<6x4xf32>, vector<4x16xf32>, vector<6x16xf32> -> vector<6x16xf32>
    %782 = vector.extract_strided_slice %757 {offsets = [0, 16], sizes = [6, 16], strides = [1, 1]} : vector<6x192xf32> to vector<6x16xf32>
    %783 = vector.extract_strided_slice %760 {offsets = [0, 80], sizes = [4, 16], strides = [1, 1]} : vector<4x192xf32> to vector<4x16xf32>
    %784 = vector.extract_strided_slice %760 {offsets = [0, 144], sizes = [4, 16], strides = [1, 1]} : vector<4x192xf32> to vector<4x16xf32>
    %cst_286 = arith.constant dense<0.000000e+00> : vector<6x4xf32>
    %785 = tpu.matmul %782, %783, %cst_286 {dimension_numbers = #tpu.dot_dimension_numbers<[1], [1], [0], [0], [0, 0, 1, 0], [], []>} : vector<6x16xf32>, vector<4x16xf32>, vector<6x4xf32> -> vector<6x4xf32>
    %cst_287 = arith.constant 2.500000e-01 : f32
    %786 = vector.broadcast %cst_287 : f32 to vector<6x4xf32>
    %787 = arith.mulf %785, %786 : vector<6x4xf32>
    %788 = vector.broadcast %45 : vector<1x4xf32> to vector<6x4xf32>
    %789 = arith.addf %787, %788 : vector<6x4xf32>
    %cst_288 = arith.constant dense<0xFF800000> : vector<6xf32>
    %790 = vector.multi_reduction <maximumf>, %789, %cst_288 [1] : vector<6x4xf32> to vector<6xf32>
    %791 = vector.shape_cast %790 : vector<6xf32> to vector<6x1xf32>
    %792 = vector.broadcast %791 : vector<6x1xf32> to vector<6x4xf32>
    %793 = arith.subf %789, %792 : vector<6x4xf32>
    %794 = math.exp %793 : vector<6x4xf32>
    %cst_289 = arith.constant dense<0.000000e+00> : vector<6xf32>
    %795 = vector.multi_reduction <add>, %794, %cst_289 [1] : vector<6x4xf32> to vector<6xf32>
    %796 = vector.shape_cast %795 : vector<6xf32> to vector<6x1xf32>
    %cst_290 = arith.constant 9.99999971E-10 : f32
    %797 = vector.broadcast %cst_290 : f32 to vector<6x1xf32>
    %798 = arith.addf %796, %797 : vector<6x1xf32>
    %799 = tpu.reciprocal %798 {approx = true} : vector<6x1xf32> -> vector<6x1xf32>
    %800 = vector.broadcast %799 : vector<6x1xf32> to vector<6x4xf32>
    %801 = arith.mulf %794, %800 : vector<6x4xf32>
    %cst_291 = arith.constant dense<0.000000e+00> : vector<6x16xf32>
    %802 = tpu.matmul %801, %784, %cst_291 {dimension_numbers = #tpu.dot_dimension_numbers<[1], [0], [0], [1], [0, 0, 1, 1], [], []>} : vector<6x4xf32>, vector<4x16xf32>, vector<6x16xf32> -> vector<6x16xf32>
    %803 = vector.extract_strided_slice %757 {offsets = [0, 32], sizes = [6, 16], strides = [1, 1]} : vector<6x192xf32> to vector<6x16xf32>
    %804 = vector.extract_strided_slice %760 {offsets = [0, 96], sizes = [4, 16], strides = [1, 1]} : vector<4x192xf32> to vector<4x16xf32>
    %805 = vector.extract_strided_slice %760 {offsets = [0, 160], sizes = [4, 16], strides = [1, 1]} : vector<4x192xf32> to vector<4x16xf32>
    %cst_292 = arith.constant dense<0.000000e+00> : vector<6x4xf32>
    %806 = tpu.matmul %803, %804, %cst_292 {dimension_numbers = #tpu.dot_dimension_numbers<[1], [1], [0], [0], [0, 0, 1, 0], [], []>} : vector<6x16xf32>, vector<4x16xf32>, vector<6x4xf32> -> vector<6x4xf32>
    %cst_293 = arith.constant 2.500000e-01 : f32
    %807 = vector.broadcast %cst_293 : f32 to vector<6x4xf32>
    %808 = arith.mulf %806, %807 : vector<6x4xf32>
    %809 = vector.broadcast %45 : vector<1x4xf32> to vector<6x4xf32>
    %810 = arith.addf %808, %809 : vector<6x4xf32>
    %cst_294 = arith.constant dense<0xFF800000> : vector<6xf32>
    %811 = vector.multi_reduction <maximumf>, %810, %cst_294 [1] : vector<6x4xf32> to vector<6xf32>
    %812 = vector.shape_cast %811 : vector<6xf32> to vector<6x1xf32>
    %813 = vector.broadcast %812 : vector<6x1xf32> to vector<6x4xf32>
    %814 = arith.subf %810, %813 : vector<6x4xf32>
    %815 = math.exp %814 : vector<6x4xf32>
    %cst_295 = arith.constant dense<0.000000e+00> : vector<6xf32>
    %816 = vector.multi_reduction <add>, %815, %cst_295 [1] : vector<6x4xf32> to vector<6xf32>
    %817 = vector.shape_cast %816 : vector<6xf32> to vector<6x1xf32>
    %cst_296 = arith.constant 9.99999971E-10 : f32
    %818 = vector.broadcast %cst_296 : f32 to vector<6x1xf32>
    %819 = arith.addf %817, %818 : vector<6x1xf32>
    %820 = tpu.reciprocal %819 {approx = true} : vector<6x1xf32> -> vector<6x1xf32>
    %821 = vector.broadcast %820 : vector<6x1xf32> to vector<6x4xf32>
    %822 = arith.mulf %815, %821 : vector<6x4xf32>
    %cst_297 = arith.constant dense<0.000000e+00> : vector<6x16xf32>
    %823 = tpu.matmul %822, %805, %cst_297 {dimension_numbers = #tpu.dot_dimension_numbers<[1], [0], [0], [1], [0, 0, 1, 1], [], []>} : vector<6x4xf32>, vector<4x16xf32>, vector<6x16xf32> -> vector<6x16xf32>
    %824 = vector.extract_strided_slice %757 {offsets = [0, 48], sizes = [6, 16], strides = [1, 1]} : vector<6x192xf32> to vector<6x16xf32>
    %825 = vector.extract_strided_slice %760 {offsets = [0, 112], sizes = [4, 16], strides = [1, 1]} : vector<4x192xf32> to vector<4x16xf32>
    %826 = vector.extract_strided_slice %760 {offsets = [0, 176], sizes = [4, 16], strides = [1, 1]} : vector<4x192xf32> to vector<4x16xf32>
    %cst_298 = arith.constant dense<0.000000e+00> : vector<6x4xf32>
    %827 = tpu.matmul %824, %825, %cst_298 {dimension_numbers = #tpu.dot_dimension_numbers<[1], [1], [0], [0], [0, 0, 1, 0], [], []>} : vector<6x16xf32>, vector<4x16xf32>, vector<6x4xf32> -> vector<6x4xf32>
    %cst_299 = arith.constant 2.500000e-01 : f32
    %828 = vector.broadcast %cst_299 : f32 to vector<6x4xf32>
    %829 = arith.mulf %827, %828 : vector<6x4xf32>
    %830 = vector.broadcast %45 : vector<1x4xf32> to vector<6x4xf32>
    %831 = arith.addf %829, %830 : vector<6x4xf32>
    %cst_300 = arith.constant dense<0xFF800000> : vector<6xf32>
    %832 = vector.multi_reduction <maximumf>, %831, %cst_300 [1] : vector<6x4xf32> to vector<6xf32>
    %833 = vector.shape_cast %832 : vector<6xf32> to vector<6x1xf32>
    %834 = vector.broadcast %833 : vector<6x1xf32> to vector<6x4xf32>
    %835 = arith.subf %831, %834 : vector<6x4xf32>
    %836 = math.exp %835 : vector<6x4xf32>
    %cst_301 = arith.constant dense<0.000000e+00> : vector<6xf32>
    %837 = vector.multi_reduction <add>, %836, %cst_301 [1] : vector<6x4xf32> to vector<6xf32>
    %838 = vector.shape_cast %837 : vector<6xf32> to vector<6x1xf32>
    %cst_302 = arith.constant 9.99999971E-10 : f32
    %839 = vector.broadcast %cst_302 : f32 to vector<6x1xf32>
    %840 = arith.addf %838, %839 : vector<6x1xf32>
    %841 = tpu.reciprocal %840 {approx = true} : vector<6x1xf32> -> vector<6x1xf32>
    %842 = vector.broadcast %841 : vector<6x1xf32> to vector<6x4xf32>
    %843 = arith.mulf %836, %842 : vector<6x4xf32>
    %cst_303 = arith.constant dense<0.000000e+00> : vector<6x16xf32>
    %844 = tpu.matmul %843, %826, %cst_303 {dimension_numbers = #tpu.dot_dimension_numbers<[1], [0], [0], [1], [0, 0, 1, 1], [], []>} : vector<6x4xf32>, vector<4x16xf32>, vector<6x16xf32> -> vector<6x16xf32>
    %845 = tpu.concatenate %781, %802, %823, %844 in 1 : vector<6x16xf32>, vector<6x16xf32>, vector<6x16xf32>, vector<6x16xf32> -> vector<6x64xf32>
    %cst_304 = arith.constant dense<0.000000e+00> : vector<6x64xf32>
    %846 = tpu.matmul %845, %753, %cst_304 {dimension_numbers = #tpu.dot_dimension_numbers<[1], [0], [0], [1], [0, 0, 1, 1], [], []>} : vector<6x64xf32>, vector<64x64xf32>, vector<6x64xf32> -> vector<6x64xf32>
    %847 = vector.broadcast %754 : vector<1x64xf32> to vector<6x64xf32>
    %848 = arith.addf %846, %847 : vector<6x64xf32>
    %849 = arith.addf %728, %848 : vector<6x64xf32>
    %c928 = arith.constant 928 : index
    %c0_305 = arith.constant 0 : index
    %850 = vector.load %arg8[%c928, %c0_305] : memref<976x64xf32, #tpu.memory_space<vmem>>, vector<1x64xf32>
    %c936 = arith.constant 936 : index
    %c0_306 = arith.constant 0 : index
    %851 = vector.load %arg8[%c936, %c0_306] : memref<976x64xf32, #tpu.memory_space<vmem>>, vector<1x64xf32>
    %cst_307 = arith.constant dense<0.000000e+00> : vector<6xf32>
    %852 = vector.multi_reduction <add>, %849, %cst_307 [1] : vector<6x64xf32> to vector<6xf32>
    %853 = vector.shape_cast %852 : vector<6xf32> to vector<6x1xf32>
    %cst_308 = arith.constant 6.400000e+01 : f32
    %854 = vector.broadcast %cst_308 : f32 to vector<6x1xf32>
    %855 = arith.divf %853, %854 : vector<6x1xf32>
    %856 = vector.broadcast %855 : vector<6x1xf32> to vector<6x64xf32>
    %857 = arith.subf %849, %856 : vector<6x64xf32>
    %858 = arith.mulf %857, %857 : vector<6x64xf32>
    %cst_309 = arith.constant dense<0.000000e+00> : vector<6xf32>
    %859 = vector.multi_reduction <add>, %858, %cst_309 [1] : vector<6x64xf32> to vector<6xf32>
    %860 = vector.shape_cast %859 : vector<6xf32> to vector<6x1xf32>
    %cst_310 = arith.constant 6.400000e+01 : f32
    %861 = vector.broadcast %cst_310 : f32 to vector<6x1xf32>
    %862 = arith.divf %860, %861 : vector<6x1xf32>
    %cst_311 = arith.constant 9.99999997E-7 : f32
    %863 = vector.broadcast %cst_311 : f32 to vector<6x1xf32>
    %864 = arith.addf %862, %863 : vector<6x1xf32>
    %865 = math.rsqrt %864 : vector<6x1xf32>
    %866 = vector.broadcast %865 : vector<6x1xf32> to vector<6x64xf32>
    %867 = arith.mulf %857, %866 : vector<6x64xf32>
    %868 = vector.broadcast %850 : vector<1x64xf32> to vector<6x64xf32>
    %869 = arith.mulf %867, %868 : vector<6x64xf32>
    %870 = vector.broadcast %851 : vector<1x64xf32> to vector<6x64xf32>
    %871 = arith.addf %869, %870 : vector<6x64xf32>
    %c144_312 = arith.constant 144 : index
    %c0_313 = arith.constant 0 : index
    %872 = vector.load %arg9[%c144_312, %c0_313] : memref<216x128xf32, #tpu.memory_space<vmem>>, vector<64x128xf32>
    %c208_314 = arith.constant 208 : index
    %c0_315 = arith.constant 0 : index
    %873 = vector.load %arg9[%c208_314, %c0_315] : memref<216x128xf32, #tpu.memory_space<vmem>>, vector<1x128xf32>
    %c744 = arith.constant 744 : index
    %c0_316 = arith.constant 0 : index
    %874 = vector.load %arg8[%c744, %c0_316] : memref<976x64xf32, #tpu.memory_space<vmem>>, vector<128x64xf32>
    %c872 = arith.constant 872 : index
    %c0_317 = arith.constant 0 : index
    %875 = vector.load %arg8[%c872, %c0_317] : memref<976x64xf32, #tpu.memory_space<vmem>>, vector<1x64xf32>
    %cst_318 = arith.constant dense<0.000000e+00> : vector<6x128xf32>
    %876 = tpu.matmul %871, %872, %cst_318 {dimension_numbers = #tpu.dot_dimension_numbers<[1], [0], [0], [1], [0, 0, 1, 1], [], []>} : vector<6x64xf32>, vector<64x128xf32>, vector<6x128xf32> -> vector<6x128xf32>
    %877 = vector.broadcast %873 : vector<1x128xf32> to vector<6x128xf32>
    %878 = arith.addf %876, %877 : vector<6x128xf32>
    %cst_319 = arith.constant 0.000000e+00 : f32
    %879 = vector.broadcast %cst_319 : f32 to vector<6x128xf32>
    %880 = arith.maximumf %878, %879 : vector<6x128xf32>
    %cst_320 = arith.constant dense<0.000000e+00> : vector<6x64xf32>
    %881 = tpu.matmul %880, %874, %cst_320 {dimension_numbers = #tpu.dot_dimension_numbers<[1], [0], [0], [1], [0, 0, 1, 1], [], []>} : vector<6x128xf32>, vector<128x64xf32>, vector<6x64xf32> -> vector<6x64xf32>
    %882 = vector.broadcast %875 : vector<1x64xf32> to vector<6x64xf32>
    %883 = arith.addf %881, %882 : vector<6x64xf32>
    %884 = arith.addf %849, %883 : vector<6x64xf32>
    %c944 = arith.constant 944 : index
    %c0_321 = arith.constant 0 : index
    %885 = vector.load %arg8[%c944, %c0_321] : memref<976x64xf32, #tpu.memory_space<vmem>>, vector<1x64xf32>
    %c952 = arith.constant 952 : index
    %c0_322 = arith.constant 0 : index
    %886 = vector.load %arg8[%c952, %c0_322] : memref<976x64xf32, #tpu.memory_space<vmem>>, vector<1x64xf32>
    %cst_323 = arith.constant dense<0.000000e+00> : vector<6xf32>
    %887 = vector.multi_reduction <add>, %884, %cst_323 [1] : vector<6x64xf32> to vector<6xf32>
    %888 = vector.shape_cast %887 : vector<6xf32> to vector<6x1xf32>
    %cst_324 = arith.constant 6.400000e+01 : f32
    %889 = vector.broadcast %cst_324 : f32 to vector<6x1xf32>
    %890 = arith.divf %888, %889 : vector<6x1xf32>
    %891 = vector.broadcast %890 : vector<6x1xf32> to vector<6x64xf32>
    %892 = arith.subf %884, %891 : vector<6x64xf32>
    %893 = arith.mulf %892, %892 : vector<6x64xf32>
    %cst_325 = arith.constant dense<0.000000e+00> : vector<6xf32>
    %894 = vector.multi_reduction <add>, %893, %cst_325 [1] : vector<6x64xf32> to vector<6xf32>
    %895 = vector.shape_cast %894 : vector<6xf32> to vector<6x1xf32>
    %cst_326 = arith.constant 6.400000e+01 : f32
    %896 = vector.broadcast %cst_326 : f32 to vector<6x1xf32>
    %897 = arith.divf %895, %896 : vector<6x1xf32>
    %cst_327 = arith.constant 9.99999997E-7 : f32
    %898 = vector.broadcast %cst_327 : f32 to vector<6x1xf32>
    %899 = arith.addf %897, %898 : vector<6x1xf32>
    %900 = math.rsqrt %899 : vector<6x1xf32>
    %901 = vector.broadcast %900 : vector<6x1xf32> to vector<6x64xf32>
    %902 = arith.mulf %892, %901 : vector<6x64xf32>
    %903 = vector.broadcast %885 : vector<1x64xf32> to vector<6x64xf32>
    %904 = arith.mulf %902, %903 : vector<6x64xf32>
    %905 = vector.broadcast %886 : vector<1x64xf32> to vector<6x64xf32>
    %906 = arith.addf %904, %905 : vector<6x64xf32>
    %c0_328 = arith.constant 0 : index
    %c0_329 = arith.constant 0 : index
    %907 = vector.load %arg9[%c0_328, %c0_329] : memref<216x128xf32, #tpu.memory_space<vmem>>, vector<64x128xf32>
    %cst_330 = arith.constant dense<0.000000e+00> : vector<6x128xf32>
    %908 = tpu.matmul %906, %907, %cst_330 {dimension_numbers = #tpu.dot_dimension_numbers<[1], [0], [0], [1], [0, 0, 1, 1], [], []>} : vector<6x64xf32>, vector<64x128xf32>, vector<6x128xf32> -> vector<6x128xf32>
    %c64_331 = arith.constant 64 : index
    %c0_332 = arith.constant 0 : index
    %909 = vector.load %arg9[%c64_331, %c0_332] : memref<216x128xf32, #tpu.memory_space<vmem>>, vector<1x128xf32>
    %910 = vector.broadcast %909 : vector<1x128xf32> to vector<6x128xf32>
    %911 = arith.addf %908, %910 : vector<6x128xf32>
    %912 = arith.addf %911, %19 : vector<6x128xf32>
    %c0_333 = arith.constant 0 : index
    %c0_334 = arith.constant 0 : index
    %c0_335 = arith.constant 0 : index
    %913 = vector.load %arg11[%c0_333, %c0_334, %c0_335] : memref<1x6x128xf32, #tpu.memory_space<vmem>>, vector<1x6x128xf32>
    %914 = vector.shape_cast %913 : vector<1x6x128xf32> to vector<6x128xf32>
    %915 = vector.shape_cast %912 : vector<6x128xf32> to vector<1x6x128xf32>
    tpu.vector_store %arg11[%c0_333, %c0_334, %c0_335], %915 {strides = array<i32>} : memref<1x6x128xf32, #tpu.memory_space<vmem>>, vector<1x6x128xf32>,
    return
  }
  func.func @transform_0(%arg0: i32) -> (i32, i32, i32) {
    %c0_i32 = arith.constant 0 : i32
    %c0_i32_0 = arith.constant 0 : i32
    %c0_i32_1 = arith.constant 0 : i32
    return %arg0, %c0_i32, %c0_i32_0 : i32, i32, i32
  }
  func.func @transform_1(%arg0: i32) -> (i32, i32, i32) {
    %c0_i32 = arith.constant 0 : i32
    %c0_i32_0 = arith.constant 0 : i32
    %c0_i32_1 = arith.constant 0 : i32
    return %arg0, %c0_i32, %c0_i32_0 : i32, i32, i32
  }
  func.func @transform_2(%arg0: i32) -> (i32, i32, i32) {
    %c0_i32 = arith.constant 0 : i32
    %c0_i32_0 = arith.constant 0 : i32
    %c0_i32_1 = arith.constant 0 : i32
    return %arg0, %c0_i32, %c0_i32_0 : i32, i32, i32
  }
  func.func @transform_3(%arg0: i32) -> (i32, i32, i32) {
    %c0_i32 = arith.constant 0 : i32
    %c0_i32_0 = arith.constant 0 : i32
    %c0_i32_1 = arith.constant 0 : i32
    return %arg0, %c0_i32, %c0_i32_0 : i32, i32, i32
  }
  func.func @transform_4(%arg0: i32) -> (i32, i32, i32) {
    %c0_i32 = arith.constant 0 : i32
    %c0_i32_0 = arith.constant 0 : i32
    %c0_i32_1 = arith.constant 0 : i32
    return %arg0, %c0_i32, %c0_i32_0 : i32, i32, i32
  }
  func.func @transform_5(%arg0: i32) -> (i32, i32, i32) {
    %c0_i32 = arith.constant 0 : i32
    %c0_i32_0 = arith.constant 0 : i32
    %c0_i32_1 = arith.constant 0 : i32
    return %arg0, %c0_i32, %c0_i32_0 : i32, i32, i32
  }
  func.func @transform_6(%arg0: i32) -> (i32, i32, i32) {
    %c0_i32 = arith.constant 0 : i32
    %c0_i32_0 = arith.constant 0 : i32
    %c0_i32_1 = arith.constant 0 : i32
    return %arg0, %c0_i32, %c0_i32_0 : i32, i32, i32
  }
  func.func @transform_7(%arg0: i32) -> (i32, i32) {
    %c0_i32 = arith.constant 0 : i32
    %c0_i32_0 = arith.constant 0 : i32
    %c0_i32_1 = arith.constant 0 : i32
    return %c0_i32, %c0_i32_0 : i32, i32
  }
  func.func @transform_8(%arg0: i32) -> (i32, i32) {
    %c0_i32 = arith.constant 0 : i32
    %c0_i32_0 = arith.constant 0 : i32
    %c0_i32_1 = arith.constant 0 : i32
    return %c0_i32, %c0_i32_0 : i32, i32
  }
  func.func @transform_9(%arg0: i32) -> (i32, i32) {
    %c0_i32 = arith.constant 0 : i32
    %c0_i32_0 = arith.constant 0 : i32
    %c0_i32_1 = arith.constant 0 : i32
    return %c0_i32, %c0_i32_0 : i32, i32
  }
  func.func @transform_10(%arg0: i32) -> (i32, i32, i32) {
    %c0_i32 = arith.constant 0 : i32
    %c0_i32_0 = arith.constant 0 : i32
    %c0_i32_1 = arith.constant 0 : i32
    return %arg0, %c0_i32, %c0_i32_0 : i32, i32, i32
  }
}

</mosaic_0001>

<bundles_post_ra>
// kernel: individual_tf_forward.1
= control target key start
LH: loop header
LB: loop body
LE: loop exit
PB: predicated region body
PF: predicated region fallthrough
CT: control target
= control target key end

     0   :  { %s4041_s13 = smov 0   ;;  %s5425_s0 = inlined_call_operand.vmem [shape: f32[2,8,4], index: 0, kind: input, shape index: {}]   ;;  %s5426_s1 = inlined_call_operand.vmem [shape: f32[2,4,8], index: 1, kind: input, shape index: {}]   ;;  %s5427_s2 = inlined_call_operand.vmem [shape: f32[2,4,14], index: 2, kind: input, shape index: {}]   ;;  %s5428_s3 = inlined_call_operand.vmem [shape: f32[2,4,14], index: 3, kind: input, shape index: {}]   ;;  %s5429_s4 = inlined_call_operand.vmem [shape: f32[2,6,3], index: 4, kind: input, shape index: {}]   ;;  %s5430_s5 = inlined_call_operand.vmem [shape: f32[2,6,128], index: 5, kind: input, shape index: {}]   ;;  %s5431_s6 = inlined_call_operand.vmem [shape: f32[2,4,8], index: 6, kind: input, shape index: {}]   ;;  %s5432_s7 = inlined_call_operand.vmem [shape: f32[976,64], index: 7, kind: input, shape index: {}]   ;;  %s5433_s8 = inlined_call_operand.vmem [shape: f32[216,128], index: 8, kind: input, shape index: {}]   ;;  %s5434_s9 = inlined_call_operand.vmem [shape: f32[432,192], index: 9, kind: input, shape index: {}]   ;;  %s5435_s10 = inlined_call_operand.vmem [shape: f32[2,6,128], index: 10, kind: output, shape index: {}]  }
   0x1 LB: > { %s3655_s14 = sadd.s32 4294967295, %s3975_s13   ;;  %p3659_p0 = scmp.ge.s32.totalorder %s3975_s13, 1  ;;  %s3975_s13 = sphi %s4041_s13, %s20_s13  }
   0x2   : > { %p365_p1 = scmp.lt.s32.totalorder %s3975_s13, 3 }
   0x4   : > { %p366_p2 = pnand %p3659_p0, %p365_p1 }
   0x5   : > { %p425_p3 = scmp.lt.s32.totalorder (!%p366_p2), %s3655_s14, 1  ;;  %s3979_s16 = smov (!%p366_p2), 112  }
   0x6   : > { %369 = sbr.rel (%p366_p2) target bundleno = 8763 (0x223b), region = 60  ;;  %s3980_s18 = smov (!%p366_p2), 64  }
   0x7   : > { %s3983_s21 = smov (!%p366_p2), 80   ;;  %s3984_s22 = smov (!%p366_p2), 96  }
   0xb   : > { %v474_v0 = vld [vmem:[%s5432_s7] sm:$0xf]  ;;  %vm481_vm0 = vcmask 1043456   ;;  %s5437_s14 = smov (!%p425_p3, %s3655_s14), 1  ;;  %vm477_vm1 = vcmask 31744   ;;  %vm631_vm2 = vcmask 523264  }
   0xc   : > { %3668 = vmatpush.msk.msra.mxu0 %vm481_vm0, %v474_v0  ;;  %s4056_s17 = sshll.u32 %s5437_s14, 3  ;;  %v3815_v2 = vld [vmem:[%s5432_s7 + $0x8] ss:$0 sm:$0xff]  ;;  %v463_v5 = vld [vmem:[%s5432_s7 + $0x3c0] sm:$0xff]  ;;  %v3977_v9 = vmov 64.0   ;;  %vm514_vm4 = vcmask 1042432  }
   0xd   : > { %s428_s20 = scalar_lea.vmem %s5425_s0, %s4056_s17  ;;  %3851 = vrcp.f32 %v3977_v9  ;;  %v507_v21 = vld [vmem:[%s5432_s7 + $0x10] sm:$0x7]  ;;  %s444_s29 = scalar_lea.vmem %s5429_s4, %s4056_s17  ;;  %v568_v22 = vld [vmem:[%s5432_s7 + $0x38] sm:$0x3f]  ;;  %vm575_vm5 = vcmask 1045504   ;;  %vm510_vm6 = vcmask 23552  }
   0xe   : > { %v465_v1 = vld [vmem:[%s428_s20] sm:$0xff]  ;;  %3670 = vmatpush.msk.msra.mxu1 %vm514_vm4, %v507_v21  ;;  %v567_v25 = vld [vmem:[%s5432_s7 + $0x30] sm:$0xff]  ;;  %v680_v27 = vld [vmem:[%s5434_s9 + $0x78] sm:$0xff]  ;;  %s4106_s23 = sshll.u32 %s5437_s14, 2  ;;  %vm543_vm7 = vcmask 64512   ;;  %vm571_vm8 = vcmask 113664   ;;  %s456_s11 = scalar_lea.vmem %s5435_s10, %s4056_s17 }
   0xf   : > { %3669 = vmatmul.msk.f32.vlgmr.msra.gmra.mxu0 %vm477_vm1, %v465_v1  ;;  %v469_v23 = vld [vmem:[%s444_s29] sm:$0x3f]  ;;  %v679_v26 = vld [vmem:[%s5434_s9 + $0x70] sm:$0xff]  ;;  %v678_v29 = vld [vmem:[%s5434_s9 + $0x68] sm:$0xff]  ;;  %s432_s15 = scalar_lea.vmem %s5426_s1, %s4106_s23  ;;  %s436_s19 = scalar_lea.vmem %s5427_s2, %s4106_s23  ;;  %vm743_vm12 = vcmask 130048   ;;  %vm1024_vm14 = vcmask 261120  }
  0x10   : > { %3673 = vmatpush.msk.msrb.mxu1 %vm575_vm5, %v568_v22  ;;  %v540_v24 = vld [vmem:[%s5432_s7 + $0x20] sm:$0xff]  ;;  %v675_v30 = vld [vmem:[%s5434_s9 + $0x50] sm:$0xff]  ;;  %v676_v31 = vld [vmem:[%s5434_s9 + $0x58] sm:$0xff]  ;;  %s3982_s20 = smov 48   ;;  %s452_s24 = scalar_lea.vmem %s5431_s6, %s4106_s23  ;;  %vm1026_vm15 = vcmask 392192  }
  0x11   : > { %3671 = vmatmul.msk.f32.vlgmr.msra.gmra.mxu1 %vm510_vm6, %v469_v23  ;;  %562 = vmatpush.msra.mxu2 %v540_v24  ;;  %v677_v28 = vld [vmem:[%s5434_s9 + $0x60] sm:$0xff]  ;;  %v674_v33 = vld [vmem:[%s5434_s9 + $0x48] sm:$0xff]  ;;  %v671_v36 = vld [vmem:[%s5434_s9 + $0x30] sm:$0xff]  ;;  %s440_s27 = scalar_lea.vmem %s5428_s3, %s4106_s23 }
  0x12   : > { %594 = vmatpush.msrb.mxu1 %v567_v25  ;;  %v673_v32 = vld [vmem:[%s5434_s9 + $0x40] sm:$0xff]  ;;  %v672_v37 = vld [vmem:[%s5434_s9 + $0x38] sm:$0xff]  ;;  %v670_v39 = vld [vmem:[%s5434_s9 + $0x28] sm:$0xff] }
  0x13   : > { %v3852_v10 = vpop.eup %3851  ;;  %728 = vmatpush.msrb.mxu2 %v680_v27  ;;  %v466_v34 = vld [vmem:[%s432_s15] sm:$0xf]  ;;  %v667_v40 = vld [vmem:[%s5434_s9 + $0x10] sm:$0xff]  ;;  %v668_v41 = vld [vmem:[%s5434_s9 + $0x18] sm:$0xff]  ;;  %s3978_s15 = smov 16  }
  0x14   : > { %v636_v11 = vmul.f32 64.0, %v3852_v10  ;;  %vm640_vm3 = vweird.f32 %v3852_v10  ;;  %708 = vmatpush.msra.mxu1 %v679_v26  ;;  %v467_v35 = vld [vmem:[%s436_s19] sm:$0xf]  ;;  %3672 = vmatmul.msk.f32.vlgmr.msra.gmra.mxu2 %vm543_vm7, %v466_v34  ;;  %v666_v43 = vld [vmem:[%s5434_s9 + $0x8] sm:$0xff]  ;;  %v600_v59 = vld [vmem:[%s5432_s7 + $0x50] sm:$0x3f] }
  0x15   : > { %729 = vmatpush.msrb.mxu2 %v678_v29  ;;  %v669_v38 = vld [vmem:[%s5434_s9 + $0x20] sm:$0xff]  ;;  %v3817_v56 = vld [vmem:[%s5432_s7 + $0x1c8] ss:$0 sm:$0xff]  ;;  %3675 = vmatpush.msk.msrb.mxu0 %vm575_vm5, %v600_v59  ;;  %s3981_s19 = smov 32   ;;  %v4234_v21 = vld [vmem:[%s5434_s9 + $0xb0] sm:$0xff] }
  0x16   : > { %v637_v12 = vsub.f32 1.0, %v636_v11  ;;  %709 = vmatpush.msra.mxu1 %v677_v28  ;;  %v665_v42 = vld [vmem:[%s5434_s9] sm:$0xff]  ;;  %v599_v60 = vld [vmem:[%s5432_s7 + $0x48] sm:$0xff]  ;;  %v4252_v25 = vld [vmem:[%s5434_s9 + $0x90] sm:$0xff]  ;;  %v3985_v27 = vmov -1e+09  }
  0x17   : > { %730 = vmatpush.msrb.mxu2 %v676_v31  ;;  %v3816_v53 = vld [vmem:[%s5432_s7 + $0x1c0] ss:$0 sm:$0xff]  ;;  %624 = vmatpush.msrb.mxu0 %v599_v60  ;;  %v3820_v23 = vld [vmem:[%s5432_s7 + $0x28] ss:$0 sm:$0xff] }
  0x18   : > { %v638_v13 = vmul.f32 %v3852_v10, %v637_v12  ;;  %710 = vmatpush.msra.mxu1 %v675_v30  ;;  %v3677_v63 = vld [vmem:[%s5434_s9 + $0x80] ss:$8 sm:$0x3] }
  0x19   : > { %731 = vmatpush.msrb.mxu2 %v674_v33  ;;  %3674 = vmatmul.msk.f32.vlgmr.msrb.gmra.mxu1 %vm571_vm8, %v467_v35  ;;  %v693_v1 = vperm.slane %v3677_v63, 0  ;;  %v4240_v22 = vld [vmem:[%s5434_s9 + $0xa0] sm:$0xff] }
  0x1a   : > { %v639_v14 = vadd.f32 %v3852_v10, %v638_v13  ;;  %711 = vmatpush.msra.mxu1 %v673_v32  ;;  %v4202_v13 = vld [vmem:[%s5434_s9 + $0x100] sm:$0xff] }
  0x1b   : > { %732 = vmatpush.msrb.mxu2 %v672_v37  ;;  %v471_v26 = vld [vmem:[%s452_s24] sm:$0xf] }
  0x1c   : > { %v4073_v15 = vsel %vm640_vm3, %v3852_v10, %v639_v14  ;;  %712 = vmatpush.msra.mxu1 %v671_v36  ;;  %v4208_v14 = vld [vmem:[%s5434_s9 + $0xf0] sm:$0xff]  ;;  %vm472_vm13 = vcmp.gt.f32.partialorder %v471_v26, 0.0 }
  0x1d   : > { %733 = vmatpush.msrb.mxu2 %v670_v39  ;;  %v4262_v28 = vsel %vm472_vm13, 0.0, %v3985_v27 }
  0x1e   : > { %713 = vmatpush.msra.mxu1 %v669_v38  ;;  %v4265_v29 = vperm.slane %v4262_v28, 0 }
  0x1f   : > { %734 = vmatpush.msrb.mxu2 %v668_v41 }
  0x20   : > { %714 = vmatpush.msra.mxu1 %v667_v40 }
  0x21   : > { %735 = vmatpush.msrb.mxu2 %v666_v43 }
  0x22   : > { %715 = vmatpush.msra.mxu1 %v665_v42 }
  0x8c   : > { %v502_v3 = vpop.f32.mrf.mxu0 }
  0x8d   : > { %v503_v4 = vadd.f32 %v3815_v2, %v502_v3 }
  0x8e   : > { %v4177_v61 = vpop.f32.mrf.mxu1 }
  0x8f   : > { %v505_v6 = vmul.f32 8.0, %v503_v4  ;;  %v694_v4 = vperm.slane %v3677_v63, 1 }
  0x91   : > { %v4069_v7 = vadd.f32 %v505_v6, %v463_v5 }
  0x93   : > { %v632_v8 = vsel %vm631_vm2, %v4069_v7, 0.0 }
  0x94   : > { %633 = vadd.xlane.f32.xlu0 %v632_v8 }
  0x96   : > { %v4179_v62 = vpop.f32.mrf.mxu1 }
  0x97   : > { %v564_v0 = vpop.f32.mrf.mxu2 }
  0x98   : > { %v4247_v24 = vadd.f32 %v3820_v23, %v564_v0 }
 0x107   : > { %v634_v16 = vpop.xlane.xlu0 %633 }
 0x108   : > { %v642_v17 = vmul.f32 %v4073_v15, %v634_v16  ;;  %v4214_v16 = vld [vmem:[%s5434_s9 + $0xe0] sm:$0xff] }
 0x10a   : > { %v4077_v18 = vsub.f32 %v4069_v7, %v642_v17 }
 0x10c   : > { %v644_v19 = vmul.f32 %v4077_v18, %v4077_v18 }
 0x10e   : > { %v645_v20 = vsel %vm631_vm2, %v644_v19, 0.0  ;;  %v4227_v19 = vld [vmem:[%s5434_s9 + $0xc0] sm:$0xff] }
 0x10f   : > { %646 = vadd.xlane.f32.xlu0 %v645_v20 }
 0x182   : > { %v647_v44 = vpop.xlane.xlu0 %646 }
 0x183   : > { %v648_v45 = vmul.f32 %v647_v44, %v4073_v15 }
 0x185   : > { %v649_v46 = vadd.f32 1e-06, %v648_v45 }
 0x187   : > { %3853 = vrsqrt.f32 %v649_v46  ;;  %vm656_vm10 = vweird.f32 %v649_v46 }
 0x18d   : > { %v3854_v47 = vpop.eup %3853 }
 0x18e   : > { %v651_v48 = vmul.f32 %v3854_v47, %v649_v46  ;;  %vm657_vm9 = vweird.f32 %v3854_v47 }
 0x18f   : > { %vm658_vm11 = vmor %vm656_vm10, %vm657_vm9 }
 0x190   : > { %v652_v49 = vmul.f32 %v3854_v47, %v651_v48 }
 0x192   : > { %v653_v50 = vmul.f32 0.5, %v652_v49 }
 0x194   : > { %v654_v51 = vsub.f32 1.5, %v653_v50 }
 0x196   : > { %v655_v52 = vmul.f32 %v3854_v47, %v654_v51 }
 0x198   : > { %v659_v54 = vsel %vm658_vm11, %v3854_v47, %v655_v52  ;;  %vm2068_vm11 = vcmask 521216  }
 0x199   : > { %v660_v55 = vmul.f32 %v659_v54, %v4077_v18  ;;  %v4220_v18 = vld [vmem:[%s5434_s9 + $0xd0] sm:$0xff] }
 0x19b   : > { %v662_v57 = vmul.f32 %v3816_v53, %v660_v55 }
 0x19d   : > { %v664_v58 = vadd.f32 %v3817_v56, %v662_v57 }
 0x19f   : > { %3678 = vmatmul.msk.f32.vlgmr.msra.gmra.mxu1 %vm631_vm2, %v664_v58  ;;  %3679 = vmatmul.msk.f32.vlgmr.msrb.gmra.mxu2 %vm631_vm2, %v664_v58 }
 0x21c   : > { %v717_v2 = vpop.f32.mrf.mxu1 }
 0x21d   : > { %v718_v3 = vadd.f32 %v717_v2, %v693_v1 }
 0x21f   : > { %945 = vrot.lane.b32.xlu0 %v718_v3, %s3978_s15  ;;  %806 = vrot.lane.b32.xlu2 %v718_v3, %s3979_s16 }
 0x220   : > { %741 = vrot.lane.b32.xlu1 %v718_v3, %s3980_s18 }
 0x222   : > { %v737_v5 = vpop.f32.mrf.mxu2 }
 0x223   : > { %v4187_v6 = vadd.f32 %v737_v5, %v694_v4  ;;  %v468_v4 = vld [vmem:[%s440_s27] sm:$0xf] }
 0x224   : > { %3676 = vmatmul.msk.f32.vlgmr.msrb.gmra.mxu0 %vm571_vm8, %v468_v4 }
 0x225   : > { %801 = vmatpush.msra.mxu0 %v4187_v6 }
 0x227   : > { %877 = vrot.lane.b32.xlu2 %v718_v3, %s3981_s19 }
 0x228   : > { %808 = vrot.lane.b32.xlu1 %v718_v3, %s3982_s20 }
 0x22f   : > { %943 = vrot.lane.b32.xlu2 %v718_v3, %s3983_s21 }
 0x230   : > { %875 = vrot.lane.b32.xlu1 %v718_v3, %s3984_s22 }
 0x279   : > { %v807_v8 = vpop.permute.xlu2 %806 }
 0x281   : > { %v878_v9 = vpop.permute.xlu2 %877 }
 0x282   : > { %3686 = vmatpush.xpose.msk.msrb.mxu1 %vm743_vm12, %v878_v9 }
 0x289   : > { %v944_v20 = vpop.permute.xlu2 %943 }
 0x291   : > { %v946_v12 = vpop.permute.xlu0 %945 }
 0x292   : > { %v742_v10 = vpop.permute.xlu1 %741 }
 0x293   : > { %3680 = vmatpush.xpose.msk.msra.mxu2 %vm743_vm12, %v742_v10 }
 0x296   : > { %3681 = vmatmul.msk.f32.vlgmr.msra.gmra.mxu2 %vm743_vm12, %v718_v3 }
 0x29a   : > { %v809_v11 = vpop.permute.xlu1 %808 }
 0x29b   : > { %3683 = vmatpush.xpose.msk.msra.mxu3 %vm743_vm12, %v809_v11 }
 0x29e   : > { %3684 = vmatmul.msk.f32.vlgmr.msra.gmra.mxu3 %vm743_vm12, %v807_v8 }
 0x29f   : > { %3689 = vmatpush.xpose.msk.msrb.mxu3 %vm743_vm12, %v946_v12 }
 0x2a2   : > { %v876_v17 = vpop.permute.xlu1 %875 }
 0x2a3   : > { %1147 = vmatpush.msra.mxu3 %v4202_v13  ;;  %3687 = vmatmul.msk.f32.vlgmr.msrb.gmra.mxu1 %vm743_vm12, %v876_v17 }
 0x2a5   : > { %1148 = vmatpush.msra.mxu3 %v4208_v14 }
 0x2a6   : > { %3690 = vmatmul.msk.f32.vlgmr.msrb.gmra.mxu3 %vm743_vm12, %v944_v20 }
 0x2a7   : > { %1149 = vmatpush.msra.mxu3 %v4214_v16 }
 0x2a9   : > { %1150 = vmatpush.msra.mxu3 %v4220_v18 }
 0x2ab   : > { %1151 = vmatpush.msra.mxu3 %v4227_v19 }
 0x2ad   : > { %1152 = vmatpush.msra.mxu3 %v4234_v21 }
 0x2af   : > { %1153 = vmatpush.msra.mxu3 %v4240_v22 }
 0x2b1   : > { %1154 = vmatpush.msra.mxu3 %v4252_v25 }
 0x2b2   : > { %3695 = vmatmul.msk.f32.vlgmr.msra.gmra.mxu3 %vm631_vm2, %v4247_v24 }
 0x319   : > { %v765_v30 = vpop.f32.mrf.mxu2 }
 0x31a   : > { %v768_v31 = vmul.f32 0.25, %v765_v30 }
 0x31c   : > { %v770_v32 = vadd.f32 %v4265_v29, %v768_v31 }
 0x31e   : > { %v771_v33 = vsel %vm543_vm7, %v770_v32, -inf }
 0x31f   : > { %772 = vmax.xlane.f32.xlu1 %v771_v33 }
 0x320   : > { %v900_v34 = vpop.f32.mrf.mxu1 }
 0x321   : > { %v903_v35 = vmul.f32 0.25, %v900_v34  ;;  %v831_v36 = vpop.f32.mrf.mxu3 }
 0x322   : > { %v834_v37 = vmul.f32 0.25, %v831_v36 }
 0x323   : > { %v904_v38 = vadd.f32 %v903_v35, %v4265_v29  ;;  %v1094_v35 = vld [vmem:[%s5434_s9 + $0xf8] sm:$0xff] }
 0x324   : > { %v835_v39 = vadd.f32 %v834_v37, %v4265_v29  ;;  %v1092_v37 = vld [vmem:[%s5434_s9 + $0xe8] sm:$0xff] }
 0x325   : > { %v905_v40 = vsel %vm543_vm7, %v904_v38, -inf }
 0x326   : > { %906 = vmax.xlane.f32.xlu0 %v905_v40  ;;  %v836_v41 = vsel %vm543_vm7, %v835_v39, -inf }
 0x327   : > { %837 = vmax.xlane.f32.xlu2 %v836_v41  ;;  %v1090_v41 = vld [vmem:[%s5434_s9 + $0xd8] sm:$0xff] }
 0x329   : > { %v968_v42 = vpop.f32.mrf.mxu3 }
 0x32a   : > { %v971_v43 = vmul.f32 0.25, %v968_v42  ;;  %v1088_v42 = vld [vmem:[%s5434_s9 + $0xc8] sm:$0xff] }
 0x32c   : > { %v972_v44 = vadd.f32 %v971_v43, %v4265_v29  ;;  %v1086_v43 = vld [vmem:[%s5434_s9 + $0xb8] sm:$0xff] }
 0x32e   : > { %v973_v45 = vsel %vm543_vm7, %v972_v44, -inf }
 0x32f   : > { %974 = vmax.xlane.f32.xlu2 %v973_v45 }
 0x392   : > { %v773_v46 = vpop.xlane.xlu1 %772 }
 0x393   : > { %v774_v51 = vsub.f32 %v770_v32, %v773_v46  ;;  %v1096_v32 = vld [vmem:[%s5434_s9 + $0x108] sm:$0xff] }
 0x395   : > { %v775_v54 = vmul.f32 1.442695, %v774_v51  ;;  %v688_v51 = vld [vmem:[%s5432_s7 + $0x88] sm:$0xff] }
 0x399   : > { %v907_v47 = vpop.xlane.xlu0 %906 }
 0x39a   : > { %v908_v48 = vsub.f32 %v904_v38, %v907_v47  ;;  %v838_v49 = vpop.xlane.xlu2 %837 }
 0x39b   : > { %v839_v50 = vsub.f32 %v835_v39, %v838_v49  ;;  %v690_v49 = vld [vmem:[%s5432_s7 + $0x98] sm:$0xff] }
 0x39c   : > { %v909_v52 = vmul.f32 1.442695, %v908_v48  ;;  %1040 = vmatpush.msra.mxu1 %v690_v49  ;;  %v1208_v49 = vperm.slane %v4262_v28, 1 }
 0x39d   : > { %v840_v53 = vmul.f32 1.442695, %v839_v50  ;;  %v689_v50 = vld [vmem:[%s5432_s7 + $0x90] sm:$0xff] }
 0x39e   : > { %3855 = vpow2.f32 %v909_v52  ;;  %1041 = vmatpush.msra.mxu1 %v689_v50  ;;  %v687_v52 = vld [vmem:[%s5432_s7 + $0x80] sm:$0xff] }
 0x39f   : > { %3857 = vpow2.f32 %v840_v53  ;;  %v686_v53 = vld [vmem:[%s5432_s7 + $0x78] sm:$0xff] }
 0x3a0   : > { %3859 = vpow2.f32 %v775_v54  ;;  %1042 = vmatpush.msra.mxu1 %v688_v51  ;;  %v685_v54 = vld [vmem:[%s5432_s7 + $0x70] sm:$0xff] }
 0x3a2   : > { %v975_v55 = vpop.xlane.xlu2 %974  ;;  %1043 = vmatpush.msra.mxu1 %v687_v52  ;;  %v4458_v52 = vld [vmem:[%s5434_s9 + $0x120] sm:$0xff] }
 0x3a3   : > { %v976_v56 = vsub.f32 %v972_v44, %v975_v55  ;;  %v1082_v44 = vld [vmem:[%s5434_s9 + $0x98] sm:$0xff]  ;;  %v684_v55 = vld [vmem:[%s5432_s7 + $0x68] sm:$0xff] }
 0x3a4   : > { %v3856_v57 = vpop.eup %3855  ;;  %1044 = vmatpush.msra.mxu1 %v686_v53 }
 0x3a5   : > { %v3858_v58 = vpop.eup %3857  ;;  %v977_v59 = vmul.f32 1.442695, %v976_v56  ;;  %v911_v60 = vsel %vm543_vm7, %v3856_v57, 0.0  ;;  %v683_v56 = vld [vmem:[%s5432_s7 + $0x60] sm:$0xff] }
 0x3a6   : > { %912 = vadd.xlane.f32.xlu1 %v911_v60  ;;  %v842_v63 = vsel %vm543_vm7, %v3858_v58, 0.0  ;;  %v3860_v0 = vpop.eup %3859  ;;  %1045 = vmatpush.msra.mxu1 %v685_v54 }
 0x3a7   : > { %3861 = vpow2.f32 %v977_v59  ;;  %843 = vadd.xlane.f32.xlu2 %v842_v63  ;;  %v777_v2 = vsel %vm543_vm7, %v3860_v0, 0.0 }
 0x3a8   : > { %1046 = vmatpush.msra.mxu1 %v684_v55 }
 0x3aa   : > { %1047 = vmatpush.msra.mxu1 %v683_v56 }
 0x3ad   : > { %v3862_v1 = vpop.eup %3861 }
 0x3ae   : > { %778 = vadd.xlane.f32.xlu1 %v777_v2  ;;  %v979_v3 = vsel %vm543_vm7, %v3862_v1, 0.0 }
 0x3af   : > { %980 = vadd.xlane.f32.xlu0 %v979_v3 }
 0x3bf   : > { %849 = vrot.lane.b32.xlu2 %v4187_v6, %s3979_s16 }
 0x3c3   : > { %985 = vrot.lane.b32.xlu0 %v4187_v6, %s3983_s21 }
 0x3c7   : > { %917 = vrot.lane.b32.xlu1 %v4187_v6, %s3984_s22 }
 0x419   : > { %v913_v5 = vpop.xlane.xlu1 %912 }
 0x41a   : > { %v844_v8 = vpop.xlane.xlu2 %843  ;;  %v914_v6 = vadd.f32 1e-09, %v913_v5  ;;  %v3822_v5 = vld [vmem:[%s5432_s7 + $0xa0] ss:$0 sm:$0xff] }
 0x41b   : > { %v845_v12 = vadd.f32 1e-09, %v844_v8 }
 0x421   : > { %v779_v9 = vpop.xlane.xlu1 %778 }
 0x422   : > { %v780_v10 = vadd.f32 1e-09, %v779_v9  ;;  %v850_v11 = vpop.permute.xlu2 %849  ;;  %v981_v23 = vpop.xlane.xlu0 %980 }
 0x423   : > { %870 = vmatpush.msrb.mxu0 %v850_v11  ;;  %v982_v26 = vadd.f32 1e-09, %v981_v23 }
 0x424   : > { %3863 = vrcp.f32 %v780_v10 }
 0x425   : > { %3865 = vrcp.f32 %v845_v12 }
 0x426   : > { %3867 = vrcp.f32 %v914_v6 }
 0x427   : > { %3869 = vrcp.f32 %v982_v26 }
 0x42a   : > { %v3864_v17 = vpop.eup %3863 }
 0x42b   : > { %v782_v20 = vmul.f32 %v3864_v17, %v3860_v0  ;;  %v3866_v30 = vpop.eup %3865 }
 0x42c   : > { %v847_v31 = vmul.f32 %v3866_v30, %v3858_v58  ;;  %v3868_v34 = vpop.eup %3867 }
 0x42d   : > { %3682 = vmatmul.msk.f32.vlgmr.msra.gmra.mxu0 %vm543_vm7, %v782_v20  ;;  %v3870_v36 = vpop.eup %3869  ;;  %v916_v38 = vmul.f32 %v3868_v34, %v3856_v57 }
 0x42e   : > { %v984_v40 = vmul.f32 %v3870_v36, %v3862_v1 }
 0x435   : > { %v986_v33 = vpop.permute.xlu0 %985  ;;  %3685 = vmatmul.msk.f32.vlgmr.msrb.gmra.mxu0 %vm543_vm7, %v847_v31 }
 0x436   : > { %1006 = vmatpush.msra.mxu0 %v986_v33 }
 0x438   : > { %1167 = vmatpush.msrb.mxu0 %v1096_v32 }
 0x439   : > { %v918_v39 = vpop.permute.xlu1 %917 }
 0x43a   : > { %1168 = vmatpush.msrb.mxu0 %v1094_v35  ;;  %938 = vmatpush.msrb.mxu2 %v918_v39 }
 0x43b   : > { %3688 = vmatmul.msk.f32.vlgmr.msrb.gmra.mxu2 %vm543_vm7, %v916_v38 }
 0x43c   : > { %1169 = vmatpush.msrb.mxu0 %v1092_v37  ;;  %1122 = vmatpush.msra.mxu2 %v4202_v13  ;;  %v1084_v13 = vld [vmem:[%s5434_s9 + $0xa8] sm:$0xff]  ;;  %v3823_v37 = vld [vmem:[%s5432_s7 + $0x1d0] ss:$0 sm:$0xff] }
 0x43d   : > { %3691 = vmatmul.msk.f32.vlgmr.msra.gmra.mxu0 %vm543_vm7, %v984_v40  ;;  %v3824_v40 = vld [vmem:[%s5432_s7 + $0x1d8] ss:$0 sm:$0xff] }
 0x43e   : > { %1170 = vmatpush.msrb.mxu0 %v1090_v41  ;;  %1123 = vmatpush.msra.mxu2 %v4208_v14  ;;  %v4328_v14 = vpop.f32.mrf.mxu0 }
 0x440   : > { %1171 = vmatpush.msrb.mxu0 %v1088_v42  ;;  %1124 = vmatpush.msra.mxu2 %v4214_v16 }
 0x442   : > { %1172 = vmatpush.msrb.mxu0 %v1086_v43  ;;  %1125 = vmatpush.msra.mxu2 %v4220_v18 }
 0x444   : > { %1173 = vmatpush.msrb.mxu0 %v1084_v13  ;;  %1126 = vmatpush.msra.mxu2 %v4227_v19  ;;  %v4334_v19 = vld [vmem:[%s5434_s9 + $0x110] ss:$8 sm:$0x3] }
 0x445   : > { %v1134_v46 = vperm.slane %v4334_v19, 1 }
 0x446   : > { %1174 = vmatpush.msrb.mxu0 %v1082_v44  ;;  %1127 = vmatpush.msra.mxu2 %v4234_v21  ;;  %v1109_v21 = vperm.slane %v4334_v19, 0  ;;  %v4417_v19 = vld [vmem:[%s5434_s9 + $0x180] sm:$0xff] }
 0x447   : > { %3696 = vmatmul.msk.f32.vlgmr.msrb.gmra.mxu0 %vm631_vm2, %v4247_v24  ;;  %v1156_v24 = vpop.f32.mrf.mxu3 }
 0x448   : > { %1128 = vmatpush.msra.mxu2 %v4240_v22 }
 0x44a   : > { %1129 = vmatpush.msra.mxu2 %v4252_v25  ;;  %v1157_v25 = vadd.f32 %v1156_v24, %v1109_v21  ;;  %v4435_v24 = vld [vmem:[%s5434_s9 + $0x150] sm:$0xff] }
 0x4aa   : > { %v803_v16 = vpop.f32.mrf.mxu0 }
 0x4b2   : > { %v872_v18 = vpop.f32.mrf.mxu0 }
 0x4b3   : > { %1012 = vrot.lane.b32.xlu2 %v872_v18, %s3978_s15 }
 0x4ba   : > { %v1008_v45 = vpop.f32.mrf.mxu0 }
 0x4bb   : > { %1020 = vrot.lane.b32.xlu1 %v1008_v45, %s3982_s20  ;;  %v4423_v45 = vld [vmem:[%s5434_s9 + $0x170] sm:$0xff] }
 0x4be   : > { %v940_v22 = vpop.f32.mrf.mxu2 }
 0x4bf   : > { %1016 = vrot.lane.b32.xlu0 %v940_v22, %s3981_s19 }
 0x4c3   : > { %1180 = vrot.lane.b32.xlu1 %v1157_v25, %s3980_s18 }
 0x4c4   : > { %v1176_v47 = vpop.f32.mrf.mxu0 }
 0x4c5   : > { %v4343_v48 = vadd.f32 %v1176_v47, %v1134_v46  ;;  %v3821_v46 = vld [vmem:[%s5432_s7 + $0x58] ss:$0 sm:$0xff]  ;;  %v4451_v47 = vld [vmem:[%s5434_s9 + $0x130] sm:$0xff] }
 0x4c6   : > { %v4462_v53 = vadd.f32 %v3821_v46, %v4328_v14 }
 0x4c7   : > { %3699 = vmatpush.msk.msrb.mxu2 %vm481_vm0, %v4343_v48 }
 0x4cb   : > { %1250 = vrot.lane.b32.xlu1 %v1157_v25, %s3982_s20 }
 0x4d3   : > { %1319 = vrot.lane.b32.xlu1 %v1157_v25, %s3981_s19 }
 0x4db   : > { %1388 = vrot.lane.b32.xlu1 %v1157_v25, %s3978_s15  ;;  %v4442_v25 = vld [vmem:[%s5434_s9 + $0x140] sm:$0xff] }
 0x50d   : > { %v1013_v58 = vpop.permute.xlu2 %1012 }
 0x50e   : > { %v1023_v59 = vsel %vm743_vm12, %v803_v16, %v1013_v58  ;;  %v4411_v16 = vld [vmem:[%s5434_s9 + $0x190] sm:$0xff] }
 0x52d   : > { %v1021_v57 = vpop.permute.xlu1 %1020 }
 0x531   : > { %v1017_v60 = vpop.permute.xlu0 %1016 }
 0x532   : > { %v1025_v63 = vsel %vm1024_vm14, %v1023_v59, %v1017_v60 }
 0x533   : > { %v1027_v0 = vsel %vm1026_vm15, %v1025_v63, %v1021_v57 }
 0x534   : > { %3692 = vmatmul.msk.f32.vlgmr.msra.gmra.mxu1 %vm631_vm2, %v1027_v0 }
 0x535   : > { %v1181_v1 = vpop.permute.xlu1 %1180 }
 0x536   : > { %3697 = vmatpush.xpose.msk.msrb.mxu1 %vm743_vm12, %v1181_v1 }
 0x53d   : > { %v1251_v2 = vpop.permute.xlu1 %1250 }
 0x53e   : > { %3701 = vmatpush.xpose.msk.msrb.mxu3 %vm743_vm12, %v1251_v2 }
 0x545   : > { %v1320_v3 = vpop.permute.xlu1 %1319 }
 0x546   : > { %3705 = vmatpush.xpose.msk.msra.mxu1 %vm743_vm12, %v1320_v3 }
 0x54d   : > { %v1389_v4 = vpop.permute.xlu1 %1388 }
 0x54e   : > { %3709 = vmatpush.xpose.msk.msra.mxu3 %vm743_vm12, %v1389_v4 }
 0x5b1   : > { %v1049_v8 = vpop.f32.mrf.mxu1 }
 0x5b2   : > { %v1050_v9 = vadd.f32 %v3822_v5, %v1049_v8 }
 0x5b4   : > { %v4386_v10 = vadd.f32 %v1050_v9, %v4069_v7 }
 0x5b6   : > { %v1055_v11 = vsel %vm631_vm2, %v4386_v10, 0.0 }
 0x5b7   : > { %1056 = vadd.xlane.f32.xlu2 %v1055_v11 }
 0x62a   : > { %v1057_v12 = vpop.xlane.xlu2 %1056 }
 0x62b   : > { %v1058_v17 = vmul.f32 %v1057_v12, %v4073_v15 }
 0x62d   : > { %v1059_v20 = vsub.f32 %v4386_v10, %v1058_v17  ;;  %v4477_v17 = vld [vmem:[%s5434_s9 + $0x1a0] ss:$8 sm:$0x3] }
 0x62f   : > { %v1060_v23 = vmul.f32 %v1059_v20, %v1059_v20 }
 0x631   : > { %v1061_v6 = vsel %vm631_vm2, %v1060_v23, 0.0 }
 0x632   : > { %1062 = vadd.xlane.f32.xlu0 %v1061_v6 }
 0x6a5   : > { %v1063_v26 = vpop.xlane.xlu0 %1062 }
 0x6a6   : > { %v1064_v30 = vmul.f32 %v1063_v26, %v4073_v15 }
 0x6a8   : > { %v1065_v31 = vadd.f32 1e-06, %v1064_v30 }
 0x6aa   : > { %3871 = vrsqrt.f32 %v1065_v31  ;;  %vm1072_vm4 = vweird.f32 %v1065_v31 }
 0x6b0   : > { %v3872_v7 = vpop.eup %3871 }
 0x6b1   : > { %v1067_v32 = vmul.f32 %v3872_v7, %v1065_v31  ;;  %vm1073_vm3 = vweird.f32 %v3872_v7 }
 0x6b2   : > { %vm1074_vm6 = vmor %vm1072_vm4, %vm1073_vm3 }
 0x6b3   : > { %v1068_v33 = vmul.f32 %v3872_v7, %v1067_v32  ;;  %v1105_v32 = vld [vmem:[%s5432_s7 + $0xd8] sm:$0xff] }
 0x6b5   : > { %v1069_v34 = vmul.f32 0.5, %v1068_v33 }
 0x6b7   : > { %v1070_v35 = vsub.f32 1.5, %v1069_v34  ;;  %v1104_v34 = vld [vmem:[%s5432_s7 + $0xd0] sm:$0xff] }
 0x6b9   : > { %v1071_v36 = vmul.f32 %v3872_v7, %v1070_v35 }
 0x6bb   : > { %v1075_v38 = vsel %vm1074_vm6, %v3872_v7, %v1071_v36  ;;  %v1106_v7 = vld [vmem:[%s5432_s7 + $0xe0] sm:$0xff]  ;;  %v1103_v36 = vld [vmem:[%s5432_s7 + $0xc8] sm:$0xff] }
 0x6bc   : > { %v1076_v39 = vmul.f32 %v1075_v38, %v1059_v20  ;;  %v1551_v20 = vperm.slane %v4477_v17, 0  ;;  %v1101_v38 = vld [vmem:[%s5432_s7 + $0xb8] sm:$0xff] }
 0x6be   : > { %v1078_v41 = vmul.f32 %v3823_v37, %v1076_v39  ;;  %v1102_v37 = vld [vmem:[%s5432_s7 + $0xc0] sm:$0xff]  ;;  %v1100_v39 = vld [vmem:[%s5432_s7 + $0xb0] sm:$0xff] }
 0x6c0   : > { %v1080_v42 = vadd.f32 %v3824_v40, %v1078_v41  ;;  %v1099_v40 = vld [vmem:[%s5432_s7 + $0xa8] sm:$0xff] }
 0x6c2   : > { %3694 = vmatmul.msk.f32.vlgmr.msra.gmra.mxu2 %vm631_vm2, %v1080_v42 }
 0x745   : > { %v1131_v43 = vpop.f32.mrf.mxu2 }
 0x746   : > { %v1132_v13 = vadd.f32 %v1131_v43, %v1109_v21  ;;  %v4429_v21 = vld [vmem:[%s5434_s9 + $0x160] sm:$0xff] }
 0x748   : > { %1317 = vrot.lane.b32.xlu2 %v1132_v13, %s3984_s22  ;;  %1248 = vrot.lane.b32.xlu1 %v1132_v13, %s3979_s16 }
 0x749   : > { %3698 = vmatmul.msk.f32.vlgmr.msrb.gmra.mxu1 %vm743_vm12, %v1132_v13 }
 0x74a   : > { %1482 = vmatpush.msrb.mxu1 %v1106_v7  ;;  %v1576_v7 = vperm.slane %v4477_v17, 1 }
 0x74c   : > { %1483 = vmatpush.msrb.mxu1 %v1105_v32 }
 0x74e   : > { %1484 = vmatpush.msrb.mxu1 %v1104_v34 }
 0x750   : > { %1386 = vrot.lane.b32.xlu1 %v1132_v13, %s3983_s21  ;;  %1485 = vmatpush.msrb.mxu1 %v1103_v36 }
 0x752   : > { %1486 = vmatpush.msrb.mxu1 %v1102_v37 }
 0x754   : > { %1487 = vmatpush.msrb.mxu1 %v1101_v38 }
 0x756   : > { %1488 = vmatpush.msrb.mxu1 %v1100_v39 }
 0x758   : > { %1489 = vmatpush.msrb.mxu1 %v1099_v40  ;;  %v3825_v40 = vld [vmem:[%s5432_s7 + $0xe8] ss:$0 sm:$0xff] }
 0x7a2   : > { %v1318_v44 = vpop.permute.xlu2 %1317 }
 0x7a3   : > { %3706 = vmatmul.msk.f32.vlgmr.msra.gmra.mxu1 %vm743_vm12, %v1318_v44 }
 0x7ba   : > { %v1249_v18 = vpop.permute.xlu1 %1248 }
 0x7bb   : > { %3702 = vmatmul.msk.f32.vlgmr.msrb.gmra.mxu3 %vm743_vm12, %v1249_v18 }
 0x7bc   : > { %1589 = vmatpush.msrb.mxu3 %v4411_v16 }
 0x7be   : > { %1590 = vmatpush.msrb.mxu3 %v4417_v19 }
 0x7c0   : > { %1591 = vmatpush.msrb.mxu3 %v4423_v45 }
 0x7c2   : > { %1592 = vmatpush.msrb.mxu3 %v4429_v21  ;;  %v1387_v22 = vpop.permute.xlu1 %1386 }
 0x7c3   : > { %3710 = vmatmul.msk.f32.vlgmr.msra.gmra.mxu3 %vm743_vm12, %v1387_v22 }
 0x7c4   : > { %1593 = vmatpush.msrb.mxu3 %v4435_v24 }
 0x7c6   : > { %v1204_v50 = vpop.f32.mrf.mxu1  ;;  %1594 = vmatpush.msrb.mxu3 %v4442_v25 }
 0x7c7   : > { %v1207_v51 = vmul.f32 0.25, %v1204_v50 }
 0x7c8   : > { %1595 = vmatpush.msrb.mxu3 %v4451_v47 }
 0x7c9   : > { %v1209_v54 = vadd.f32 %v1208_v49, %v1207_v51 }
 0x7ca   : > { %1596 = vmatpush.msrb.mxu3 %v4458_v52 }
 0x7cb   : > { %v1210_v55 = vsel %vm477_vm1, %v1209_v54, -inf  ;;  %3716 = vmatmul.msk.f32.vlgmr.msrb.gmra.mxu3 %vm631_vm2, %v4462_v53 }
 0x7cc   : > { %1211 = vmax.xlane.f32.xlu0 %v1210_v55 }
 0x820   : > { %v1342_v56 = vpop.f32.mrf.mxu1 }
 0x821   : > { %v1345_v57 = vmul.f32 0.25, %v1342_v56 }
 0x823   : > { %v1346_v58 = vadd.f32 %v1345_v57, %v1208_v49 }
 0x825   : > { %v1347_v59 = vsel %vm477_vm1, %v1346_v58, -inf }
 0x826   : > { %1348 = vmax.xlane.f32.xlu0 %v1347_v59 }
 0x83e   : > { %v1273_v60 = vpop.f32.mrf.mxu3 }
 0x83f   : > { %v1212_v63 = vpop.xlane.xlu0 %1211  ;;  %v1276_v0 = vmul.f32 0.25, %v1273_v60 }
 0x840   : > { %v1213_v14 = vsub.f32 %v1209_v54, %v1212_v63 }
 0x841   : > { %v1277_v1 = vadd.f32 %v1276_v0, %v1208_v49 }
 0x842   : > { %v1214_v2 = vmul.f32 1.442695, %v1213_v14 }
 0x843   : > { %v1278_v3 = vsel %vm477_vm1, %v1277_v1, -inf }
 0x844   : > { %3873 = vpow2.f32 %v1214_v2  ;;  %1279 = vmax.xlane.f32.xlu1 %v1278_v3  ;;  %v1534_v2 = vld [vmem:[%s5434_s9 + $0x178] sm:$0xff] }
 0x846   : > { %v1411_v4 = vpop.f32.mrf.mxu3 }
 0x847   : > { %v1414_v5 = vmul.f32 0.25, %v1411_v4  ;;  %v1532_v4 = vld [vmem:[%s5434_s9 + $0x168] sm:$0xff] }
 0x849   : > { %v1415_v8 = vadd.f32 %v1414_v5, %v1208_v49 }
 0x84a   : > { %v3874_v9 = vpop.eup %3873 }
 0x84b   : > { %v1216_v11 = vsel %vm477_vm1, %v3874_v9, 0.0  ;;  %v1416_v12 = vsel %vm477_vm1, %v1415_v8, -inf }
 0x84c   : > { %1217 = vadd.xlane.f32.xlu2 %v1216_v11  ;;  %1417 = vmax.xlane.f32.xlu0 %v1416_v12  ;;  %v1526_v11 = vld [vmem:[%s5434_s9 + $0x138] sm:$0xff]  ;;  %v1524_v12 = vld [vmem:[%s5434_s9 + $0x128] sm:$0xff] }
 0x84e   : > { %v1598_v23 = vpop.f32.mrf.mxu3 }
 0x84f   : > { %v4484_v6 = vadd.f32 %v1598_v23, %v1551_v20 }
 0x85d   : > { %1359 = vrot.lane.b32.xlu1 %v4343_v48, %s3984_s22 }
 0x864   : > { %1428 = vrot.lane.b32.xlu2 %v4343_v48, %s3983_s21 }
 0x86c   : > { %1622 = vrot.lane.b32.xlu2 %v4484_v6, %s3980_s18 }
 0x874   : > { %1692 = vrot.lane.b32.xlu2 %v4484_v6, %s3982_s20 }
 0x87c   : > { %1761 = vrot.lane.b32.xlu2 %v4484_v6, %s3981_s19 }
 0x899   : > { %v1349_v26 = vpop.xlane.xlu0 %1348 }
 0x89a   : > { %v1350_v30 = vsub.f32 %v1346_v58, %v1349_v26 }
 0x89c   : > { %v1351_v31 = vmul.f32 1.442695, %v1350_v30 }
 0x89e   : > { %3875 = vpow2.f32 %v1351_v31 }
 0x8a4   : > { %v3876_v33 = vpop.eup %3875 }
 0x8a5   : > { %v1353_v35 = vsel %vm477_vm1, %v3876_v33, 0.0 }
 0x8a6   : > { %1354 = vadd.xlane.f32.xlu0 %v1353_v35 }
 0x8b7   : > { %v1280_v41 = vpop.xlane.xlu1 %1279 }
 0x8b8   : > { %v1281_v42 = vsub.f32 %v1277_v1, %v1280_v41 }
 0x8ba   : > { %v1282_v43 = vmul.f32 1.442695, %v1281_v42 }
 0x8bc   : > { %3877 = vpow2.f32 %v1282_v43 }
 0x8bf   : > { %v1218_v13 = vpop.xlane.xlu2 %1217  ;;  %v1418_v44 = vpop.xlane.xlu0 %1417 }
 0x8c0   : > { %v1219_v18 = vadd.f32 1e-09, %v1218_v13  ;;  %v1419_v22 = vsub.f32 %v1415_v8, %v1418_v44  ;;  %v1530_v8 = vld [vmem:[%s5434_s9 + $0x158] sm:$0xff] }
 0x8c2   : > { %v3878_v46 = vpop.eup %3877  ;;  %3879 = vrcp.f32 %v1219_v18  ;;  %v1420_v49 = vmul.f32 1.442695, %v1419_v22 }
 0x8c3   : > { %v1284_v50 = vsel %vm477_vm1, %v3878_v46, 0.0 }
 0x8c4   : > { %3881 = vpow2.f32 %v1420_v49  ;;  %1285 = vadd.xlane.f32.xlu0 %v1284_v50 }
 0x8c7   : > { %v1429_v51 = vpop.permute.xlu2 %1428 }
 0x8c8   : > { %v3880_v54 = vpop.eup %3879 }
 0x8c9   : > { %v1221_v55 = vmul.f32 %v3880_v54, %v3874_v9  ;;  %v1528_v9 = vld [vmem:[%s5434_s9 + $0x148] sm:$0xff] }
 0x8ca   : > { %v3882_v56 = vpop.eup %3881 }
 0x8cb   : > { %3700 = vmatmul.msk.f32.vlgmr.msrb.gmra.mxu2 %vm477_vm1, %v1221_v55  ;;  %v1422_v57 = vsel %vm477_vm1, %v3882_v56, 0.0 }
 0x8cc   : > { %1423 = vadd.xlane.f32.xlu0 %v1422_v57 }
 0x8cf   : > { %v1623_v58 = vpop.permute.xlu2 %1622  ;;  %v1360_v59 = vpop.permute.xlu1 %1359 }
 0x8d0   : > { %3718 = vmatpush.xpose.msk.msra.mxu1 %vm743_vm12, %v1623_v58  ;;  %3707 = vmatpush.msk.msra.mxu2 %vm481_vm0, %v1360_v59 }
 0x8d2   : > { %1564 = vmatpush.msrb.mxu2 %v4411_v16 }
 0x8d4   : > { %1565 = vmatpush.msrb.mxu2 %v4417_v19 }
 0x8d6   : > { %1566 = vmatpush.msrb.mxu2 %v4423_v45 }
 0x8d7   : > { %v1693_v60 = vpop.permute.xlu2 %1692 }
 0x8d8   : > { %1567 = vmatpush.msrb.mxu2 %v4429_v21  ;;  %3722 = vmatpush.xpose.msk.msra.mxu3 %vm743_vm12, %v1693_v60  ;;  %v3826_v60 = vld [vmem:[%s5432_s7 + $0x1e0] ss:$0 sm:$0xff] }
 0x8da   : > { %1568 = vmatpush.msrb.mxu2 %v4435_v24 }
 0x8dc   : > { %1569 = vmatpush.msrb.mxu2 %v4442_v25 }
 0x8de   : > { %1570 = vmatpush.msrb.mxu2 %v4451_v47 }
 0x8df   : > { %v1762_v39 = vpop.permute.xlu2 %1761 }
 0x8e0   : > { %1571 = vmatpush.msrb.mxu2 %v4458_v52  ;;  %1290 = vrot.lane.b32.xlu0 %v4343_v48, %s3979_s16  ;;  %v1538_v48 = vld [vmem:[%s5434_s9 + $0x198] sm:$0xff]  ;;  %v1536_v52 = vld [vmem:[%s5434_s9 + $0x188] sm:$0xff] }
 0x919   : > { %v1355_v16 = vpop.xlane.xlu0 %1354 }
 0x91a   : > { %v1356_v19 = vadd.f32 1e-09, %v1355_v16 }
 0x91c   : > { %3883 = vrcp.f32 %v1356_v19 }
 0x922   : > { %v3884_v45 = vpop.eup %3883 }
 0x923   : > { %v1358_v63 = vmul.f32 %v3884_v45, %v3876_v33  ;;  %v3827_v45 = vld [vmem:[%s5432_s7 + $0x1e8] ss:$0 sm:$0xff] }
 0x925   : > { %3708 = vmatmul.msk.f32.vlgmr.msra.gmra.mxu2 %vm477_vm1, %v1358_v63 }
 0x937   : > { %v1286_v21 = vpop.xlane.xlu0 %1285 }
 0x938   : > { %v1287_v0 = vadd.f32 1e-09, %v1286_v21 }
 0x93a   : > { %3885 = vrcp.f32 %v1287_v0 }
 0x93f   : > { %v1424_v24 = vpop.xlane.xlu0 %1423 }
 0x940   : > { %v1425_v14 = vadd.f32 1e-09, %v1424_v24  ;;  %v3886_v25 = vpop.eup %3885 }
 0x941   : > { %v1289_v1 = vmul.f32 %v3886_v25, %v3878_v46 }
 0x942   : > { %3887 = vrcp.f32 %v1425_v14 }
 0x948   : > { %v3888_v3 = vpop.eup %3887 }
 0x949   : > { %v1427_v5 = vmul.f32 %v3888_v3, %v3882_v56 }
 0x94e   : > { %v1245_v23 = vpop.f32.mrf.mxu2 }
 0x952   : > { %v1291_v47 = vpop.permute.xlu0 %1290 }
 0x953   : > { %3703 = vmatpush.msk.msra.mxu0 %vm481_vm0, %v1291_v47 }
 0x954   : > { %3704 = vmatmul.msk.f32.vlgmr.msra.gmra.mxu0 %vm477_vm1, %v1289_v1 }
 0x955   : > { %3711 = vmatpush.msk.msrb.mxu0 %vm481_vm0, %v1429_v51 }
 0x957   : > { %1609 = vmatpush.msra.mxu0 %v1538_v48 }
 0x959   : > { %1610 = vmatpush.msra.mxu0 %v1536_v52 }
 0x95b   : > { %1611 = vmatpush.msra.mxu0 %v1534_v2 }
 0x95c   : > { %3712 = vmatmul.msk.f32.vlgmr.msrb.gmra.mxu0 %vm477_vm1, %v1427_v5 }
 0x95d   : > { %1612 = vmatpush.msra.mxu0 %v1532_v4 }
 0x95f   : > { %1613 = vmatpush.msra.mxu0 %v1530_v8 }
 0x961   : > { %1614 = vmatpush.msra.mxu0 %v1528_v9 }
 0x963   : > { %1615 = vmatpush.msra.mxu0 %v1526_v11 }
 0x965   : > { %1616 = vmatpush.msra.mxu0 %v1524_v12 }
 0x966   : > { %3717 = vmatmul.msk.f32.vlgmr.msra.gmra.mxu0 %vm631_vm2, %v4462_v53 }
 0x9a8   : > { %v1383_v26 = vpop.f32.mrf.mxu2 }
 0x9a9   : > { %1460 = vrot.lane.b32.xlu1 %v1383_v26, %s3981_s19 }
 0x9d1   : > { %v1314_v30 = vpop.f32.mrf.mxu0 }
 0x9d2   : > { %1456 = vrot.lane.b32.xlu0 %v1314_v30, %s3978_s15 }
 0x9d9   : > { %v1452_v31 = vpop.f32.mrf.mxu0 }
 0x9da   : > { %1464 = vrot.lane.b32.xlu0 %v1452_v31, %s3982_s20 }
 0x9e3   : > { %v1618_v32 = vpop.f32.mrf.mxu0 }
 0x9e4   : > { %v4568_v33 = vadd.f32 %v1618_v32, %v1576_v7 }
 0x9e6   : > { %3720 = vmatpush.msk.msra.mxu2 %vm481_vm0, %v4568_v33 }
 0xa1b   : > { %v1461_v35 = vpop.permute.xlu1 %1460 }
 0xa44   : > { %v1457_v34 = vpop.permute.xlu0 %1456 }
 0xa45   : > { %v1467_v53 = vsel %vm743_vm12, %v1245_v23, %v1457_v34 }
 0xa46   : > { %v1468_v37 = vsel %vm1024_vm14, %v1467_v53, %v1461_v35 }
 0xa4c   : > { %v1465_v36 = vpop.permute.xlu0 %1464 }
 0xa4d   : > { %v1469_v38 = vsel %vm1026_vm15, %v1468_v37, %v1465_v36 }
 0xa4e   : > { %3713 = vmatmul.msk.f32.vlgmr.msrb.gmra.mxu1 %vm631_vm2, %v1469_v38 }
 0xa4f   : > { %3726 = vmatpush.xpose.msk.msrb.mxu1 %vm743_vm12, %v1762_v39 }
 0xacb   : > { %v1491_v41 = vpop.f32.mrf.mxu1 }
 0xacc   : > { %v1492_v42 = vadd.f32 %v3825_v40, %v1491_v41 }
 0xace   : > { %v4581_v43 = vadd.f32 %v1492_v42, %v4386_v10 }
 0xad0   : > { %v1497_v13 = vsel %vm631_vm2, %v4581_v43, 0.0 }
 0xad1   : > { %1498 = vadd.xlane.f32.xlu1 %v1497_v13 }
 0xb44   : > { %v1499_v44 = vpop.xlane.xlu1 %1498 }
 0xb45   : > { %v1500_v18 = vmul.f32 %v1499_v44, %v4073_v15 }
 0xb47   : > { %v1501_v22 = vsub.f32 %v4581_v43, %v1500_v18 }
 0xb49   : > { %v1502_v46 = vmul.f32 %v1501_v22, %v1501_v22 }
 0xb4b   : > { %v1503_v49 = vsel %vm631_vm2, %v1502_v46, 0.0 }
 0xb4c   : > { %1504 = vadd.xlane.f32.xlu0 %v1503_v49 }
 0xbbf   : > { %v1505_v50 = vpop.xlane.xlu0 %1504 }
 0xbc0   : > { %v1506_v51 = vmul.f32 %v1505_v50, %v4073_v15 }
 0xbc2   : > { %v1507_v54 = vadd.f32 1e-06, %v1506_v51 }
 0xbc4   : > { %3889 = vrsqrt.f32 %v1507_v54  ;;  %vm1514_vm9 = vweird.f32 %v1507_v54 }
 0xbca   : > { %v3890_v10 = vpop.eup %3889 }
 0xbcb   : > { %v1509_v55 = vmul.f32 %v3890_v10, %v1507_v54  ;;  %vm1515_vm8 = vweird.f32 %v3890_v10 }
 0xbcc   : > { %vm1516_vm10 = vmor %vm1514_vm9, %vm1515_vm8 }
 0xbcd   : > { %v1510_v56 = vmul.f32 %v3890_v10, %v1509_v55 }
 0xbcf   : > { %v1511_v57 = vmul.f32 0.5, %v1510_v56 }
 0xbd1   : > { %v1512_v58 = vsub.f32 1.5, %v1511_v57  ;;  %v3818_v57 = vld [vmem:[%s5432_s7 + $0x18] ss:$0 sm:$0xff] }
 0xbd3   : > { %v1513_v59 = vmul.f32 %v3890_v10, %v1512_v58  ;;  %v536_v58 = vadd.f32 %v3818_v57, %v4177_v61  ;;  %v2095_v57 = vld [vmem:[%s5434_s9 + $0x1b0] sm:$0xff] }
 0xbd5   : > { %v1517_v16 = vsel %vm1516_vm10, %v3890_v10, %v1513_v59  ;;  %v538_v59 = vmul.f32 8.0, %v536_v58  ;;  %v2096_v58 = vld [vmem:[%s5434_s9 + $0x1b8] sm:$0xff] }
 0xbd6   : > { %v1518_v19 = vmul.f32 %v1517_v16, %v1501_v22 }
 0xbd8   : > { %v1520_v63 = vmul.f32 %v3826_v60, %v1518_v19  ;;  %v464_v60 = vld [vmem:[%s5432_s7 + $0x3c8] sm:$0x3f] }
 0xbd9   : > { %v4631_v16 = vadd.f32 %v538_v59, %v464_v60 }
 0xbda   : > { %v1522_v21 = vadd.f32 %v3827_v45, %v1520_v63 }
 0xbdb   : > { %v2069_v19 = vsel %vm2068_vm11, %v4631_v16, 0.0 }
 0xbdc   : > { %3715 = vmatmul.msk.f32.vlgmr.msrb.gmra.mxu2 %vm631_vm2, %v1522_v21 }
 0xc5f   : > { %v1573_v0 = vpop.f32.mrf.mxu2 }
 0xc60   : > { %v1574_v24 = vadd.f32 %v1573_v0, %v1551_v20  ;;  %v1650_v20 = vperm.slane %v4262_v28, 2 }
 0xc62   : > { %1828 = vrot.lane.b32.xlu0 %v1574_v24, %s3983_s21  ;;  %1759 = vrot.lane.b32.xlu1 %v1574_v24, %s3984_s22 }
 0xc63   : > { %1690 = vrot.lane.b32.xlu2 %v1574_v24, %s3979_s16  ;;  %3719 = vmatmul.msk.f32.vlgmr.msra.gmra.mxu1 %vm743_vm12, %v1574_v24 }
 0xc6b   : > { %1830 = vrot.lane.b32.xlu2 %v4484_v6, %s3978_s15 }
 0xcbd   : > { %v1691_v14 = vpop.permute.xlu2 %1690 }
 0xcbe   : > { %3723 = vmatmul.msk.f32.vlgmr.msra.gmra.mxu3 %vm743_vm12, %v1691_v14 }
 0xcc5   : > { %v1831_v25 = vpop.permute.xlu2 %1830 }
 0xcc6   : > { %3730 = vmatpush.xpose.msk.msrb.mxu3 %vm743_vm12, %v1831_v25 }
 0xcd4   : > { %v1829_v1 = vpop.permute.xlu0 %1828  ;;  %v1760_v17 = vpop.permute.xlu1 %1759 }
 0xcd5   : > { %3727 = vmatmul.msk.f32.vlgmr.msrb.gmra.mxu1 %vm743_vm12, %v1760_v17  ;;  %3731 = vmatmul.msk.f32.vlgmr.msrb.gmra.mxu3 %vm743_vm12, %v1829_v1 }
 0xce0   : > { %v1646_v47 = vpop.f32.mrf.mxu1 }
 0xce1   : > { %v1649_v48 = vmul.f32 0.25, %v1646_v47 }
 0xce3   : > { %v1651_v52 = vadd.f32 %v1650_v20, %v1649_v48 }
 0xce5   : > { %v1652_v2 = vsel %vm477_vm1, %v1651_v52, -inf }
 0xce6   : > { %1653 = vmax.xlane.f32.xlu2 %v1652_v2 }
 0xd41   : > { %v1715_v6 = vpop.f32.mrf.mxu3 }
 0xd42   : > { %v1718_v3 = vmul.f32 0.25, %v1715_v6 }
 0xd44   : > { %v1719_v4 = vadd.f32 %v1718_v3, %v1650_v20 }
 0xd46   : > { %v1720_v5 = vsel %vm477_vm1, %v1719_v4, -inf }
 0xd47   : > { %1721 = vmax.xlane.f32.xlu0 %v1720_v5 }
 0xd52   : > { %v1784_v8 = vpop.f32.mrf.mxu1 }
 0xd53   : > { %v1787_v9 = vmul.f32 0.25, %v1784_v8 }
 0xd55   : > { %v1788_v11 = vadd.f32 %v1787_v9, %v1650_v20 }
 0xd57   : > { %v1789_v12 = vsel %vm477_vm1, %v1788_v11, -inf }
 0xd58   : > { %v1853_v23 = vpop.f32.mrf.mxu3  ;;  %1790 = vmax.xlane.f32.xlu1 %v1789_v12 }
 0xd59   : > { %v1856_v26 = vmul.f32 0.25, %v1853_v23  ;;  %v1654_v30 = vpop.xlane.xlu2 %1653  ;;  %v1548_v23 = vld [vmem:[%s5432_s7 + $0x128] sm:$0xff] }
 0xd5a   : > { %v1655_v31 = vsub.f32 %v1651_v52, %v1654_v30  ;;  %1924 = vmatpush.msra.mxu1 %v1548_v23  ;;  %v1546_v30 = vld [vmem:[%s5432_s7 + $0x118] sm:$0xff] }
 0xd5b   : > { %v1857_v7 = vadd.f32 %v1856_v26, %v1650_v20  ;;  %v1547_v26 = vld [vmem:[%s5432_s7 + $0x120] sm:$0xff] }
 0xd5c   : > { %v1656_v32 = vmul.f32 1.442695, %v1655_v31  ;;  %1925 = vmatpush.msra.mxu1 %v1547_v26  ;;  %v1545_v31 = vld [vmem:[%s5432_s7 + $0x110] sm:$0xff] }
 0xd5d   : > { %v1858_v34 = vsel %vm477_vm1, %v1857_v7, -inf }
 0xd5e   : > { %3891 = vpow2.f32 %v1656_v32  ;;  %1859 = vmax.xlane.f32.xlu2 %v1858_v34  ;;  %1926 = vmatpush.msra.mxu1 %v1546_v30  ;;  %v1543_v32 = vld [vmem:[%s5432_s7 + $0x100] sm:$0xff]  ;;  %v1542_v34 = vld [vmem:[%s5432_s7 + $0xf8] sm:$0xff] }
 0xd60   : > { %1927 = vmatpush.msra.mxu1 %v1545_v31 }
 0xd64   : > { %v3892_v53 = vpop.eup %3891 }
 0xd65   : > { %v1658_v35 = vsel %vm477_vm1, %v3892_v53, 0.0 }
 0xd66   : > { %1659 = vadd.xlane.f32.xlu2 %v1658_v35 }
 0xdba   : > { %v1722_v36 = vpop.xlane.xlu0 %1721 }
 0xdbb   : > { %v1723_v37 = vsub.f32 %v1719_v4, %v1722_v36 }
 0xdbd   : > { %v1724_v38 = vmul.f32 1.442695, %v1723_v37 }
 0xdbf   : > { %3893 = vpow2.f32 %v1724_v38 }
 0xdc5   : > { %v3894_v39 = vpop.eup %3893 }
 0xdc6   : > { %v1726_v40 = vsel %vm477_vm1, %v3894_v39, 0.0 }
 0xdc7   : > { %1727 = vadd.xlane.f32.xlu2 %v1726_v40 }
 0xdcb   : > { %v1791_v41 = vpop.xlane.xlu1 %1790 }
 0xdcc   : > { %v1792_v42 = vsub.f32 %v1788_v11, %v1791_v41  ;;  %v2109_v41 = vld [vmem:[%s5434_s9 + $0x220] sm:$0xff] }
 0xdce   : > { %v1793_v13 = vmul.f32 1.442695, %v1792_v42  ;;  %v2110_v42 = vld [vmem:[%s5434_s9 + $0x228] sm:$0xff] }
 0xdd0   : > { %3895 = vpow2.f32 %v1793_v13  ;;  %v2107_v13 = vld [vmem:[%s5434_s9 + $0x210] sm:$0xff] }
 0xdd1   : > { %v1860_v44 = vpop.xlane.xlu2 %1859 }
 0xdd2   : > { %v1861_v18 = vsub.f32 %v1857_v7, %v1860_v44  ;;  %v1544_v7 = vld [vmem:[%s5432_s7 + $0x108] sm:$0xff]  ;;  %v2108_v44 = vld [vmem:[%s5434_s9 + $0x218] sm:$0xff] }
 0xdd3   : > { %1928 = vmatpush.msra.mxu1 %v1544_v7  ;;  %v1989_v7 = vld [vmem:[%s5432_s7 + $0x1b0] sm:$0xff] }
 0xdd4   : > { %v1862_v22 = vmul.f32 1.442695, %v1861_v18  ;;  %v2105_v18 = vld [vmem:[%s5434_s9 + $0x200] sm:$0xff]  ;;  %2017 = vmatpush.msra.mxu3 %v1989_v7 }
 0xdd5   : > { %1929 = vmatpush.msra.mxu1 %v1543_v32  ;;  %v1988_v32 = vld [vmem:[%s5432_s7 + $0x1a8] sm:$0xff] }
 0xdd6   : > { %v3896_v46 = vpop.eup %3895  ;;  %3897 = vpow2.f32 %v1862_v22  ;;  %v2106_v22 = vld [vmem:[%s5434_s9 + $0x208] sm:$0xff]  ;;  %2018 = vmatpush.msra.mxu3 %v1988_v32 }
 0xdd7   : > { %v1795_v49 = vsel %vm477_vm1, %v3896_v46, 0.0  ;;  %1930 = vmatpush.msra.mxu1 %v1542_v34  ;;  %v1972_v34 = vld [vmem:[%s5433_s8 + $0x80] sm:$0xff] }
 0xdd8   : > { %1796 = vadd.xlane.f32.xlu0 %v1795_v49  ;;  %v2104_v49 = vld [vmem:[%s5434_s9 + $0x1f8] sm:$0xff] }
 0xdd9   : > { %v1660_v50 = vpop.xlane.xlu2 %1659 }
 0xdda   : > { %v1661_v51 = vadd.f32 1e-09, %v1660_v50  ;;  %v2101_v50 = vld [vmem:[%s5434_s9 + $0x1e0] sm:$0xff] }
 0xddc   : > { %v3898_v54 = vpop.eup %3897  ;;  %3899 = vrcp.f32 %v1661_v51  ;;  %v2102_v51 = vld [vmem:[%s5434_s9 + $0x1e8] sm:$0xff] }
 0xddd   : > { %v1864_v10 = vsel %vm477_vm1, %v3898_v54, 0.0 }
 0xdde   : > { %1865 = vadd.xlane.f32.xlu1 %v1864_v10  ;;  %v2100_v10 = vld [vmem:[%s5434_s9 + $0x1d8] sm:$0xff] }
 0xddf   : > { %1732 = vrot.lane.b32.xlu2 %v4568_v33, %s3979_s16 }
 0xde2   : > { %v3900_v55 = vpop.eup %3899 }
 0xde3   : > { %v1663_v56 = vmul.f32 %v3900_v55, %v3892_v53  ;;  %v1541_v53 = vld [vmem:[%s5432_s7 + $0xf0] sm:$0xff]  ;;  %v2097_v55 = vld [vmem:[%s5434_s9 + $0x1c0] sm:$0xff] }
 0xde4   : > { %1931 = vmatpush.msra.mxu1 %v1541_v53  ;;  %v1987_v53 = vld [vmem:[%s5432_s7 + $0x1a0] sm:$0xff] }
 0xde5   : > { %3721 = vmatmul.msk.f32.vlgmr.msra.gmra.mxu2 %vm477_vm1, %v1663_v56  ;;  %v2098_v56 = vld [vmem:[%s5434_s9 + $0x1c8] sm:$0xff]  ;;  %2019 = vmatpush.msra.mxu3 %v1987_v53 }
 0xde6   : > { %2158 = vmatpush.msrb.mxu1 %v2110_v42  ;;  %v1967_v42 = vld [vmem:[%s5433_s8 + $0x58] sm:$0xff] }
 0xde8   : > { %2159 = vmatpush.msrb.mxu1 %v2108_v44  ;;  %v1966_v44 = vld [vmem:[%s5433_s8 + $0x50] sm:$0xff] }
 0xdea   : > { %2160 = vmatpush.msrb.mxu1 %v2106_v22  ;;  %v1965_v22 = vld [vmem:[%s5433_s8 + $0x48] sm:$0xff] }
 0xdec   : > { %1801 = vrot.lane.b32.xlu0 %v4568_v33, %s3984_s22  ;;  %2161 = vmatpush.msrb.mxu1 %v2104_v49  ;;  %v1980_v49 = vld [vmem:[%s5432_s7 + $0x168] sm:$0xff] }
 0xdee   : > { %2162 = vmatpush.msrb.mxu1 %v2102_v51  ;;  %v1978_v51 = vld [vmem:[%s5432_s7 + $0x158] sm:$0xff] }
 0xdf0   : > { %2163 = vmatpush.msrb.mxu1 %v2100_v10  ;;  %v1976_v10 = vld [vmem:[%s5432_s7 + $0x148] sm:$0xff] }
 0xdf2   : > { %2164 = vmatpush.msrb.mxu1 %v2098_v56  ;;  %v1974_v56 = vld [vmem:[%s5432_s7 + $0x138] sm:$0xff] }
 0xdf4   : > { %2165 = vmatpush.msrb.mxu1 %v2096_v58 }
 0xdf7   : > { %1870 = vrot.lane.b32.xlu1 %v4568_v33, %s3983_s21 }
 0xe21   : > { %2070 = vadd.xlane.f32.xlu1 %v2069_v19 }
 0xe3a   : > { %v1728_v45 = vpop.xlane.xlu2 %1727 }
 0xe3b   : > { %v1729_v33 = vadd.f32 1e-09, %v1728_v45 }
 0xe3d   : > { %3901 = vrcp.f32 %v1729_v33 }
 0xe42   : > { %v1733_v63 = vpop.permute.xlu2 %1732 }
 0xe43   : > { %v3902_v21 = vpop.eup %3901  ;;  %3724 = vmatpush.msk.msrb.mxu0 %vm481_vm0, %v1733_v63 }
 0xe44   : > { %v1731_v61 = vmul.f32 %v3902_v21, %v3894_v39 }
 0xe46   : > { %3725 = vmatmul.msk.f32.vlgmr.msrb.gmra.mxu0 %vm477_vm1, %v1731_v61 }
 0xe4b   : > { %v1797_v0 = vpop.xlane.xlu0 %1796 }
 0xe4c   : > { %v1798_v24 = vadd.f32 1e-09, %v1797_v0 }
 0xe4e   : > { %3903 = vrcp.f32 %v1798_v24  ;;  %v3828_v24 = vld [vmem:[%s5432_s7 + $0x370] ss:$0 sm:$0xff] }
 0xe51   : > { %v1866_v14 = vpop.xlane.xlu1 %1865 }
 0xe52   : > { %v1867_v1 = vadd.f32 1e-09, %v1866_v14 }
 0xe54   : > { %v3904_v25 = vpop.eup %3903  ;;  %3905 = vrcp.f32 %v1867_v1  ;;  %v3829_v1 = vld [vmem:[%s5432_s7 + $0x378] ss:$0 sm:$0xff] }
 0xe55   : > { %v1800_v17 = vmul.f32 %v3904_v25, %v3896_v46  ;;  %v2103_v46 = vld [vmem:[%s5434_s9 + $0x1f0] sm:$0xff] }
 0xe5a   : > { %v3906_v47 = vpop.eup %3905 }
 0xe5b   : > { %v1869_v48 = vmul.f32 %v3906_v47, %v3898_v54  ;;  %v2099_v54 = vld [vmem:[%s5434_s9 + $0x1d0] sm:$0xff] }
 0xe5c   : > { %v3830_v47 = vld [vmem:[%s5432_s7 + $0x130] ss:$0 sm:$0xff] }
 0xe5e   : > { %v1802_v20 = vpop.permute.xlu0 %1801 }
 0xe5f   : > { %3728 = vmatpush.msk.msrb.mxu2 %vm481_vm0, %v1802_v20 }
 0xe60   : > { %3729 = vmatmul.msk.f32.vlgmr.msrb.gmra.mxu2 %vm477_vm1, %v1800_v17 }
 0xe61   : > { %2003 = vmatpush.msra.mxu2 %v1972_v34 }
 0xe68   : > { %v1687_v6 = vpop.f32.mrf.mxu2 }
 0xe69   : > { %v1871_v52 = vpop.permute.xlu1 %1870 }
 0xe6a   : > { %3732 = vmatpush.msk.msra.mxu0 %vm481_vm0, %v1871_v52 }
 0xe6b   : > { %3733 = vmatmul.msk.f32.vlgmr.msra.gmra.mxu0 %vm477_vm1, %v1869_v48 }
 0xe6c   : > { %2138 = vmatpush.msrb.mxu0 %v2109_v41  ;;  %v1984_v41 = vld [vmem:[%s5432_s7 + $0x188] sm:$0xff] }
 0xe6e   : > { %2139 = vmatpush.msrb.mxu0 %v2107_v13  ;;  %v1983_v13 = vld [vmem:[%s5432_s7 + $0x180] sm:$0xff] }
 0xe70   : > { %2140 = vmatpush.msrb.mxu0 %v2105_v18  ;;  %v1982_v18 = vld [vmem:[%s5432_s7 + $0x178] sm:$0xff] }
 0xe72   : > { %2141 = vmatpush.msrb.mxu0 %v2103_v46  ;;  %v1981_v46 = vld [vmem:[%s5432_s7 + $0x170] sm:$0xff] }
 0xe74   : > { %2142 = vmatpush.msrb.mxu0 %v2101_v50  ;;  %v1979_v50 = vld [vmem:[%s5432_s7 + $0x160] sm:$0xff] }
 0xe76   : > { %2143 = vmatpush.msrb.mxu0 %v2099_v54  ;;  %v1977_v54 = vld [vmem:[%s5432_s7 + $0x150] sm:$0xff] }
 0xe78   : > { %2144 = vmatpush.msrb.mxu0 %v2097_v55  ;;  %v1975_v55 = vld [vmem:[%s5432_s7 + $0x140] sm:$0xff] }
 0xe7a   : > { %2145 = vmatpush.msrb.mxu0 %v2095_v57 }
 0xe94   : > { %v2071_v5 = vpop.xlane.xlu1 %2070 }
 0xe95   : > { %v2072_v8 = vmul.f32 %v2071_v5, %v4073_v15 }
 0xe97   : > { %v4646_v9 = vsub.f32 %v4631_v16, %v2072_v8 }
 0xe99   : > { %v2074_v11 = vmul.f32 %v4646_v9, %v4646_v9 }
 0xe9b   : > { %v2075_v12 = vsel %vm2068_vm11, %v2074_v11, 0.0 }
 0xec3   : > { %v1756_v2 = vpop.f32.mrf.mxu0 }
 0xec4   : > { %1898 = vrot.lane.b32.xlu0 %v1756_v2, %s3978_s15 }
 0xee3   : > { %v1825_v3 = vpop.f32.mrf.mxu2 }
 0xee4   : > { %1902 = vrot.lane.b32.xlu2 %v1825_v3, %s3981_s19  ;;  %v3736_v3 = vld [vmem:[%s5434_s9 + $0x230] ss:$8 sm:$0x3] }
 0xee5   : > { %v2124_v5 = vperm.slane %v3736_v3, 1 }
 0xee8   : > { %v1894_v4 = vpop.f32.mrf.mxu0 }
 0xee9   : > { %1906 = vrot.lane.b32.xlu0 %v1894_v4, %s3982_s20  ;;  %v2123_v4 = vperm.slane %v3736_v3, 0  ;;  %v457_v3 = vlaneseq }
 0xf13   : > { %2076 = vadd.xlane.f32.xlu0 %v2075_v12 }
 0xf36   : > { %v1899_v35 = vpop.permute.xlu0 %1898 }
 0xf37   : > { %v1909_v37 = vsel %vm743_vm12, %v1687_v6, %v1899_v35  ;;  %v1971_v35 = vld [vmem:[%s5433_s8 + $0x78] sm:$0xff] }
 0xf38   : > { %2004 = vmatpush.msra.mxu2 %v1971_v35 }
 0xf3e   : > { %v1903_v36 = vpop.permute.xlu2 %1902 }
 0xf3f   : > { %v1910_v38 = vsel %vm1024_vm14, %v1909_v37, %v1903_v36  ;;  %v1970_v36 = vld [vmem:[%s5433_s8 + $0x70] sm:$0xff]  ;;  %v1986_v37 = vld [vmem:[%s5432_s7 + $0x198] sm:$0xff] }
 0xf40   : > { %2005 = vmatpush.msra.mxu2 %v1970_v36  ;;  %2020 = vmatpush.msra.mxu3 %v1986_v37 }
 0xf5b   : > { %v1907_v39 = vpop.permute.xlu0 %1906 }
 0xf5c   : > { %v1911_v40 = vsel %vm1026_vm15, %v1910_v38, %v1907_v39  ;;  %v1969_v38 = vld [vmem:[%s5433_s8 + $0x68] sm:$0xff]  ;;  %v1985_v39 = vld [vmem:[%s5432_s7 + $0x190] sm:$0xff] }
 0xf5d   : > { %3734 = vmatmul.msk.f32.vlgmr.msra.gmra.mxu1 %vm631_vm2, %v1911_v40  ;;  %v1968_v40 = vld [vmem:[%s5433_s8 + $0x60] sm:$0xff]  ;;  %2006 = vmatpush.msra.mxu2 %v1969_v38 }
 0xf5e   : > { %2021 = vmatpush.msra.mxu3 %v1985_v39 }
 0xf5f   : > { %2007 = vmatpush.msra.mxu2 %v1968_v40 }
 0xf60   : > { %2022 = vmatpush.msra.mxu3 %v1984_v41 }
 0xf61   : > { %2008 = vmatpush.msra.mxu2 %v1967_v42 }
 0xf62   : > { %2023 = vmatpush.msra.mxu3 %v1983_v13 }
 0xf63   : > { %2009 = vmatpush.msra.mxu2 %v1966_v44 }
 0xf64   : > { %2024 = vmatpush.msra.mxu3 %v1982_v18 }
 0xf65   : > { %2010 = vmatpush.msra.mxu2 %v1965_v22 }
 0xf66   : > { %2025 = vmatpush.msra.mxu3 %v1981_v46 }
 0xf68   : > { %2026 = vmatpush.msra.mxu3 %v1980_v49 }
 0xf6a   : > { %2027 = vmatpush.msra.mxu3 %v1979_v50 }
 0xf6c   : > { %2028 = vmatpush.msra.mxu3 %v1978_v51 }
 0xf6e   : > { %2029 = vmatpush.msra.mxu3 %v1977_v54 }
 0xf70   : > { %2030 = vmatpush.msra.mxu3 %v1976_v10 }
 0xf72   : > { %2031 = vmatpush.msra.mxu3 %v1975_v55 }
 0xf74   : > { %2032 = vmatpush.msra.mxu3 %v1974_v56 }
 0xf86   : > { %v2077_v59 = vpop.xlane.xlu0 %2076 }
 0xf87   : > { %v2078_v60 = vmul.f32 %v2077_v59, %v4073_v15 }
 0xf89   : > { %v2079_v19 = vadd.f32 1e-06, %v2078_v60 }
 0xf8b   : > { %3907 = vrsqrt.f32 %v2079_v19  ;;  %vm2086_vm3 = vweird.f32 %v2079_v19 }
 0xf91   : > { %v3908_v45 = vpop.eup %3907 }
 0xf92   : > { %v2081_v33 = vmul.f32 %v3908_v45, %v2079_v19  ;;  %vm2087_vm13 = vweird.f32 %v3908_v45 }
 0xf93   : > { %vm2088_vm4 = vmor %vm2086_vm3, %vm2087_vm13  ;;  %vm2199_vm13 = vcmask 46080   ;;  %vm2212_vm3 = vcmask 48128  }
 0xf94   : > { %v2082_v63 = vmul.f32 %v3908_v45, %v2081_v33 }
 0xf96   : > { %v2083_v21 = vmul.f32 0.5, %v2082_v63 }
 0xf98   : > { %v2084_v61 = vsub.f32 1.5, %v2083_v21 }
 0xf9a   : > { %v2085_v0 = vmul.f32 %v3908_v45, %v2084_v61 }
 0xf9c   : > { %v2089_v14 = vsel %vm2088_vm4, %v3908_v45, %v2085_v0 }
 0xf9d   : > { %v2090_v25 = vmul.f32 %v2089_v14, %v4646_v9 }
 0xf9f   : > { %v2092_v17 = vmul.f32 %v3828_v24, %v2090_v25 }
 0xfa1   : > { %v2094_v20 = vadd.f32 %v3829_v1, %v2092_v17  ;;  %v3831_v17 = vld [vmem:[%s5432_s7 + $0x1f0] ss:$0 sm:$0xff] }
 0xfa3   : > { %3737 = vmatmul.msk.f32.vlgmr.msrb.gmra.mxu0 %vm631_vm2, %v2094_v20  ;;  %3738 = vmatmul.msk.f32.vlgmr.msrb.gmra.mxu1 %vm631_vm2, %v2094_v20 }
 0xfda   : > { %v1933_v48 = vpop.f32.mrf.mxu1 }
 0xfdb   : > { %v1934_v52 = vadd.f32 %v3830_v47, %v1933_v48  ;;  %v3832_v48 = vld [vmem:[%s5432_s7 + $0x1f8] ss:$0 sm:$0xff] }
 0xfdd   : > { %v4741_v2 = vadd.f32 %v1934_v52, %v4581_v43 }
 0xfdf   : > { %v1939_v6 = vsel %vm631_vm2, %v4741_v2, 0.0 }
 0xfe0   : > { %1940 = vadd.xlane.f32.xlu2 %v1939_v6 }
0x1020   : > { %v2147_v8 = vpop.f32.mrf.mxu0  ;;  %v2167_v9 = vpop.f32.mrf.mxu1 }
0x1021   : > { %v4748_v11 = vadd.f32 %v2147_v8, %v2123_v4  ;;  %v4750_v12 = vadd.f32 %v2167_v9, %v2124_v5  ;;  %v458_v4 = vshrl.u32 %v457_v3, 7  ;;  %v460_v5 = vand.u32 127, %v457_v3 }
0x1023   : > { %2239 = vrot.lane.b32.xlu0 %v4748_v11, %s3979_s16  ;;  %2171 = vrot.lane.b32.xlu1 %v4748_v11, %s3980_s18  ;;  %vm461_vm10 = vcmp.le.s32.totalorder %v460_v5, %v458_v4 }
0x1024   : > { %3741 = vmatpush.msk.msra.mxu0 %vm575_vm5, %v4750_v12  ;;  %v462_v9 = vsel %vm461_vm10, 0.0, %v3985_v27 }
0x102b   : > { %2379 = vrot.lane.b32.xlu0 %v4748_v11, %s3978_s15  ;;  %2310 = vrot.lane.b32.xlu1 %v4748_v11, %s3981_s19 }
0x1033   : > { %2377 = vrot.lane.b32.xlu1 %v4748_v11, %s3983_s21 }
0x1053   : > { %v1941_v43 = vpop.xlane.xlu2 %1940 }
0x1054   : > { %v1942_v23 = vmul.f32 %v1941_v43, %v4073_v15 }
0x1056   : > { %v4766_v26 = vsub.f32 %v4741_v2, %v1942_v23 }
0x1058   : > { %v1944_v30 = vmul.f32 %v4766_v26, %v4766_v26 }
0x105a   : > { %v1945_v31 = vsel %vm631_vm2, %v1944_v30, 0.0  ;;  %v3833_v30 = vld [vmem:[%s5433_s8 + $0x88] ss:$0 sm:$0xff] }
0x105b   : > { %1946 = vadd.xlane.f32.xlu2 %v1945_v31 }
0x1073   : > { %2241 = vrot.lane.b32.xlu2 %v4748_v11, %s3982_s20 }
0x107b   : > { %2308 = vrot.lane.b32.xlu2 %v4748_v11, %s3984_s22 }
0x1095   : > { %v2240_v57 = vpop.permute.xlu0 %2239  ;;  %v2172_v58 = vpop.permute.xlu1 %2171 }
0x1096   : > { %3739 = vmatpush.xpose.msk.msrb.mxu2 %vm743_vm12, %v2172_v58 }
0x109d   : > { %v2380_v59 = vpop.permute.xlu0 %2379  ;;  %v2311_v60 = vpop.permute.xlu1 %2310 }
0x109e   : > { %3747 = vmatpush.xpose.msk.msra.mxu1 %vm743_vm12, %v2311_v60  ;;  %3751 = vmatpush.xpose.msk.msrb.mxu3 %vm743_vm12, %v2380_v59 }
0x10a5   : > { %v2378_v35 = vpop.permute.xlu1 %2377 }
0x10ce   : > { %v1947_v19 = vpop.xlane.xlu2 %1946 }
0x10cf   : > { %v1948_v45 = vmul.f32 %v1947_v19, %v4073_v15 }
0x10d1   : > { %v1949_v33 = vadd.f32 1e-06, %v1948_v45 }
0x10d3   : > { %3909 = vrsqrt.f32 %v1949_v33  ;;  %vm1956_vm8 = vweird.f32 %v1949_v33 }
0x10d6   : > { %v2242_v63 = vpop.permute.xlu2 %2241 }
0x10d9   : > { %v3910_v21 = vpop.eup %3909 }
0x10da   : > { %v1951_v61 = vmul.f32 %v3910_v21, %v1949_v33  ;;  %vm1957_vm6 = vweird.f32 %v3910_v21 }
0x10db   : > { %vm1958_vm9 = vmor %vm1956_vm8, %vm1957_vm6 }
0x10dc   : > { %v1952_v0 = vmul.f32 %v3910_v21, %v1951_v61 }
0x10de   : > { %v1953_v24 = vmul.f32 0.5, %v1952_v0  ;;  %v2309_v14 = vpop.permute.xlu2 %2308 }
0x10df   : > { %3748 = vmatmul.msk.f32.vlgmr.msra.gmra.mxu1 %vm743_vm12, %v2309_v14 }
0x10e0   : > { %v1954_v25 = vsub.f32 1.5, %v1953_v24 }
0x10e2   : > { %v1955_v1 = vmul.f32 %v3910_v21, %v1954_v25 }
0x10e4   : > { %v1959_v20 = vsel %vm1958_vm9, %v3910_v21, %v1955_v1 }
0x10e5   : > { %v1960_v47 = vmul.f32 %v1959_v20, %v4766_v26 }
0x10e7   : > { %v1962_v52 = vmul.f32 %v3831_v17, %v1960_v47 }
0x10e9   : > { %v1964_v6 = vadd.f32 %v3832_v48, %v1962_v52 }
0x10eb   : > { %3735 = vmatmul.msk.f32.vlgmr.msra.gmra.mxu2 %vm631_vm2, %v1964_v6 }
0x10ec   : > { %3743 = vmatpush.xpose.msk.msra.mxu2 %vm743_vm12, %v2242_v63 }
0x10f3   : > { %3740 = vmatmul.msk.f32.vlgmr.msrb.gmra.mxu2 %vm743_vm12, %v4748_v11 }
0x10fb   : > { %3744 = vmatmul.msk.f32.vlgmr.msra.gmra.mxu2 %vm743_vm12, %v2240_v57 }
0x115c   : > { %v2333_v8 = vpop.f32.mrf.mxu1 }
0x115d   : > { %v2336_v43 = vmul.f32 0.25, %v2333_v8 }
0x115f   : > { %v2337_v23 = vadd.f32 %v2336_v43, %v462_v9 }
0x1161   : > { %v2338_v26 = vsel %vm2199_vm13, %v2337_v23, -inf }
0x1162   : > { %2339 = vmax.xlane.f32.xlu1 %v2338_v26 }
0x116e   : > { %v2012_v11 = vpop.f32.mrf.mxu2 }
0x116f   : > { %v2013_v31 = vadd.f32 %v3833_v30, %v2012_v11 }
0x1171   : > { %v2015_v7 = vmax.f32 %v2013_v31, 0.0 }
0x1173   : > { %2033 = vmatmul.f32.vlgmr.msra.gmra.mxu3 %v2015_v7 }
0x1176   : > { %v2194_v32 = vpop.f32.mrf.mxu2 }
0x1177   : > { %v2197_v34 = vmul.f32 0.25, %v2194_v32 }
0x1179   : > { %v2198_v53 = vadd.f32 %v2197_v34, %v462_v9 }
0x117b   : > { %3752 = vmatmul.msk.f32.vlgmr.msrb.gmra.mxu3 %vm743_vm12, %v2378_v35  ;;  %v2200_v27 = vsel %vm2199_vm13, %v2198_v53, -inf  ;;  %v2120_v35 = vld [vmem:[%s5432_s7 + $0x248] sm:$0xff] }
0x117c   : > { %2201 = vmax.xlane.f32.xlu0 %v2200_v27  ;;  %v2119_v27 = vld [vmem:[%s5432_s7 + $0x240] sm:$0xff]  ;;  %2473 = vmatpush.msrb.mxu1 %v2120_v35 }
0x117e   : > { %v2264_v36 = vpop.f32.mrf.mxu2  ;;  %2474 = vmatpush.msrb.mxu1 %v2119_v27 }
0x117f   : > { %v2267_v37 = vmul.f32 0.25, %v2264_v36  ;;  %v2118_v36 = vld [vmem:[%s5432_s7 + $0x238] sm:$0xff] }
0x1180   : > { %2475 = vmatpush.msrb.mxu1 %v2118_v36 }
0x1181   : > { %v2268_v38 = vadd.f32 %v2267_v37, %v462_v9  ;;  %v2116_v37 = vld [vmem:[%s5432_s7 + $0x228] sm:$0xff] }
0x1183   : > { %v2269_v39 = vsel %vm2199_vm13, %v2268_v38, -inf }
0x1184   : > { %2270 = vmax.xlane.f32.xlu2 %v2269_v39  ;;  %v2114_v39 = vld [vmem:[%s5432_s7 + $0x218] sm:$0xff] }
0x11d5   : > { %v2340_v44 = vpop.xlane.xlu1 %2339 }
0x11d6   : > { %v2341_v49 = vsub.f32 %v2337_v23, %v2340_v44 }
0x11d8   : > { %v2342_v54 = vmul.f32 1.442695, %v2341_v49 }
0x11ef   : > { %v2202_v40 = vpop.xlane.xlu0 %2201 }
0x11f0   : > { %v2203_v41 = vsub.f32 %v2198_v53, %v2202_v40 }
0x11f2   : > { %v2204_v42 = vmul.f32 1.442695, %v2203_v41 }
0x11f4   : > { %3911 = vpow2.f32 %v2204_v42 }
0x11f6   : > { %v4872_v13 = vpop.f32.mrf.mxu3 }
0x11f7   : > { %v2271_v18 = vpop.xlane.xlu2 %2270 }
0x11f8   : > { %v2272_v22 = vsub.f32 %v2268_v38, %v2271_v18  ;;  %v2115_v38 = vld [vmem:[%s5432_s7 + $0x220] sm:$0xff] }
0x11fa   : > { %v3912_v46 = vpop.eup %3911  ;;  %v2273_v50 = vmul.f32 1.442695, %v2272_v22  ;;  %v2113_v22 = vld [vmem:[%s5432_s7 + $0x210] sm:$0xff] }
0x11fb   : > { %v2206_v51 = vsel %vm2199_vm13, %v3912_v46, 0.0 }
0x11fc   : > { %3913 = vpow2.f32 %v2273_v50  ;;  %2207 = vadd.xlane.f32.xlu2 %v2206_v51 }
0x11fd   : > { %3915 = vpow2.f32 %v2342_v54 }
0x11fe   : > { %v2402_v10 = vpop.f32.mrf.mxu3 }
0x11ff   : > { %v2405_v55 = vmul.f32 0.25, %v2402_v10  ;;  %v2528_v10 = vld [vmem:[%s5434_s9 + $0x2b0] sm:$0xff] }
0x1200   : > { %2580 = vmatpush.msra.mxu3 %v2528_v10 }
0x1201   : > { %v2406_v56 = vadd.f32 %v2405_v55, %v462_v9  ;;  %v2529_v55 = vld [vmem:[%s5434_s9 + $0x2b8] sm:$0xff] }
0x1202   : > { %v3914_v57 = vpop.eup %3913 }
0x1203   : > { %v2407_v58 = vsel %vm2199_vm13, %v2406_v56, -inf  ;;  %v2275_v59 = vsel %vm2199_vm13, %v3914_v57, 0.0  ;;  %v3916_v60 = vpop.eup %3915 }
0x1204   : > { %2408 = vmax.xlane.f32.xlu0 %v2407_v58  ;;  %2276 = vadd.xlane.f32.xlu1 %v2275_v59  ;;  %v2344_v19 = vsel %vm2199_vm13, %v3916_v60, 0.0  ;;  %v2524_v58 = vld [vmem:[%s5434_s9 + $0x290] sm:$0xff]  ;;  %v2525_v59 = vld [vmem:[%s5434_s9 + $0x298] sm:$0xff] }
0x120c   : > { %2345 = vadd.xlane.f32.xlu0 %v2344_v19  ;;  %v2523_v19 = vld [vmem:[%s5434_s9 + $0x288] sm:$0xff] }
0x121d   : > { %2281 = vrot.lane.b32.xlu1 %v4750_v12, %s3979_s16 }
0x1220   : > { %2350 = vrot.lane.b32.xlu0 %v4750_v12, %s3984_s22 }
0x126f   : > { %v2208_v45 = vpop.xlane.xlu2 %2207 }
0x1270   : > { %v2209_v33 = vadd.f32 1e-09, %v2208_v45  ;;  %v2520_v45 = vld [vmem:[%s5434_s9 + $0x270] sm:$0xff] }
0x1272   : > { %3917 = vrcp.f32 %v2209_v33  ;;  %v2521_v33 = vld [vmem:[%s5434_s9 + $0x278] sm:$0xff] }
0x1277   : > { %v2409_v63 = vpop.xlane.xlu0 %2408  ;;  %v2277_v14 = vpop.xlane.xlu1 %2276 }
0x1278   : > { %v3918_v21 = vpop.eup %3917  ;;  %v2410_v61 = vsub.f32 %v2406_v56, %v2409_v63  ;;  %v2278_v1 = vadd.f32 1e-09, %v2277_v14  ;;  %v2526_v56 = vld [vmem:[%s5434_s9 + $0x2a0] sm:$0xff]  ;;  %v2515_v14 = vld [vmem:[%s5434_s9 + $0x248] sm:$0xff] }
0x1279   : > { %v2211_v0 = vmul.f32 %v3918_v21, %v3912_v46  ;;  %2581 = vmatpush.msra.mxu3 %v2526_v56  ;;  %v2518_v63 = vld [vmem:[%s5434_s9 + $0x260] sm:$0xff]  ;;  %v2519_v21 = vld [vmem:[%s5434_s9 + $0x268] sm:$0xff] }
0x127a   : > { %v2411_v24 = vmul.f32 1.442695, %v2410_v61  ;;  %v2516_v61 = vld [vmem:[%s5434_s9 + $0x250] sm:$0xff] }
0x127b   : > { %3742 = vmatmul.msk.f32.vlgmr.msra.gmra.mxu0 %vm2212_vm3, %v2211_v0  ;;  %2582 = vmatpush.msra.mxu3 %v2524_v58  ;;  %v2517_v0 = vld [vmem:[%s5434_s9 + $0x258] sm:$0xff] }
0x127c   : > { %3919 = vpow2.f32 %v2411_v24  ;;  %v2514_v24 = vld [vmem:[%s5434_s9 + $0x240] sm:$0xff] }
0x127d   : > { %3921 = vrcp.f32 %v2278_v1 }
0x127f   : > { %v2346_v17 = vpop.xlane.xlu0 %2345 }
0x1280   : > { %v2347_v47 = vadd.f32 1e-09, %v2346_v17 }
0x1282   : > { %v3920_v25 = vpop.eup %3919  ;;  %3923 = vrcp.f32 %v2347_v47 }
0x1283   : > { %v2413_v20 = vsel %vm2199_vm13, %v3920_v25, 0.0  ;;  %v3922_v48 = vpop.eup %3921  ;;  %vm2642_vm13 = vcmask 62464  }
0x1284   : > { %2414 = vadd.xlane.f32.xlu2 %v2413_v20  ;;  %v2280_v6 = vmul.f32 %v3922_v48, %v3914_v57  ;;  %v2527_v57 = vld [vmem:[%s5434_s9 + $0x2a8] sm:$0xff] }
0x1288   : > { %v3924_v52 = vpop.eup %3923 }
0x1289   : > { %v2349_v4 = vmul.f32 %v3924_v52, %v3916_v60  ;;  %v2522_v60 = vld [vmem:[%s5434_s9 + $0x280] sm:$0xff] }
0x128a   : > { %2583 = vmatpush.msra.mxu3 %v2522_v60 }
0x128c   : > { %2584 = vmatpush.msra.mxu3 %v2520_v45 }
0x128e   : > { %2585 = vmatpush.msra.mxu3 %v2518_v63 }
0x128f   : > { %v2282_v3 = vpop.permute.xlu1 %2281 }
0x1290   : > { %3745 = vmatpush.msk.msrb.mxu0 %vm575_vm5, %v2282_v3  ;;  %2586 = vmatpush.msra.mxu3 %v2516_v61 }
0x1291   : > { %3746 = vmatmul.msk.f32.vlgmr.msrb.gmra.mxu0 %vm2212_vm3, %v2280_v6 }
0x1292   : > { %v2351_v5 = vpop.permute.xlu0 %2350  ;;  %2587 = vmatpush.msra.mxu3 %v2514_v24 }
0x1293   : > { %3749 = vmatpush.msk.msrb.mxu2 %vm575_vm5, %v2351_v5 }
0x1294   : > { %3750 = vmatmul.msk.f32.vlgmr.msrb.gmra.mxu2 %vm2212_vm3, %v2349_v4  ;;  %v3835_v4 = vld [vmem:[%s5432_s7 + $0x200] ss:$0 sm:$0xff] }
0x1295   : > { %2555 = vmatpush.msra.mxu2 %v2528_v10  ;;  %v3838_v10 = vld [vmem:[%s5432_s7 + $0x380] ss:$0 sm:$0xff] }
0x1297   : > { %2556 = vmatpush.msra.mxu2 %v2526_v56 }
0x1299   : > { %2557 = vmatpush.msra.mxu2 %v2524_v58 }
0x129b   : > { %2558 = vmatpush.msra.mxu2 %v2522_v60 }
0x129c   : > { %2419 = vrot.lane.b32.xlu2 %v4750_v12, %s3983_s21  ;;  %v3834_v12 = vld [vmem:[%s5432_s7 + $0x1b8] ss:$0 sm:$0xff] }
0x129d   : > { %v2035_v7 = vadd.f32 %v3834_v12, %v4872_v13  ;;  %2559 = vmatpush.msra.mxu2 %v2520_v45 }
0x129f   : > { %v2037_v32 = vadd.f32 %v2035_v7, %v4741_v2  ;;  %v2117_v2 = vld [vmem:[%s5432_s7 + $0x230] sm:$0xff]  ;;  %2560 = vmatpush.msra.mxu2 %v2518_v63  ;;  %v3756_v7 = vld [vmem:[%s5434_s9 + $0x2c0] ss:$8 sm:$0x3] }
0x12a0   : > { %2476 = vmatpush.msrb.mxu1 %v2117_v2  ;;  %v2542_v35 = vperm.slane %v3756_v7, 0  ;;  %v5034_v63 = vld [vmem:[%s5434_s9 + $0x340] sm:$0xff] }
0x12a1   : > { %v2040_v34 = vsel %vm631_vm2, %v2037_v32, 0.0  ;;  %2561 = vmatpush.msra.mxu2 %v2516_v61  ;;  %v5041_v61 = vld [vmem:[%s5434_s9 + $0x330] sm:$0xff] }
0x12a2   : > { %2477 = vmatpush.msrb.mxu1 %v2116_v37 }
0x12a3   : > { %2562 = vmatpush.msra.mxu2 %v2514_v24 }
0x12a4   : > { %2478 = vmatpush.msrb.mxu1 %v2115_v38 }
0x12a6   : > { %2479 = vmatpush.msrb.mxu1 %v2114_v39 }
0x12a8   : > { %2480 = vmatpush.msrb.mxu1 %v2113_v22 }
0x12f7   : > { %v2415_v8 = vpop.xlane.xlu2 %2414 }
0x12f8   : > { %v2416_v9 = vadd.f32 1e-09, %v2415_v8  ;;  %v2236_v30 = vpop.f32.mrf.mxu0 }
0x12fa   : > { %3925 = vrcp.f32 %v2416_v9  ;;  %v3836_v9 = vld [vmem:[%s5432_s7 + $0x208] ss:$0 sm:$0xff] }
0x12ff   : > { %v2420_v43 = vpop.permute.xlu2 %2419 }
0x1300   : > { %v3926_v23 = vpop.eup %3925  ;;  %3753 = vmatpush.msk.msra.mxu0 %vm575_vm5, %v2420_v43 }
0x1301   : > { %v2418_v26 = vmul.f32 %v3926_v23, %v3920_v25 }
0x1302   : > { %2600 = vmatpush.msrb.mxu0 %v2529_v55 }
0x1303   : > { %3754 = vmatmul.msk.f32.vlgmr.msra.gmra.mxu0 %vm2212_vm3, %v2418_v26  ;;  %v3837_v26 = vld [vmem:[%s5432_s7 + $0x250] ss:$0 sm:$0xff] }
0x1304   : > { %2601 = vmatpush.msrb.mxu0 %v2527_v57  ;;  %v3839_v57 = vld [vmem:[%s5432_s7 + $0x388] ss:$0 sm:$0xff] }
0x1306   : > { %2602 = vmatpush.msrb.mxu0 %v2525_v59 }
0x1308   : > { %2603 = vmatpush.msrb.mxu0 %v2523_v19 }
0x130a   : > { %2604 = vmatpush.msrb.mxu0 %v2521_v33 }
0x130c   : > { %2605 = vmatpush.msrb.mxu0 %v2519_v21 }
0x130e   : > { %v2305_v11 = vpop.f32.mrf.mxu0  ;;  %2606 = vmatpush.msrb.mxu0 %v2517_v0 }
0x130f   : > { %2447 = vrot.lane.b32.xlu0 %v2305_v11, %s3978_s15 }
0x1310   : > { %2607 = vmatpush.msrb.mxu0 %v2515_v14  ;;  %v5047_v14 = vld [vmem:[%s5434_s9 + $0x320] sm:$0xff] }
0x1317   : > { %v2374_v31 = vpop.f32.mrf.mxu2 }
0x1318   : > { %2451 = vrot.lane.b32.xlu1 %v2374_v31, %s3981_s19 }
0x1339   : > { %2041 = vadd.xlane.f32.xlu0 %v2040_v34 }
0x1380   : > { %v2443_v53 = vpop.f32.mrf.mxu0 }
0x1381   : > { %2455 = vrot.lane.b32.xlu2 %v2443_v53, %s3982_s20  ;;  %v2448_v40 = vpop.permute.xlu0 %2447 }
0x1382   : > { %v2458_v49 = vsel %vm743_vm12, %v2236_v30, %v2448_v40 }
0x138a   : > { %v2452_v46 = vpop.permute.xlu1 %2451 }
0x138b   : > { %v2459_v50 = vsel %vm1024_vm14, %v2458_v49, %v2452_v46 }
0x13ac   : > { %v2042_v41 = vpop.xlane.xlu0 %2041 }
0x13ad   : > { %v2043_v42 = vmul.f32 %v2042_v41, %v4073_v15 }
0x13af   : > { %v4923_v13 = vsub.f32 %v2037_v32, %v2043_v42  ;;  %v2567_v32 = vperm.slane %v3756_v7, 1 }
0x13b1   : > { %v2045_v44 = vmul.f32 %v4923_v13, %v4923_v13 }
0x13b3   : > { %v2046_v18 = vsel %vm631_vm2, %v2045_v44, 0.0 }
0x13b4   : > { %2047 = vadd.xlane.f32.xlu2 %v2046_v18 }
0x13db   : > { %v2456_v51 = vpop.permute.xlu2 %2455 }
0x13dc   : > { %v2460_v54 = vsel %vm1026_vm15, %v2459_v50, %v2456_v51 }
0x13dd   : > { %3755 = vmatmul.msk.f32.vlgmr.msrb.gmra.mxu1 %vm631_vm2, %v2460_v54 }
0x1427   : > { %v2048_v25 = vpop.xlane.xlu2 %2047 }
0x1428   : > { %v2049_v1 = vmul.f32 %v2048_v25, %v4073_v15 }
0x142a   : > { %v2050_v17 = vadd.f32 1e-06, %v2049_v1  ;;  %v5053_v1 = vld [vmem:[%s5434_s9 + $0x310] sm:$0xff] }
0x142c   : > { %3927 = vrsqrt.f32 %v2050_v17  ;;  %vm2057_vm4 = vweird.f32 %v2050_v17 }
0x1432   : > { %v3928_v20 = vpop.eup %3927 }
0x1433   : > { %v2052_v47 = vmul.f32 %v3928_v20, %v2050_v17  ;;  %vm2058_vm5 = vweird.f32 %v3928_v20 }
0x1434   : > { %vm2059_vm6 = vmor %vm2057_vm4, %vm2058_vm5  ;;  %vm3080_vm4 = vcmask 29696  }
0x1435   : > { %v2053_v48 = vmul.f32 %v3928_v20, %v2052_v47 }
0x1437   : > { %v2054_v52 = vmul.f32 0.5, %v2053_v48  ;;  %v5067_v48 = vld [vmem:[%s5434_s9 + $0x2f0] sm:$0xff] }
0x1439   : > { %v2055_v6 = vsub.f32 1.5, %v2054_v52  ;;  %v3819_v52 = vld [vmem:[%s5432_s7 + $0x40] ss:$0 sm:$0xff] }
0x143b   : > { %v2056_v3 = vmul.f32 %v3928_v20, %v2055_v6  ;;  %v5076_v6 = vld [vmem:[%s5434_s9 + $0x2e0] sm:$0xff] }
0x143d   : > { %v2060_v5 = vsel %vm2059_vm6, %v3928_v20, %v2056_v3  ;;  %v5060_v20 = vld [vmem:[%s5434_s9 + $0x300] sm:$0xff]  ;;  %v5082_v3 = vld [vmem:[%s5434_s9 + $0x2d0] sm:$0xff] }
0x143e   : > { %v2061_v8 = vmul.f32 %v2060_v5, %v4923_v13 }
0x1440   : > { %v2063_v43 = vmul.f32 %v3835_v4, %v2061_v8  ;;  %v5086_v4 = vadd.f32 %v3819_v52, %v4179_v62  ;;  %v2954_v52 = vld [vmem:[%s5434_s9 + $0x2e8] sm:$0xff] }
0x1442   : > { %v2065_v23 = vadd.f32 %v3836_v9, %v2063_v43 }
0x1444   : > { %3758 = vmatmul.msk.f32.vlgmr.msra.gmra.mxu3 %vm631_vm2, %v2065_v23  ;;  %3759 = vmatmul.msk.f32.vlgmr.msrb.gmra.mxu0 %vm631_vm2, %v2065_v23 }
0x145a   : > { %v2482_v30 = vpop.f32.mrf.mxu1 }
0x145b   : > { %v2483_v11 = vadd.f32 %v3837_v26, %v2482_v30 }
0x145d   : > { %v4997_v31 = vadd.f32 %v2483_v11, %v4631_v16 }
0x145f   : > { %v2488_v12 = vsel %vm2068_vm11, %v4997_v31, 0.0 }
0x1460   : > { %2489 = vadd.xlane.f32.xlu1 %v2488_v12 }
0x14c1   : > { %v2609_v34 = vpop.f32.mrf.mxu0 }
0x14c2   : > { %v5004_v53 = vadd.f32 %v2609_v34, %v2567_v32 }
0x14c4   : > { %2673 = vmatpush.msrb.mxu2 %v5004_v53 }
0x14c7   : > { %v2589_v27 = vpop.f32.mrf.mxu3 }
0x14c8   : > { %v2590_v36 = vadd.f32 %v2589_v27, %v2542_v35 }
0x14ca   : > { %2680 = vrot.lane.b32.xlu2 %v2590_v36, %s3982_s20  ;;  %2613 = vrot.lane.b32.xlu1 %v2590_v36, %s3980_s18 }
0x14d2   : > { %2749 = vrot.lane.b32.xlu1 %v2590_v36, %s3981_s19 }
0x14d3   : > { %v2490_v16 = vpop.xlane.xlu1 %2489 }
0x14d4   : > { %v2491_v2 = vmul.f32 %v2490_v16, %v4073_v15 }
0x14d6   : > { %v2492_v37 = vsub.f32 %v4997_v31, %v2491_v2 }
0x14d8   : > { %v2493_v38 = vmul.f32 %v2492_v37, %v2492_v37 }
0x14da   : > { %v2494_v39 = vsel %vm2068_vm11, %v2493_v38, 0.0 }
0x14db   : > { %2495 = vadd.xlane.f32.xlu0 %v2494_v39 }
0x1524   : > { %v2681_v40 = vpop.permute.xlu2 %2680 }
0x1525   : > { %3763 = vmatpush.xpose.msk.msrb.mxu3 %vm743_vm12, %v2681_v40 }
0x153c   : > { %v2614_v41 = vpop.permute.xlu1 %2613 }
0x153d   : > { %3760 = vmatpush.xpose.msk.msra.mxu1 %vm743_vm12, %v2614_v41 }
0x1544   : > { %v2750_v42 = vpop.permute.xlu1 %2749 }
0x1545   : > { %3766 = vmatpush.xpose.msk.msrb.mxu1 %vm743_vm12, %v2750_v42 }
0x154e   : > { %v2496_v13 = vpop.xlane.xlu0 %2495 }
0x154f   : > { %v2497_v44 = vmul.f32 %v2496_v13, %v4073_v15 }
0x1551   : > { %v2498_v18 = vadd.f32 1e-06, %v2497_v44 }
0x1553   : > { %3929 = vrsqrt.f32 %v2498_v18  ;;  %vm2505_vm9 = vweird.f32 %v2498_v18 }
0x1559   : > { %v3930_v22 = vpop.eup %3929 }
0x155a   : > { %v2500_v46 = vmul.f32 %v3930_v22, %v2498_v18  ;;  %vm2506_vm8 = vweird.f32 %v3930_v22 }
0x155b   : > { %vm2507_vm10 = vmor %vm2505_vm9, %vm2506_vm8 }
0x155c   : > { %v2501_v49 = vmul.f32 %v3930_v22, %v2500_v46 }
0x155e   : > { %v2502_v50 = vmul.f32 0.5, %v2501_v49 }
0x1560   : > { %v2503_v51 = vsub.f32 1.5, %v2502_v50 }
0x1562   : > { %v2504_v54 = vmul.f32 %v3930_v22, %v2503_v51 }
0x1564   : > { %v2508_v55 = vsel %vm2507_vm10, %v3930_v22, %v2504_v54 }
0x1565   : > { %v2509_v56 = vmul.f32 %v2508_v55, %v2492_v37 }
0x1567   : > { %v2511_v58 = vmul.f32 %v3838_v10, %v2509_v56 }
0x1569   : > { %v2513_v59 = vadd.f32 %v3839_v57, %v2511_v58 }
0x156b   : > { %3757 = vmatmul.msk.f32.vlgmr.msra.gmra.mxu2 %vm631_vm2, %v2513_v59 }
0x15ee   : > { %v2564_v60 = vpop.f32.mrf.mxu2 }
0x15ef   : > { %v2565_v19 = vadd.f32 %v2564_v60, %v2542_v35 }
0x15f1   : > { %2678 = vrot.lane.b32.xlu0 %v2565_v19, %s3979_s16  ;;  %2747 = vrot.lane.b32.xlu2 %v2565_v19, %s3984_s22 }
0x15f2   : > { %2815 = vrot.lane.b32.xlu1 %v2565_v19, %s3983_s21  ;;  %3761 = vmatmul.msk.f32.vlgmr.msra.gmra.mxu1 %vm743_vm12, %v2565_v19 }
0x15f9   : > { %2817 = vrot.lane.b32.xlu0 %v2590_v36, %s3978_s15 }
0x164b   : > { %v2748_v45 = vpop.permute.xlu2 %2747 }
0x164c   : > { %3767 = vmatmul.msk.f32.vlgmr.msrb.gmra.mxu1 %vm743_vm12, %v2748_v45 }
0x1663   : > { %v2679_v33 = vpop.permute.xlu0 %2678 }
0x1664   : > { %3764 = vmatmul.msk.f32.vlgmr.msrb.gmra.mxu3 %vm743_vm12, %v2679_v33  ;;  %v2816_v0 = vpop.permute.xlu1 %2815 }
0x166b   : > { %v2818_v21 = vpop.permute.xlu0 %2817 }
0x166c   : > { %3769 = vmatpush.xpose.msk.msra.mxu3 %vm743_vm12, %v2818_v21 }
0x166f   : > { %v2637_v24 = vpop.f32.mrf.mxu1  ;;  %3770 = vmatmul.msk.f32.vlgmr.msra.gmra.mxu3 %vm743_vm12, %v2816_v0  ;;  %v2966_v0 = vld [vmem:[%s5434_s9 + $0x348] sm:$0xff] }
0x1670   : > { %3017 = vmatpush.msrb.mxu3 %v5034_v63  ;;  %v2640_v25 = vmul.f32 0.25, %v2637_v24 }
0x1672   : > { %3018 = vmatpush.msrb.mxu3 %v5041_v61  ;;  %v2641_v17 = vadd.f32 %v2640_v25, %v4265_v29  ;;  %v2962_v25 = vld [vmem:[%s5434_s9 + $0x328] sm:$0xff] }
0x1674   : > { %3019 = vmatpush.msrb.mxu3 %v5047_v14  ;;  %v2643_v47 = vsel %vm2642_vm13, %v2641_v17, -inf }
0x1675   : > { %2644 = vmax.xlane.f32.xlu0 %v2643_v47  ;;  %v2958_v47 = vld [vmem:[%s5434_s9 + $0x308] sm:$0xff] }
0x1676   : > { %3020 = vmatpush.msrb.mxu3 %v5053_v1 }
0x1678   : > { %3021 = vmatpush.msrb.mxu3 %v5060_v20 }
0x167a   : > { %3022 = vmatpush.msrb.mxu3 %v5067_v48 }
0x167c   : > { %3023 = vmatpush.msrb.mxu3 %v5076_v6 }
0x167e   : > { %3024 = vmatpush.msrb.mxu3 %v5082_v3 }
0x167f   : > { %3775 = vmatmul.msk.f32.vlgmr.msrb.gmra.mxu3 %vm631_vm2, %v5086_v4 }
0x16c9   : > { %v2772_v5 = vpop.f32.mrf.mxu1 }
0x16ca   : > { %v2775_v8 = vmul.f32 0.25, %v2772_v5 }
0x16cc   : > { %v2776_v9 = vadd.f32 %v2775_v8, %v4265_v29 }
0x16ce   : > { %v2777_v43 = vsel %vm2642_vm13, %v2776_v9, -inf }
0x16cf   : > { %2778 = vmax.xlane.f32.xlu1 %v2777_v43 }
0x16e7   : > { %v2703_v23 = vpop.f32.mrf.mxu3 }
0x16e8   : > { %v2706_v26 = vmul.f32 0.25, %v2703_v23  ;;  %v2645_v30 = vpop.xlane.xlu0 %2644 }
0x16e9   : > { %v2646_v11 = vsub.f32 %v2641_v17, %v2645_v30  ;;  %v2960_v17 = vld [vmem:[%s5434_s9 + $0x318] sm:$0xff] }
0x16ea   : > { %v2707_v12 = vadd.f32 %v2706_v26, %v4265_v29 }
0x16eb   : > { %v2647_v62 = vmul.f32 1.442695, %v2646_v11 }
0x16ec   : > { %v2708_v7 = vsel %vm2642_vm13, %v2707_v12, -inf }
0x16ed   : > { %3931 = vpow2.f32 %v2647_v62  ;;  %2709 = vmax.xlane.f32.xlu2 %v2708_v7  ;;  %v2539_v62 = vld [vmem:[%s5432_s7 + $0x290] sm:$0xff]  ;;  %v2538_v7 = vld [vmem:[%s5432_s7 + $0x288] sm:$0xff] }
0x16ee   : > { %2910 = vmatpush.msra.mxu1 %v2539_v62 }
0x16f0   : > { %2911 = vmatpush.msra.mxu1 %v2538_v7 }
0x16f2   : > { %v2840_v32 = vpop.f32.mrf.mxu3 }
0x16f3   : > { %v3932_v34 = vpop.eup %3931  ;;  %v2843_v35 = vmul.f32 0.25, %v2840_v32  ;;  %v2537_v32 = vld [vmem:[%s5432_s7 + $0x280] sm:$0xff] }
0x16f4   : > { %v2649_v27 = vsel %vm2642_vm13, %v3932_v34, 0.0  ;;  %2912 = vmatpush.msra.mxu1 %v2537_v32 }
0x16f5   : > { %2650 = vadd.xlane.f32.xlu2 %v2649_v27  ;;  %v2844_v36 = vadd.f32 %v2843_v35, %v4265_v29  ;;  %v2535_v35 = vld [vmem:[%s5432_s7 + $0x270] sm:$0xff]  ;;  %v2534_v27 = vld [vmem:[%s5432_s7 + $0x268] sm:$0xff] }
0x16f7   : > { %v2845_v16 = vsel %vm2642_vm13, %v2844_v36, -inf }
0x16f8   : > { %2846 = vmax.xlane.f32.xlu0 %v2845_v16  ;;  %v2532_v16 = vld [vmem:[%s5432_s7 + $0x258] sm:$0xff] }
0x1702   : > { %v3026_v26 = vpop.f32.mrf.mxu3 }
0x1742   : > { %v2779_v2 = vpop.xlane.xlu1 %2778 }
0x1743   : > { %v2780_v37 = vsub.f32 %v2776_v9, %v2779_v2  ;;  %v5150_v9 = vld [vmem:[%s5434_s9 + $0x350] ss:$8 sm:$0x3] }
0x1744   : > { %v2979_v23 = vperm.slane %v5150_v9, 0 }
0x1745   : > { %v2781_v38 = vmul.f32 1.442695, %v2780_v37 }
0x1746   : > { %v3027_v30 = vadd.f32 %v3026_v26, %v2979_v23 }
0x1747   : > { %3933 = vpow2.f32 %v2781_v38 }
0x174d   : > { %v3934_v39 = vpop.eup %3933 }
0x174e   : > { %v2783_v40 = vsel %vm2642_vm13, %v3934_v39, 0.0 }
0x174f   : > { %2784 = vadd.xlane.f32.xlu0 %v2783_v40 }
0x1760   : > { %v2710_v41 = vpop.xlane.xlu2 %2709 }
0x1761   : > { %v2711_v42 = vsub.f32 %v2707_v12, %v2710_v41 }
0x1763   : > { %v2712_v13 = vmul.f32 1.442695, %v2711_v42  ;;  %2789 = vrot.lane.b32.xlu0 %v5004_v53, %s3984_s22 }
0x1765   : > { %3935 = vpow2.f32 %v2712_v13 }
0x1768   : > { %v2651_v44 = vpop.xlane.xlu2 %2650 }
0x1769   : > { %v2652_v29 = vadd.f32 1e-09, %v2651_v44 }
0x176b   : > { %v3936_v18 = vpop.eup %3935  ;;  %3937 = vrcp.f32 %v2652_v29  ;;  %v2847_v22 = vpop.xlane.xlu0 %2846 }
0x176c   : > { %v2848_v46 = vsub.f32 %v2844_v36, %v2847_v22  ;;  %v2714_v49 = vsel %vm2642_vm13, %v3936_v18, 0.0  ;;  %v2533_v36 = vld [vmem:[%s5432_s7 + $0x260] sm:$0xff] }
0x176d   : > { %2715 = vadd.xlane.f32.xlu1 %v2714_v49 }
0x176e   : > { %v2849_v50 = vmul.f32 1.442695, %v2848_v46 }
0x1770   : > { %3939 = vpow2.f32 %v2849_v50 }
0x1771   : > { %v3938_v51 = vpop.eup %3937 }
0x1772   : > { %v2654_v54 = vmul.f32 %v3938_v51, %v3932_v34  ;;  %v2536_v34 = vld [vmem:[%s5432_s7 + $0x278] sm:$0xff] }
0x1773   : > { %2913 = vmatpush.msra.mxu1 %v2536_v34 }
0x1774   : > { %3762 = vmatmul.msk.f32.vlgmr.msrb.gmra.mxu2 %vm543_vm7, %v2654_v54 }
0x1775   : > { %2914 = vmatpush.msra.mxu1 %v2535_v35 }
0x1776   : > { %v3940_v10 = vpop.eup %3939 }
0x1777   : > { %v2851_v55 = vsel %vm2642_vm13, %v3940_v10, 0.0  ;;  %2915 = vmatpush.msra.mxu1 %v2534_v27 }
0x1778   : > { %2852 = vadd.xlane.f32.xlu2 %v2851_v55 }
0x1779   : > { %2916 = vmatpush.msra.mxu1 %v2533_v36 }
0x177b   : > { %2917 = vmatpush.msra.mxu1 %v2532_v16 }
0x1786   : > { %2721 = vrot.lane.b32.xlu1 %v5004_v53, %s3979_s16 }
0x1790   : > { %2857 = vrot.lane.b32.xlu2 %v5004_v53, %s3983_s21 }
0x17c2   : > { %v2785_v56 = vpop.xlane.xlu0 %2784 }
0x17c3   : > { %v2786_v57 = vadd.f32 1e-09, %v2785_v56 }
0x17c5   : > { %3941 = vrcp.f32 %v2786_v57 }
0x17cb   : > { %v3942_v58 = vpop.eup %3941 }
0x17cc   : > { %v2788_v59 = vmul.f32 %v3942_v58, %v3934_v39 }
0x17d5   : > { %v2790_v60 = vpop.permute.xlu0 %2789 }
0x17d6   : > { %2810 = vmatpush.msra.mxu2 %v2790_v60 }
0x17d7   : > { %3768 = vmatmul.msk.f32.vlgmr.msra.gmra.mxu2 %vm543_vm7, %v2788_v59 }
0x17d8   : > { %2992 = vmatpush.msrb.mxu2 %v5034_v63 }
0x17da   : > { %2993 = vmatpush.msrb.mxu2 %v5041_v61 }
0x17dc   : > { %2994 = vmatpush.msrb.mxu2 %v5047_v14  ;;  %v2964_v14 = vld [vmem:[%s5434_s9 + $0x338] sm:$0xff] }
0x17de   : > { %2995 = vmatpush.msrb.mxu2 %v5053_v1 }
0x17e0   : > { %2996 = vmatpush.msrb.mxu2 %v5060_v20  ;;  %v2716_v53 = vpop.xlane.xlu1 %2715 }
0x17e1   : > { %v2717_v19 = vadd.f32 1e-09, %v2716_v53 }
0x17e2   : > { %2997 = vmatpush.msrb.mxu2 %v5067_v48  ;;  %v2956_v48 = vld [vmem:[%s5434_s9 + $0x2f8] sm:$0xff] }
0x17e3   : > { %3943 = vrcp.f32 %v2717_v19 }
0x17e4   : > { %2998 = vmatpush.msrb.mxu2 %v5076_v6  ;;  %v2952_v6 = vld [vmem:[%s5434_s9 + $0x2d8] sm:$0xff] }
0x17e6   : > { %2999 = vmatpush.msrb.mxu2 %v5082_v3 }
0x17e9   : > { %v3944_v63 = vpop.eup %3943 }
0x17ea   : > { %v2719_v21 = vmul.f32 %v3944_v63, %v3936_v18  ;;  %v3840_v18 = vld [vmem:[%s5432_s7 + $0x298] ss:$0 sm:$0xff]  ;;  %v3841_v63 = vld [vmem:[%s5432_s7 + $0x390] ss:$0 sm:$0xff] }
0x17eb   : > { %v2853_v45 = vpop.xlane.xlu2 %2852 }
0x17ec   : > { %v2854_v33 = vadd.f32 1e-09, %v2853_v45 }
0x17ee   : > { %3945 = vrcp.f32 %v2854_v33 }
0x17f3   : > { %v2858_v24 = vpop.permute.xlu2 %2857 }
0x17f4   : > { %v3946_v1 = vpop.eup %3945 }
0x17f5   : > { %v2856_v20 = vmul.f32 %v3946_v1, %v3940_v10 }
0x17f7   : > { %v2675_v3 = vpop.f32.mrf.mxu2 }
0x17f8   : > { %v2722_v61 = vpop.permute.xlu1 %2721 }
0x17f9   : > { %2742 = vmatpush.msra.mxu0 %v2722_v61 }
0x17fa   : > { %3765 = vmatmul.msk.f32.vlgmr.msra.gmra.mxu0 %vm543_vm7, %v2719_v21 }
0x17fb   : > { %2878 = vmatpush.msrb.mxu0 %v2858_v24 }
0x17fd   : > { %3037 = vmatpush.msra.mxu0 %v2966_v0  ;;  %v3842_v0 = vld [vmem:[%s5432_s7 + $0x398] ss:$0 sm:$0xff] }
0x17ff   : > { %3038 = vmatpush.msra.mxu0 %v2964_v14 }
0x1801   : > { %3039 = vmatpush.msra.mxu0 %v2962_v25 }
0x1802   : > { %3771 = vmatmul.msk.f32.vlgmr.msrb.gmra.mxu0 %vm543_vm7, %v2856_v20 }
0x1803   : > { %3040 = vmatpush.msra.mxu0 %v2960_v17 }
0x1805   : > { %3041 = vmatpush.msra.mxu0 %v2958_v47 }
0x1807   : > { %3042 = vmatpush.msra.mxu0 %v2956_v48  ;;  %v3078_v48 = vperm.slane %v4262_v28, 3 }
0x1809   : > { %3043 = vmatpush.msra.mxu0 %v2954_v52 }
0x180b   : > { %3044 = vmatpush.msra.mxu0 %v2952_v6 }
0x180c   : > { %3776 = vmatmul.msk.f32.vlgmr.msra.gmra.mxu0 %vm631_vm2, %v5086_v4  ;;  %v3004_v4 = vperm.slane %v5150_v9, 1 }
0x185a   : > { %v2812_v5 = vpop.f32.mrf.mxu2 }
0x185b   : > { %2888 = vrot.lane.b32.xlu1 %v2812_v5, %s3981_s19 }
0x1877   : > { %v2744_v8 = vpop.f32.mrf.mxu0 }
0x1878   : > { %2884 = vrot.lane.b32.xlu0 %v2744_v8, %s3978_s15 }
0x187f   : > { %v2880_v43 = vpop.f32.mrf.mxu0 }
0x1880   : > { %2892 = vrot.lane.b32.xlu2 %v2880_v43, %s3982_s20 }
0x1888   : > { %3050 = vrot.lane.b32.xlu2 %v3027_v30, %s3980_s18 }
0x1889   : > { %v3046_v11 = vpop.f32.mrf.mxu0 }
0x188a   : > { %v5157_v12 = vadd.f32 %v3046_v11, %v3004_v4 }
0x188c   : > { %3779 = vmatpush.msk.msra.mxu2 %vm481_vm0, %v5157_v12 }
0x1890   : > { %3121 = vrot.lane.b32.xlu2 %v3027_v30, %s3982_s20 }
0x1898   : > { %3190 = vrot.lane.b32.xlu2 %v3027_v30, %s3981_s19 }
0x18a0   : > { %3259 = vrot.lane.b32.xlu2 %v3027_v30, %s3978_s15 }
0x18cd   : > { %v2889_v39 = vpop.permute.xlu1 %2888 }
0x18da   : > { %v2893_v2 = vpop.permute.xlu2 %2892 }
0x18e2   : > { %v3051_v37 = vpop.permute.xlu2 %3050 }
0x18e3   : > { %3777 = vmatpush.xpose.msk.msrb.mxu1 %vm743_vm12, %v3051_v37 }
0x18ea   : > { %v2885_v38 = vpop.permute.xlu0 %2884  ;;  %v3122_v41 = vpop.permute.xlu2 %3121 }
0x18eb   : > { %v2895_v40 = vsel %vm743_vm12, %v2675_v3, %v2885_v38  ;;  %3781 = vmatpush.xpose.msk.msra.mxu3 %vm743_vm12, %v3122_v41 }
0x18ec   : > { %v2896_v42 = vsel %vm1024_vm14, %v2895_v40, %v2889_v39 }
0x18ed   : > { %v2897_v13 = vsel %vm1026_vm15, %v2896_v42, %v2893_v2 }
0x18ee   : > { %3772 = vmatmul.msk.f32.vlgmr.msra.gmra.mxu1 %vm631_vm2, %v2897_v13 }
0x18f2   : > { %v3191_v44 = vpop.permute.xlu2 %3190 }
0x18f3   : > { %3785 = vmatpush.xpose.msk.msra.mxu1 %vm743_vm12, %v3191_v44 }
0x18fa   : > { %v3260_v29 = vpop.permute.xlu2 %3259 }
0x18fb   : > { %3789 = vmatpush.xpose.msk.msrb.mxu3 %vm743_vm12, %v3260_v29 }
0x196b   : > { %v2919_v22 = vpop.f32.mrf.mxu1 }
0x196c   : > { %v2920_v46 = vadd.f32 %v3840_v18, %v2919_v22 }
0x196e   : > { %v5201_v49 = vadd.f32 %v2920_v46, %v4997_v31 }
0x1970   : > { %v2925_v50 = vsel %vm2068_vm11, %v5201_v49, 0.0 }
0x1971   : > { %2926 = vadd.xlane.f32.xlu0 %v2925_v50 }
0x19e4   : > { %v2927_v51 = vpop.xlane.xlu0 %2926 }
0x19e5   : > { %v2928_v54 = vmul.f32 %v2927_v51, %v4073_v15 }
0x19e7   : > { %v2929_v10 = vsub.f32 %v5201_v49, %v2928_v54 }
0x19e9   : > { %v2930_v55 = vmul.f32 %v2929_v10, %v2929_v10 }
0x19eb   : > { %v2931_v56 = vsel %vm2068_vm11, %v2930_v55, 0.0 }
0x19ec   : > { %2932 = vadd.xlane.f32.xlu1 %v2931_v56 }
0x1a5f   : > { %v2933_v57 = vpop.xlane.xlu1 %2932 }
0x1a60   : > { %v2934_v58 = vmul.f32 %v2933_v57, %v4073_v15 }
0x1a62   : > { %v2935_v59 = vadd.f32 1e-06, %v2934_v58 }
0x1a64   : > { %3947 = vrsqrt.f32 %v2935_v59  ;;  %vm2942_vm3 = vweird.f32 %v2935_v59 }
0x1a6a   : > { %v3948_v31 = vpop.eup %3947 }
0x1a6b   : > { %v2937_v60 = vmul.f32 %v3948_v31, %v2935_v59  ;;  %vm2943_vm7 = vweird.f32 %v3948_v31 }
0x1a6c   : > { %vm2944_vm5 = vmor %vm2942_vm3, %vm2943_vm7 }
0x1a6d   : > { %v2938_v53 = vmul.f32 %v3948_v31, %v2937_v60 }
0x1a6f   : > { %v2939_v19 = vmul.f32 0.5, %v2938_v53 }
0x1a71   : > { %v2940_v45 = vsub.f32 1.5, %v2939_v19 }
0x1a73   : > { %v2941_v33 = vmul.f32 %v3948_v31, %v2940_v45 }
0x1a75   : > { %v2945_v21 = vsel %vm2944_vm5, %v3948_v31, %v2941_v33 }
0x1a76   : > { %v2946_v61 = vmul.f32 %v2945_v21, %v2929_v10 }
0x1a78   : > { %v2948_v24 = vmul.f32 %v3841_v63, %v2946_v61 }
0x1a7a   : > { %v2950_v14 = vadd.f32 %v3842_v0, %v2948_v24 }
0x1a7c   : > { %3774 = vmatmul.msk.f32.vlgmr.msrb.gmra.mxu2 %vm631_vm2, %v2950_v14 }
0x1aff   : > { %v3001_v25 = vpop.f32.mrf.mxu2 }
0x1b00   : > { %v3002_v1 = vadd.f32 %v3001_v25, %v2979_v23 }
0x1b02   : > { %3188 = vrot.lane.b32.xlu0 %v3002_v1, %s3984_s22  ;;  %3119 = vrot.lane.b32.xlu2 %v3002_v1, %s3979_s16 }
0x1b03   : > { %3778 = vmatmul.msk.f32.vlgmr.msrb.gmra.mxu1 %vm743_vm12, %v3002_v1 }
0x1b0a   : > { %3257 = vrot.lane.b32.xlu2 %v3002_v1, %s3983_s21 }
0x1b5c   : > { %v3120_v17 = vpop.permute.xlu2 %3119 }
0x1b5d   : > { %3782 = vmatmul.msk.f32.vlgmr.msra.gmra.mxu3 %vm743_vm12, %v3120_v17 }
0x1b64   : > { %v3258_v20 = vpop.permute.xlu2 %3257 }
0x1b65   : > { %3790 = vmatmul.msk.f32.vlgmr.msrb.gmra.mxu3 %vm743_vm12, %v3258_v20  ;;  %v2976_v20 = vld [vmem:[%s5432_s7 + $0x2d8] sm:$0xff] }
0x1b66   : > { %3353 = vmatpush.msrb.mxu1 %v2976_v20  ;;  %v3846_v20 = vld [vmem:[%s5433_s8 + $0xd0] ss:$0 sm:$0xff] }
0x1b74   : > { %v3189_v47 = vpop.permute.xlu0 %3188 }
0x1b75   : > { %3786 = vmatmul.msk.f32.vlgmr.msra.gmra.mxu1 %vm743_vm12, %v3189_v47  ;;  %v2975_v47 = vld [vmem:[%s5432_s7 + $0x2d0] sm:$0xff] }
0x1b76   : > { %3354 = vmatpush.msrb.mxu1 %v2975_v47 }
0x1b80   : > { %v3074_v52 = vpop.f32.mrf.mxu1 }
0x1b81   : > { %v3077_v6 = vmul.f32 0.25, %v3074_v52  ;;  %v2973_v52 = vld [vmem:[%s5432_s7 + $0x2c0] sm:$0xff] }
0x1b83   : > { %v3079_v3 = vadd.f32 %v3078_v48, %v3077_v6  ;;  %v2972_v6 = vld [vmem:[%s5432_s7 + $0x2b8] sm:$0xff] }
0x1b85   : > { %v3081_v5 = vsel %vm3080_vm4, %v3079_v3, -inf }
0x1b86   : > { %3082 = vmax.xlane.f32.xlu1 %v3081_v5  ;;  %v2970_v5 = vld [vmem:[%s5432_s7 + $0x2a8] sm:$0xff] }
0x1be0   : > { %v3144_v8 = vpop.f32.mrf.mxu3 }
0x1be1   : > { %v3147_v9 = vmul.f32 0.25, %v3144_v8  ;;  %v2969_v8 = vld [vmem:[%s5432_s7 + $0x2a0] sm:$0xff] }
0x1be3   : > { %v3148_v43 = vadd.f32 %v3147_v9, %v3078_v48 }
0x1be5   : > { %v3149_v23 = vsel %vm3080_vm4, %v3148_v43, -inf }
0x1be6   : > { %3150 = vmax.xlane.f32.xlu2 %v3149_v23 }
0x1be8   : > { %v3282_v26 = vpop.f32.mrf.mxu3 }
0x1be9   : > { %v3285_v4 = vmul.f32 0.25, %v3282_v26 }
0x1beb   : > { %v3286_v30 = vadd.f32 %v3285_v4, %v3078_v48 }
0x1bed   : > { %v3287_v11 = vsel %vm3080_vm4, %v3286_v30, -inf }
0x1bee   : > { %3288 = vmax.xlane.f32.xlu0 %v3287_v11  ;;  %v3843_v11 = vld [vmem:[%s5432_s7 + $0x2e0] ss:$0 sm:$0xff] }
0x1bf2   : > { %v3213_v28 = vpop.f32.mrf.mxu1 }
0x1bf3   : > { %v3216_v62 = vmul.f32 0.25, %v3213_v28 }
0x1bf5   : > { %v3217_v7 = vadd.f32 %v3216_v62, %v3078_v48  ;;  %v2974_v48 = vld [vmem:[%s5432_s7 + $0x2c8] sm:$0xff] }
0x1bf6   : > { %3355 = vmatpush.msrb.mxu1 %v2974_v48 }
0x1bf7   : > { %v3218_v32 = vsel %vm3080_vm4, %v3217_v7, -inf }
0x1bf8   : > { %3219 = vmax.xlane.f32.xlu1 %v3218_v32  ;;  %3356 = vmatpush.msrb.mxu1 %v2973_v52 }
0x1bf9   : > { %v3083_v34 = vpop.xlane.xlu1 %3082 }
0x1bfa   : > { %v3084_v35 = vsub.f32 %v3079_v3, %v3083_v34  ;;  %v2971_v3 = vld [vmem:[%s5432_s7 + $0x2b0] sm:$0xff]  ;;  %3357 = vmatpush.msrb.mxu1 %v2972_v6  ;;  %v3847_v6 = vld [vmem:[%s5432_s7 + $0x368] ss:$0 sm:$0xff] }
0x1bfc   : > { %v3085_v27 = vmul.f32 1.442695, %v3084_v35  ;;  %3358 = vmatpush.msrb.mxu1 %v2971_v3 }
0x1bfe   : > { %3949 = vpow2.f32 %v3085_v27  ;;  %3161 = vrot.lane.b32.xlu2 %v5157_v12, %s3979_s16  ;;  %3359 = vmatpush.msrb.mxu1 %v2970_v5 }
0x1c00   : > { %3360 = vmatpush.msrb.mxu1 %v2969_v8 }
0x1c02   : > { %3299 = vrot.lane.b32.xlu0 %v5157_v12, %s3983_s21 }
0x1c04   : > { %v3950_v36 = vpop.eup %3949 }
0x1c05   : > { %v3087_v16 = vsel %vm3080_vm4, %v3950_v36, 0.0 }
0x1c06   : > { %3088 = vadd.xlane.f32.xlu1 %v3087_v16 }
0x1c59   : > { %v3151_v2 = vpop.xlane.xlu2 %3150 }
0x1c5a   : > { %v3152_v41 = vsub.f32 %v3148_v43, %v3151_v2  ;;  %v3401_v2 = vld [vmem:[%s5433_s8 + $0xc8] sm:$0xff] }
0x1c5c   : > { %v3153_v13 = vmul.f32 1.442695, %v3152_v41  ;;  %v3395_v41 = vld [vmem:[%s5433_s8 + $0x98] sm:$0xff] }
0x1c61   : > { %v3162_v37 = vpop.permute.xlu2 %3161  ;;  %v3289_v39 = vpop.xlane.xlu0 %3288 }
0x1c62   : > { %3783 = vmatpush.msk.msrb.mxu0 %vm481_vm0, %v3162_v37  ;;  %v3290_v18 = vsub.f32 %v3286_v30, %v3289_v39  ;;  %v3399_v37 = vld [vmem:[%s5433_s8 + $0xb8] sm:$0xff]  ;;  %v3397_v39 = vld [vmem:[%s5433_s8 + $0xa8] sm:$0xff] }
0x1c64   : > { %v3291_v50 = vmul.f32 1.442695, %v3290_v18 }
0x1c6b   : > { %v3220_v38 = vpop.xlane.xlu1 %3219 }
0x1c6c   : > { %v3221_v40 = vsub.f32 %v3217_v7, %v3220_v38  ;;  %v3398_v38 = vld [vmem:[%s5433_s8 + $0xb0] sm:$0xff] }
0x1c6e   : > { %v3222_v42 = vmul.f32 1.442695, %v3221_v40  ;;  %v3396_v40 = vld [vmem:[%s5433_s8 + $0xa0] sm:$0xff] }
0x1c70   : > { %3951 = vpow2.f32 %v3222_v42  ;;  %v3394_v42 = vld [vmem:[%s5433_s8 + $0x90] sm:$0xff] }
0x1c71   : > { %3953 = vpow2.f32 %v3153_v13  ;;  %v3418_v13 = vld [vmem:[%s5432_s7 + $0x360] sm:$0xff] }
0x1c72   : > { %3446 = vmatpush.msra.mxu3 %v3418_v13 }
0x1c74   : > { %v3300_v44 = vpop.permute.xlu0 %3299 }
0x1c75   : > { %3791 = vmatpush.msk.msra.mxu0 %vm481_vm0, %v3300_v44  ;;  %v3417_v44 = vld [vmem:[%s5432_s7 + $0x358] sm:$0xff] }
0x1c76   : > { %v3952_v29 = vpop.eup %3951  ;;  %3447 = vmatpush.msra.mxu3 %v3417_v44 }
0x1c77   : > { %v3224_v22 = vsel %vm3080_vm4, %v3952_v29, 0.0  ;;  %v3954_v54 = vpop.eup %3953 }
0x1c78   : > { %3225 = vadd.xlane.f32.xlu1 %v3224_v22  ;;  %v3155_v10 = vsel %vm3080_vm4, %v3954_v54, 0.0 }
0x1c79   : > { %v3089_v46 = vpop.xlane.xlu1 %3088 }
0x1c7a   : > { %v3090_v51 = vadd.f32 1e-09, %v3089_v46  ;;  %v3415_v46 = vld [vmem:[%s5432_s7 + $0x348] sm:$0xff] }
0x1c7c   : > { %3955 = vrcp.f32 %v3090_v51  ;;  %v3414_v51 = vld [vmem:[%s5432_s7 + $0x340] sm:$0xff] }
0x1c7d   : > { %3957 = vpow2.f32 %v3291_v50 }
0x1c80   : > { %3156 = vadd.xlane.f32.xlu1 %v3155_v10  ;;  %v3412_v10 = vld [vmem:[%s5432_s7 + $0x330] sm:$0xff] }
0x1c82   : > { %v3956_v55 = vpop.eup %3955 }
0x1c83   : > { %v3092_v56 = vmul.f32 %v3956_v55, %v3950_v36  ;;  %v3958_v57 = vpop.eup %3957  ;;  %v3411_v55 = vld [vmem:[%s5432_s7 + $0x328] sm:$0xff] }
0x1c84   : > { %v3293_v58 = vsel %vm3080_vm4, %v3958_v57, 0.0 }
0x1c85   : > { %3780 = vmatmul.msk.f32.vlgmr.msra.gmra.mxu2 %vm477_vm1, %v3092_v56 }
0x1c88   : > { %3294 = vadd.xlane.f32.xlu1 %v3293_v58 }
0x1ca1   : > { %3230 = vrot.lane.b32.xlu1 %v5157_v12, %s3984_s22 }
0x1ceb   : > { %v3226_v59 = vpop.xlane.xlu1 %3225 }
0x1cec   : > { %v3227_v61 = vadd.f32 1e-09, %v3226_v59  ;;  %v3409_v59 = vld [vmem:[%s5432_s7 + $0x318] sm:$0xff] }
0x1cf3   : > { %v3157_v31 = vpop.xlane.xlu1 %3156 }
0x1cf4   : > { %v3158_v60 = vadd.f32 1e-09, %v3157_v31 }
0x1cf6   : > { %3959 = vrcp.f32 %v3158_v60  ;;  %v3408_v60 = vld [vmem:[%s5432_s7 + $0x310] sm:$0xff] }
0x1cfb   : > { %v3295_v53 = vpop.xlane.xlu1 %3294 }
0x1cfc   : > { %v3960_v19 = vpop.eup %3959  ;;  %v3296_v45 = vadd.f32 1e-09, %v3295_v53 }
0x1cfd   : > { %v3160_v33 = vmul.f32 %v3960_v19, %v3954_v54  ;;  %v3413_v54 = vld [vmem:[%s5432_s7 + $0x338] sm:$0xff]  ;;  %v3407_v19 = vld [vmem:[%s5432_s7 + $0x308] sm:$0xff] }
0x1cfe   : > { %3961 = vrcp.f32 %v3296_v45 }
0x1cff   : > { %3784 = vmatmul.msk.f32.vlgmr.msrb.gmra.mxu0 %vm477_vm1, %v3160_v33  ;;  %3963 = vrcp.f32 %v3227_v61  ;;  %v3406_v33 = vld [vmem:[%s5432_s7 + $0x300] sm:$0xff] }
0x1d04   : > { %v3962_v63 = vpop.eup %3961 }
0x1d05   : > { %v3298_v21 = vmul.f32 %v3962_v63, %v3958_v57  ;;  %v3964_v0 = vpop.eup %3963  ;;  %v3410_v57 = vld [vmem:[%s5432_s7 + $0x320] sm:$0xff] }
0x1d06   : > { %v3229_v24 = vmul.f32 %v3964_v0, %v3952_v29  ;;  %v3416_v29 = vld [vmem:[%s5432_s7 + $0x350] sm:$0xff] }
0x1d07   : > { %3792 = vmatmul.msk.f32.vlgmr.msra.gmra.mxu0 %vm477_vm1, %v3298_v21  ;;  %3448 = vmatpush.msra.mxu3 %v3416_v29  ;;  %v3844_v21 = vld [vmem:[%s5432_s7 + $0x3a0] ss:$0 sm:$0xff] }
0x1d08   : > { %v3116_v1 = vpop.f32.mrf.mxu2 }
0x1d09   : > { %3449 = vmatpush.msra.mxu3 %v3415_v46 }
0x1d0b   : > { %3450 = vmatpush.msra.mxu3 %v3414_v51 }
0x1d0d   : > { %3451 = vmatpush.msra.mxu3 %v3413_v54 }
0x1d0f   : > { %3452 = vmatpush.msra.mxu3 %v3412_v10 }
0x1d11   : > { %3453 = vmatpush.msra.mxu3 %v3411_v55 }
0x1d13   : > { %v3231_v12 = vpop.permute.xlu1 %3230  ;;  %3454 = vmatpush.msra.mxu3 %v3410_v57 }
0x1d14   : > { %3787 = vmatpush.msk.msrb.mxu2 %vm481_vm0, %v3231_v12 }
0x1d15   : > { %3788 = vmatmul.msk.f32.vlgmr.msrb.gmra.mxu2 %vm477_vm1, %v3229_v24  ;;  %3455 = vmatpush.msra.mxu3 %v3409_v59  ;;  %v3845_v24 = vld [vmem:[%s5432_s7 + $0x3a8] ss:$0 sm:$0xff] }
0x1d16   : > { %3432 = vmatpush.msra.mxu2 %v3401_v2 }
0x1d17   : > { %3456 = vmatpush.msra.mxu3 %v3408_v60 }
0x1d19   : > { %3457 = vmatpush.msra.mxu3 %v3407_v19 }
0x1d1b   : > { %3458 = vmatpush.msra.mxu3 %v3406_v33 }
0x1d7c   : > { %v3185_v14 = vpop.f32.mrf.mxu0 }
0x1d7d   : > { %3327 = vrot.lane.b32.xlu2 %v3185_v14, %s3978_s15  ;;  %s448_s15 = scalar_lea.vmem %s5430_s5, %s4056_s17 }
0x1d7e   : > { %v470_v46 = vld [vmem:[%s448_s15] sm:$0x3f] }
0x1d84   : > { %v3323_v25 = vpop.f32.mrf.mxu0 }
0x1d85   : > { %3335 = vrot.lane.b32.xlu0 %v3323_v25, %s3982_s20  ;;  %v3405_v25 = vld [vmem:[%s5432_s7 + $0x2f8] sm:$0xff] }
0x1d86   : > { %3459 = vmatpush.msra.mxu3 %v3405_v25 }
0x1d98   : > { %v3254_v17 = vpop.f32.mrf.mxu2 }
0x1d99   : > { %3331 = vrot.lane.b32.xlu1 %v3254_v17, %s3981_s19  ;;  %v3403_v17 = vld [vmem:[%s5432_s7 + $0x2e8] sm:$0xff] }
0x1dd7   : > { %v3328_v9 = vpop.permute.xlu2 %3327 }
0x1dd8   : > { %v3338_v43 = vsel %vm743_vm12, %v3116_v1, %v3328_v9  ;;  %v3404_v1 = vld [vmem:[%s5432_s7 + $0x2f0] sm:$0xff] }
0x1dd9   : > { %3460 = vmatpush.msra.mxu3 %v3404_v1 }
0x1ddb   : > { %3461 = vmatpush.msra.mxu3 %v3403_v17 }
0x1df7   : > { %v3336_v26 = vpop.permute.xlu0 %3335 }
0x1e0b   : > { %v3332_v23 = vpop.permute.xlu1 %3331 }
0x1e0c   : > { %v3339_v4 = vsel %vm1024_vm14, %v3338_v43, %v3332_v23 }
0x1e0d   : > { %v3340_v30 = vsel %vm1026_vm15, %v3339_v4, %v3336_v26 }
0x1e0e   : > { %3793 = vmatmul.msk.f32.vlgmr.msrb.gmra.mxu1 %vm631_vm2, %v3340_v30 }
0x1e8b   : > { %v3362_v28 = vpop.f32.mrf.mxu1 }
0x1e8c   : > { %v3363_v62 = vadd.f32 %v3843_v11, %v3362_v28  ;;  %v3502_v11 = vld [vmem:[%s5433_s8 + $0x38] sm:$0xff]  ;;  %v3501_v28 = vld [vmem:[%s5433_s8 + $0x30] sm:$0xff] }
0x1e8d   : > { %3516 = vmatpush.msrb.mxu0 %v3502_v11 }
0x1e8e   : > { %v5282_v7 = vadd.f32 %v3363_v62, %v5201_v49  ;;  %v3400_v49 = vld [vmem:[%s5433_s8 + $0xc0] sm:$0xff]  ;;  %v3500_v62 = vld [vmem:[%s5433_s8 + $0x28] sm:$0xff] }
0x1e8f   : > { %3433 = vmatpush.msra.mxu2 %v3400_v49  ;;  %3517 = vmatpush.msrb.mxu0 %v3501_v28 }
0x1e90   : > { %v3368_v32 = vsel %vm2068_vm11, %v5282_v7, 0.0 }
0x1e91   : > { %3369 = vadd.xlane.f32.xlu2 %v3368_v32  ;;  %3434 = vmatpush.msra.mxu2 %v3399_v37  ;;  %v3498_v32 = vld [vmem:[%s5433_s8 + $0x18] sm:$0xff] }
0x1e92   : > { %3518 = vmatpush.msrb.mxu0 %v3500_v62 }
0x1e93   : > { %3435 = vmatpush.msra.mxu2 %v3398_v38 }
0x1e95   : > { %3436 = vmatpush.msra.mxu2 %v3397_v39 }
0x1e97   : > { %3437 = vmatpush.msra.mxu2 %v3396_v40 }
0x1e99   : > { %3438 = vmatpush.msra.mxu2 %v3395_v41 }
0x1e9b   : > { %3439 = vmatpush.msra.mxu2 %v3394_v42  ;;  %v3848_v42 = vld [vmem:[%s5432_s7 + $0x3b0] ss:$0 sm:$0xff] }
0x1f04   : > { %v3370_v34 = vpop.xlane.xlu2 %3369 }
0x1f05   : > { %v3371_v35 = vmul.f32 %v3370_v34, %v4073_v15  ;;  %v3497_v34 = vld [vmem:[%s5433_s8 + $0x10] sm:$0xff] }
0x1f07   : > { %v3372_v27 = vsub.f32 %v5282_v7, %v3371_v35  ;;  %v3496_v35 = vld [vmem:[%s5433_s8 + $0x8] sm:$0xff] }
0x1f09   : > { %v3373_v36 = vmul.f32 %v3372_v27, %v3372_v27 }
0x1f0b   : > { %v3374_v16 = vsel %vm2068_vm11, %v3373_v36, 0.0 }
0x1f0c   : > { %3375 = vadd.xlane.f32.xlu1 %v3374_v16 }
0x1f7f   : > { %v3376_v18 = vpop.xlane.xlu1 %3375 }
0x1f80   : > { %v3377_v22 = vmul.f32 %v3376_v18, %v4073_v15 }
0x1f82   : > { %v3378_v50 = vadd.f32 1e-06, %v3377_v22  ;;  %v3850_v22 = vld [vmem:[%s5433_s8 + $0x40] ss:$0 sm:$0xff] }
0x1f84   : > { %3965 = vrsqrt.f32 %v3378_v50  ;;  %vm3385_vm1 = vweird.f32 %v3378_v50 }
0x1f8a   : > { %v3966_v56 = vpop.eup %3965 }
0x1f8b   : > { %v3380_v58 = vmul.f32 %v3966_v56, %v3378_v50  ;;  %vm3386_vm0 = vweird.f32 %v3966_v56 }
0x1f8c   : > { %vm3387_vm12 = vmor %vm3385_vm1, %vm3386_vm0 }
0x1f8d   : > { %v3381_v31 = vmul.f32 %v3966_v56, %v3380_v58 }
0x1f8f   : > { %v3382_v53 = vmul.f32 0.5, %v3381_v31 }
0x1f91   : > { %v3383_v45 = vsub.f32 1.5, %v3382_v53 }
0x1f93   : > { %v3384_v63 = vmul.f32 %v3966_v56, %v3383_v45 }
0x1f95   : > { %v3388_v61 = vsel %vm3387_vm12, %v3966_v56, %v3384_v63 }
0x1f96   : > { %v3389_v0 = vmul.f32 %v3388_v61, %v3372_v27  ;;  %v3495_v27 = vld [vmem:[%s5433_s8] sm:$0xff] }
0x1f98   : > { %v3391_v12 = vmul.f32 %v3844_v21, %v3389_v0 }
0x1f9a   : > { %v3393_v14 = vadd.f32 %v3845_v24, %v3391_v12 }
0x1f9c   : > { %3794 = vmatmul.msk.f32.vlgmr.msra.gmra.mxu2 %vm631_vm2, %v3393_v14 }
0x201f   : > { %v3441_v47 = vpop.f32.mrf.mxu2 }
0x2020   : > { %v3442_v48 = vadd.f32 %v3846_v20, %v3441_v47 }
0x2022   : > { %v3444_v52 = vmax.f32 %v3442_v48, 0.0 }
0x2024   : > { %3462 = vmatmul.f32.vlgmr.msra.gmra.mxu3 %v3444_v52 }
0x20a7   : > { %v3463_v3 = vpop.f32.mrf.mxu3 }
0x20a8   : > { %v3464_v5 = vadd.f32 %v3847_v6, %v3463_v3 }
0x20aa   : > { %v3466_v8 = vadd.f32 %v3464_v5, %v5282_v7  ;;  %v3499_v7 = vld [vmem:[%s5433_s8 + $0x20] sm:$0xff] }
0x20ab   : > { %3519 = vmatpush.msrb.mxu0 %v3499_v7 }
0x20ac   : > { %v3469_v9 = vsel %vm2068_vm11, %v3466_v8, 0.0 }
0x20ad   : > { %3470 = vadd.xlane.f32.xlu0 %v3469_v9  ;;  %3520 = vmatpush.msrb.mxu0 %v3498_v32 }
0x20af   : > { %3521 = vmatpush.msrb.mxu0 %v3497_v34 }
0x20b1   : > { %3522 = vmatpush.msrb.mxu0 %v3496_v35 }
0x20b3   : > { %3523 = vmatpush.msrb.mxu0 %v3495_v27 }
0x2120   : > { %v3471_v43 = vpop.xlane.xlu0 %3470 }
0x2121   : > { %v3472_v23 = vmul.f32 %v3471_v43, %v4073_v15 }
0x2123   : > { %v3473_v26 = vsub.f32 %v3466_v8, %v3472_v23 }
0x2125   : > { %v3474_v4 = vmul.f32 %v3473_v26, %v3473_v26 }
0x2127   : > { %v3475_v30 = vsel %vm2068_vm11, %v3474_v4, 0.0 }
0x2128   : > { %3476 = vadd.xlane.f32.xlu2 %v3475_v30 }
0x219b   : > { %v3477_v36 = vpop.xlane.xlu2 %3476 }
0x219c   : > { %v3478_v16 = vmul.f32 %v3477_v36, %v4073_v15  ;;  %v3849_v15 = vld [vmem:[%s5432_s7 + $0x3b8] ss:$0 sm:$0xff] }
0x219e   : > { %v3479_v2 = vadd.f32 1e-06, %v3478_v16 }
0x21a0   : > { %3967 = vrsqrt.f32 %v3479_v2  ;;  %vm3486_vm15 = vweird.f32 %v3479_v2 }
0x21a6   : > { %v3968_v49 = vpop.eup %3967 }
0x21a7   : > { %v3481_v37 = vmul.f32 %v3968_v49, %v3479_v2  ;;  %vm3487_vm14 = vweird.f32 %v3968_v49 }
0x21a8   : > { %vm3488_vm11 = vmor %vm3486_vm15, %vm3487_vm14 }
0x21a9   : > { %v3482_v38 = vmul.f32 %v3968_v49, %v3481_v37 }
0x21ab   : > { %v3483_v39 = vmul.f32 0.5, %v3482_v38 }
0x21ad   : > { %v3484_v40 = vsub.f32 1.5, %v3483_v39 }
0x21af   : > { %v3485_v41 = vmul.f32 %v3968_v49, %v3484_v40 }
0x21b1   : > { %v3489_v13 = vsel %vm3488_vm11, %v3968_v49, %v3485_v41 }
0x21b2   : > { %v3490_v44 = vmul.f32 %v3489_v13, %v3473_v26 }
0x21b4   : > { %v3492_v29 = vmul.f32 %v3848_v42, %v3490_v44 }
0x21b6   : > { %v3494_v18 = vadd.f32 %v3849_v15, %v3492_v29 }
0x21b8   : > { %3795 = vmatmul.msk.f32.vlgmr.msrb.gmra.mxu0 %vm631_vm2, %v3494_v18 }
0x2235   : > { %v3525_v50 = vpop.f32.mrf.mxu0 }
0x2236   : > { %v3526_v51 = vadd.f32 %v3850_v22, %v3525_v50 }
0x2238   : > { %v3528_v54 = vadd.f32 %v3526_v51, %v470_v46 }
0x223a   : > { %3529 = vst [vmem:[%s456_s11] sm:$0x3f] %v3528_v54 }
0x223b PF: > { %s20_s13 = sadd.s32 1, %s3975_s13  }
0x223c   : > { %p17_p4 = scmp.ge.s32.totalorder %s20_s13, 4  }
0x223e   :  { %19 = sbr.rel (!%p17_p4) target bundleno = 1 (0x1), region = 114 }

</bundles_post_ra>
